<compile_context>
chip_gen: v7x
topology: tpu7x:2x2x1
jax: 0.10.0
libtpu: 0.0.40
codegen_flags: <defaults>
</compile_context>

<pallas_src>
import math

import jax
import jax.numpy as jnp
from jax import lax
from jax.experimental import pallas as pl
from jax.experimental.pallas import tpu as pltpu


def _node_edge_kernel(
    # ---- per-batch data ----
    x_ref,        # (1, n, dx)
    e_ref,        # (1, n*n, de)   edge features, flattened (r = i*n + j)
    geo_ref,      # (1, n*n, 4)    [pairwise_dist, cosine, |pos_i|, |pos_j|]
    emask_ref,    # (1, n*n, 1)    mask_i * mask_j
    xmask_ref,    # (1, n, 1)
    pos_ref,      # (1, n, 3)
    ye_ref,       # (1, 2, de)     [y_e_add(y), y_e_mul(y)]
    yx_ref,       # (1, 2, dx)     [y_x_add(y), y_x_mul(y)]
    # ---- constants (fused weights, bias as last row) ----
    w_x5_ref,     # (dx+1, 3dx+2de)   [q | x_e_mul2 | k | v | x_e_mul1]
    w_inE_ref,    # (de+1, de)
    w_geo_ref,    # (5, de)           fused lin_dist1 / lin_norm_pos1 / lin_norm_pos2
    w_dp_ref,     # (de+1, 2de+H)     [dist_add_e | dist_mul_e | pos_att_mul]
    w_ep_ref,     # (de+1, H+de)      [e_att_mul | e_out]
    w_a_ref,      # (dx, H)           no bias
    w_out_ref,    # (H*dx+1, dx)
    w_etox_ref,   # (8de+1, 2dx)      block-diag [e_x_mul ; pos_x_mul]
    w_xout_ref,   # (dx+1, dx)
    w_epos1_ref,  # (de, de)          no bias
    w_epos2_ref,  # (1, de)           no bias (stored transposed)
    # ---- outputs ----
    xout_ref,     # (1, n, dx)
    eout_ref,     # (1, n*n, de)
    velout_ref,   # (1, n, 3)
    ystat_ref,    # (1, 4, dx+2de)    [Xtoy(newX) | Etoy(Y) | Etoy(dist1)] pooled stats
):
    n = x_ref.shape[1]
    dx = x_ref.shape[2]
    de = e_ref.shape[2]
    H = w_a_ref.shape[1]
    nn = n * n
    dxp = 3 * dx + 2 * de
    f32 = jnp.float32

    def mm(a, b):
        return jnp.dot(a, b, preferred_element_type=f32)

    X = x_ref[0]
    E0 = e_ref[0]
    geo = geo_ref[0]
    emask = emask_ref[0]
    xmask = xmask_ref[0]
    pos = pos_ref[0]

    # ---- hoisted mask broadcasts (JAX does not CSE broadcast_in_dim) ----
    emask_de = jnp.broadcast_to(emask, (nn, de))
    emask_H = jnp.broadcast_to(emask, (nn, H))
    xmask_dx = jnp.broadcast_to(xmask, (n, dx))
    xmask_pk = jnp.broadcast_to(xmask, (n, dxp))
    imask_e_de = 1e5 * (1.0 - emask_de)          # for Etoy min/max
    big_imj3 = (1e5 * (1.0 - xmask))[None, :, :]  # (1, n, 1) for EtoX min/max
    mj3 = xmask[None, :, :]                       # (1, n, 1) softmax j-mask

    nvalid = jnp.sum(xmask, axis=0, keepdims=True)       # (1, 1)
    inv_n = pl.reciprocal(nvalid, approx=True)
    inv_n2 = inv_n * inv_n

    # ---- selection matrices generated in-kernel (no O(n^3) HBM constants) ----
    ridx = lax.broadcasted_iota(jnp.int32, (nn, n), 0)
    cidx = lax.broadcasted_iota(jnp.int32, (nn, n), 1)
    Rm = jnp.where((ridx >= cidx * n) & (ridx < (cidx + 1) * n), 1.0, 0.0)   # (nn, n): per-i broadcast
    r2 = lax.broadcasted_iota(jnp.int32, (n, nn), 1)
    i2 = lax.broadcasted_iota(jnp.int32, (n, nn), 0)
    SEG = jnp.where((r2 >= i2 * n) & (r2 < (i2 + 1) * n), 1.0, 0.0)          # (n, nn): segment-sum over j

    # ---- geometry features -> dist1 (fused lin_dist1 + lin_norm_pos1 + lin_norm_pos2) ----
    dist1 = jnp.maximum(mm(geo, w_geo_ref[0:4, :]) + w_geo_ref[4:5, :], 0.0) * emask_de

    # ---- fused X-side linears: [Q | xe2 | K | V | xe1], one lane-dense 128-wide matmul ----
    Xpk = (mm(X, w_x5_ref[0:dx, :]) + w_x5_ref[dx:dx + 1, :]) * xmask_pk     # (n, dxp)
    rep_i = mm(Rm, Xpk[:, 0:dx + de])                  # per-i broadcast (one small matmul)
    Q_rep = rep_i[:, 0:dx]
    xe2_rep = rep_i[:, dx:dx + de]
    Xj = Xpk[:, dx + de:dxp]
    rep_j = jnp.concatenate([Xj] * n, axis=0)          # per-j broadcast (sublane concat)
    K_rep = rep_j[:, 0:dx]
    V_rep = rep_j[:, dx:2 * dx]
    xe1_rep = rep_j[:, 2 * dx:2 * dx + de]

    # ---- edge update ----
    Y = mm(E0, w_inE_ref[0:de, :]) + w_inE_ref[de:de + 1, :]
    Y = Y * xe1_rep * xe2_rep * emask_de
    Dpk = mm(dist1, w_dp_ref[0:de, :]) + w_dp_ref[de:de + 1, :]   # (nn, 2de+H)
    dist_add = Dpk[:, 0:de]
    dist_mul = Dpk[:, de:2 * de]
    p_att = Dpk[:, 2 * de:2 * de + H]
    Y = (Y + dist_add + Y * dist_mul) * emask_de
    y_e_add = ye_ref[0, 0:1, :]
    y_e_mul = ye_ref[0, 1:2, :]
    E_new = (Y + y_e_add + Y * y_e_mul) * emask_de
    Epk = mm(E_new, w_ep_ref[0:de, :]) + w_ep_ref[de:de + 1, :]   # (nn, H+de)
    e_att = Epk[:, 0:H]
    eout_ref[0] = Epk[:, H:H + de] * emask_de                     # e_out

    # ---- attention scores ----
    prod = Q_rep * K_rep * (1.0 / math.sqrt(de))
    a = mm(prod, w_a_ref[...]) * emask_H
    a = a + e_att * a
    a = a + p_att * a
    a = a * emask_H

    # ---- masked softmax over j (vectorized via (n, n, H) view) ----
    # TODO(synk): reference masked_softmax returns its input unchanged when the whole
    # batch mask is all-zero; that degenerate branch is not reproduced here.
    a3 = a.reshape(n, n, H)
    a3 = jnp.where(mj3 > 0.0, a3, -1e30)
    mx = jnp.max(a3, axis=1, keepdims=True)
    ex3 = jnp.exp(a3 - mx)
    s3 = jnp.sum(ex3, axis=1, keepdims=True)
    alpha3 = ex3 * pl.reciprocal(s3, approx=True)
    alpha = alpha3.reshape(nn, H)

    # ---- weighted values: one lane-dense segment-sum + one projection ----
    WV = jnp.concatenate([alpha[:, h:h + 1] * V_rep for h in range(H)], axis=-1)  # (nn, H*dx)
    wv_sum = mm(SEG, WV)                                                          # (n, H*dx)
    weighted_V = (mm(wv_sum, w_out_ref[0:H * dx, :])
                  + w_out_ref[H * dx:H * dx + 1, :]) * xmask_dx

    # ---- EtoX pooled stats over j, single fused modulation matmul ----
    def pooled_j_stats(A):                       # A: (nn, de), already masked
        SA = mm(SEG, jnp.concatenate([A, A * A], axis=-1))    # (n, 2de): [sum, sum of squares]
        S = SA[:, 0:de]
        Q2 = SA[:, de:2 * de]
        m = S * inv_n
        sd = (Q2 - 2.0 * m * S + (m * m) * nvalid) * inv_n    # == sum(((A-m)*mask_j)^2)/nvalid
        A3 = A.reshape(n, n, de)
        mi = jnp.min(A3 + big_imj3, axis=1)
        ma = jnp.max(A3 - big_imj3, axis=1)
        return jnp.concatenate([m, mi, ma, sd], axis=-1)      # (n, 4de)

    stats = jnp.concatenate([pooled_j_stats(E_new), pooled_j_stats(dist1)], axis=-1)  # (n, 8de)
    mods = mm(stats, w_etox_ref[0:8 * de, :]) + w_etox_ref[8 * de:8 * de + 1, :]      # (n, 2dx)
    weighted_V = weighted_V * (1.0 + mods[:, 0:dx]) * (1.0 + mods[:, dx:2 * dx])

    yx_add = yx_ref[0, 0:1, :]
    yx_mul = yx_ref[0, 1:2, :]
    newX = weighted_V * (yx_mul + 1.0) + yx_add
    xout_ref[0] = (mm(newX, w_xout_ref[0:dx, :]) + w_xout_ref[dx:dx + 1, :]) * xmask_dx

    # ---- pooled stats for the global (y) pathway (tiny final linears stay in the wrapper) ----
    def pooled_all_stats(A):                     # (nn, de), masked by emask
        s = jnp.sum(A, axis=0, keepdims=True)
        m = s * inv_n2
        mi = jnp.min(A + imask_e_de, axis=0, keepdims=True)
        ma = jnp.max(A - imask_e_de, axis=0, keepdims=True)
        sd = jnp.sum(((A - m) * emask_de) ** 2, axis=0, keepdims=True) * inv_n2
        return jnp.concatenate([m, mi, ma, sd], axis=0)       # (4, de)

    imx_dx = 1e5 * (1.0 - xmask_dx)
    mX = jnp.sum(newX, axis=0, keepdims=True) * inv_n
    xstats = jnp.concatenate([
        mX,
        jnp.min(newX + imx_dx, axis=0, keepdims=True),
        jnp.max(newX - imx_dx, axis=0, keepdims=True),
        jnp.sum(((newX - mX) * xmask_dx) ** 2, axis=0, keepdims=True) * inv_n,
    ], axis=0)                                                # (4, dx)
    ystat_ref[0] = jnp.concatenate(
        [xstats, pooled_all_stats(Y), pooled_all_stats(dist1)], axis=-1)   # (4, dx+2de)

    # ---- messages + equivariant velocity update (in-kernel, no lane-width-1 output) ----
    h1 = jnp.maximum(mm(Y, w_epos1_ref[...]), 0.0)            # (nn, de)
    msg = jnp.sum(h1 * w_epos2_ref[...], axis=-1, keepdims=True)   # (nn, 1) lane reduction
    pos_rep = jnp.concatenate([pos] * n, axis=0)              # (nn, 3) per-j
    sb = mm(SEG, jnp.concatenate([msg, msg * pos_rep], axis=-1))   # (n, 4): [sum_j msg, sum_j msg*pos_j]
    vel = (sb[:, 0:1] * pos - sb[:, 1:4]) * xmask             # sum_j msg*(pos_i - pos_j), masked
    mean_v = jnp.sum(vel, axis=0, keepdims=True) * inv_n
    velout_ref[0] = vel - mean_v * xmask                      # remove_mean_with_mask


def node_edge_block_forward(params, X, E, y, pos, node_mask):
    f32 = jnp.float32
    bs, n, dx = X.shape
    de = E.shape[-1]
    H = params['a_w'].shape[-1]
    nn = n * n
    dxp = 3 * dx + 2 * de

    x_mask = node_mask.astype(f32)[..., None]                 # (bs, n, 1)
    pos = pos.astype(f32) * x_mask
    norm_pos = jnp.sqrt(jnp.sum(pos * pos, axis=-1, keepdims=True))
    normalized = pos / (norm_pos + 1e-7)
    diff = pos[:, :, None, :] - pos[:, None, :, :]
    pairwise_dist = jnp.sqrt(jnp.sum(diff * diff, axis=-1))   # (bs, n, n)
    cosines = jnp.sum(normalized[:, :, None, :] * normalized[:, None, :, :], axis=-1)
    np_i = jnp.broadcast_to(norm_pos, (bs, n, n))
    np_j = jnp.broadcast_to(jnp.swapaxes(norm_pos, 1, 2), (bs, n, n))
    geo = jnp.stack([pairwise_dist, cosines, np_i, np_j], axis=-1).reshape(bs, nn, 4)
    emask = (x_mask[:, :, None, :] * x_mask[:, None, :, :]).reshape(bs, nn, 1)

    def lin_np(name, v):
        return v @ params[name + '_w'] + params[name + '_b']

    ye = jnp.stack([lin_np('y_e_add', y), lin_np('y_e_mul', y)], axis=1)   # (bs, 2, de)
    yx = jnp.stack([lin_np('y_x_add', y), lin_np('y_x_mul', y)], axis=1)   # (bs, 2, dx)

    def pack(w, b):
        return jnp.concatenate([w, b[None, :]], axis=0)

    # fused X-side linears: [q | x_e_mul2 | k | v | x_e_mul1]
    w_x5 = pack(
        jnp.concatenate([params['q_w'], params['x_e_mul2_w'], params['k_w'],
                         params['v_w'], params['x_e_mul1_w']], axis=1),
        jnp.concatenate([params['q_b'], params['x_e_mul2_b'], params['k_b'],
                         params['v_b'], params['x_e_mul1_b']], axis=0))
    w_inE = pack(params['in_E_w'], params['in_E_b'])
    w_geo = jnp.concatenate(
        [params['lin_dist1_w'], params['lin_norm_pos1_w'], params['lin_norm_pos2_w'],
         (params['lin_dist1_b'] + params['lin_norm_pos1_b'] + params['lin_norm_pos2_b'])[None, :]],
        axis=0)
    w_dp = pack(
        jnp.concatenate([params['dist_add_e_w'], params['dist_mul_e_w'],
                         params['pos_att_mul_w']], axis=1),
        jnp.concatenate([params['dist_add_e_b'], params['dist_mul_e_b'],
                         params['pos_att_mul_b']], axis=0))
    w_ep = pack(
        jnp.concatenate([params['e_att_mul_w'], params['e_out_w']], axis=1),
        jnp.concatenate([params['e_att_mul_b'], params['e_out_b']], axis=0))
    w_out = pack(params['out_w'], params['out_b'])
    z4 = jnp.zeros((4 * de, dx), f32)
    w_etox = pack(
        jnp.concatenate([jnp.concatenate([params['e_x_mul_w'], z4], axis=1),
                         jnp.concatenate([z4, params['pos_x_mul_w']], axis=1)], axis=0),
        jnp.concatenate([params['e_x_mul_b'], params['pos_x_mul_b']], axis=0))
    w_xout = pack(params['x_out_w'], params['x_out_b'])
    w_a = params['a_w']
    w_epos1 = params['e_pos1_w']
    w_epos2 = params['e_pos2_w'].T                            # (1, de)

    E_flat = E.astype(f32).reshape(bs, nn, de)
    Xf = X.astype(f32)

    def per_batch(s1, s2):
        return pl.BlockSpec((1, s1, s2), lambda b: (b, 0, 0))

    def const2(s1, s2):
        return pl.BlockSpec((s1, s2), lambda b: (0, 0))

    in_specs = [
        per_batch(n, dx), per_batch(nn, de), per_batch(nn, 4), per_batch(nn, 1),
        per_batch(n, 1), per_batch(n, 3), per_batch(2, de), per_batch(2, dx),
        const2(dx + 1, dxp), const2(de + 1, de), const2(5, de),
        const2(de + 1, 2 * de + H), const2(de + 1, H + de),
        const2(dx, H), const2(H * dx + 1, dx), const2(8 * de + 1, 2 * dx),
        const2(dx + 1, dx), const2(de, de), const2(1, de),
    ]
    out_specs = [per_batch(n, dx), per_batch(nn, de), per_batch(n, 3),
                 per_batch(4, dx + 2 * de)]
    out_shape = [
        jax.ShapeDtypeStruct((bs, n, dx), f32),
        jax.ShapeDtypeStruct((bs, nn, de), f32),
        jax.ShapeDtypeStruct((bs, n, 3), f32),
        jax.ShapeDtypeStruct((bs, 4, dx + 2 * de), f32),
    ]

    mm_flops = 2 * bs * (
        n * dx * dxp + nn * 4 * de + nn * de * de + nn * n * (dx + de)
        + nn * de * (2 * de + H) + nn * de * (H + de) + nn * dx * H
        + n * nn * H * dx + n * H * dx * dx + 2 * n * nn * 2 * de
        + n * 8 * de * 2 * dx + n * dx * dx + nn * de * de + n * nn * 4)
    bytes_acc = 4 * (Xf.size + 2 * E_flat.size + geo.size + emask.size + x_mask.size
                     + pos.size + ye.size + yx.size
                     + bs * (n * dx + n * 3 + 4 * (dx + 2 * de)))
    cost = pl.CostEstimate(flops=int(mm_flops),
                           transcendentals=int(bs * nn * H),
                           bytes_accessed=int(bytes_acc))

    outs = pl.pallas_call(
        _node_edge_kernel,
        out_shape=out_shape,
        grid=(bs,),
        in_specs=in_specs,
        out_specs=out_specs,
        compiler_params=pltpu.CompilerParams(
            dimension_semantics=("parallel",),
            vmem_limit_bytes=32 * 1024 * 1024),
        cost_estimate=cost,
    )(Xf, E_flat, geo, emask, x_mask, pos, ye, yx,
      w_x5, w_inE, w_geo, w_dp, w_ep, w_a, w_out, w_etox, w_xout, w_epos1, w_epos2)

    Xout, Eout_flat, vel, ystat = outs
    Eout = Eout_flat.reshape(bs, n, n, de)

    # global-feature (y) pathway: tiny vector linears on in-kernel pooled stats (glue)
    xystat = ystat[:, :, :dx]
    eystat = ystat[:, :, dx:dx + de]
    dystat = ystat[:, :, dx + de:dx + 2 * de]
    x_y = xystat.reshape(bs, 4 * dx) @ params['x_y_w'] + params['x_y_b']
    e_y = eystat.reshape(bs, 4 * de) @ params['e_y_w'] + params['e_y_b']
    dist_y = dystat.reshape(bs, 4 * de) @ params['dist_y_w'] + params['dist_y_b']
    y_lin = y @ params['y_y_w'] + params['y_y_b']
    new_y = y_lin + x_y + e_y + dist_y
    hidden = jnp.maximum(new_y @ params['y_out1_w'] + params['y_out1_b'], 0.0)
    y_out = hidden @ params['y_out2_w'] + params['y_out2_b']

    return Xout, Eout, y_out, vel


def init_params(key, dx, de, dy, n_head):
    specs = {
        'in_E': (de, de, True), 'x_e_mul1': (dx, de, True), 'x_e_mul2': (dx, de, True),
        'lin_dist1': (2, de, True), 'lin_norm_pos1': (1, de, True),
        'lin_norm_pos2': (1, de, True), 'dist_add_e': (de, de, True),
        'dist_mul_e': (de, de, True), 'k': (dx, dx, True), 'q': (dx, dx, True),
        'v': (dx, dx, True), 'a': (dx, n_head, False), 'out': (dx * n_head, dx, True),
        'e_att_mul': (de, n_head, True), 'pos_att_mul': (de, n_head, True),
        'e_x_mul': (4 * de, dx, True), 'pos_x_mul': (4 * de, dx, True),
        'y_e_mul': (dy, de, True), 'y_e_add': (dy, de, True),
        'y_x_mul': (dy, dx, True), 'y_x_add': (dy, dx, True),
        'y_y': (dy, dy, True), 'x_y': (4 * dx, dy, True), 'e_y': (4 * de, dy, True),
        'dist_y': (4 * de, dy, True), 'e_pos1': (de, de, False), 'e_pos2': (de, 1, False),
        'x_out': (dx, dx, True), 'e_out': (de, de, True),
        'y_out1': (dy, dy, True), 'y_out2': (dy, dy, True),
    }
    params = {}
    keys = jax.random.split(key, 2 * len(specs))
    for idx, (name, (din, dout, bias)) in enumerate(specs.items()):
        kw, kb = keys[2 * idx], keys[2 * idx + 1]
        params[name + '_w'] = jax.random.normal(kw, (din, dout), jnp.float32) / math.sqrt(din)
        if bias:
            params[name + '_b'] = 0.01 * jax.random.normal(kb, (dout,), jnp.float32)
    return params


if __name__ == "__main__":
    bs, n = 2, 8
    dx, de, dy, n_head = 32, 16, 16, 4

    key = jax.random.PRNGKey(0)
    kp, kx, ke, ky, kpos = jax.random.split(key, 5)
    params = init_params(kp, dx, de, dy, n_head)

    X = jax.random.normal(kx, (bs, n, dx), jnp.float32)
    E = jax.random.normal(ke, (bs, n, n, de), jnp.float32)
    y = jax.random.normal(ky, (bs, dy), jnp.float32)
    pos = jax.random.normal(kpos, (bs, n, 3), jnp.float32)
    node_mask = jnp.array([[1, 1, 1, 1, 1, 1, 1, 0],
                           [1, 1, 1, 1, 1, 1, 0, 0]], dtype=jnp.float32)

    fwd = jax.jit(node_edge_block_forward)
    Xout, Eout, y_out, vel = fwd(params, X, E, y, pos, node_mask)
    jax.block_until_ready((Xout, Eout, y_out, vel))

    assert Xout.shape == (bs, n, dx)
    assert Eout.shape == (bs, n, n, de)
    assert y_out.shape == (bs, dy)
    assert vel.shape == (bs, n, 3)
    assert bool(jnp.all(jnp.isfinite(Xout)))
    assert bool(jnp.all(jnp.isfinite(Eout)))
    assert bool(jnp.all(jnp.isfinite(y_out)))
    assert bool(jnp.all(jnp.isfinite(vel)))
    print("KERNEL_OK")
</pallas_src>

<mosaic_0001>
module attributes {stable_mosaic.version = 11 : i64} {
  func.func @_node_edge_kernel(%arg0: i32, %arg1: memref<1x8x32xf32, #tpu.memory_space<vmem>>, %arg2: memref<1x64x16xf32, #tpu.memory_space<vmem>>, %arg3: memref<1x64x4xf32, #tpu.memory_space<vmem>>, %arg4: memref<1x64x1xf32, #tpu.memory_space<vmem>>, %arg5: memref<1x8x1xf32, #tpu.memory_space<vmem>>, %arg6: memref<1x8x3xf32, #tpu.memory_space<vmem>>, %arg7: memref<1x2x16xf32, #tpu.memory_space<vmem>>, %arg8: memref<1x2x32xf32, #tpu.memory_space<vmem>>, %arg9: memref<33x128xf32, #tpu.memory_space<vmem>>, %arg10: memref<17x16xf32, #tpu.memory_space<vmem>>, %arg11: memref<5x16xf32, #tpu.memory_space<vmem>>, %arg12: memref<17x36xf32, #tpu.memory_space<vmem>>, %arg13: memref<17x20xf32, #tpu.memory_space<vmem>>, %arg14: memref<32x4xf32, #tpu.memory_space<vmem>>, %arg15: memref<129x32xf32, #tpu.memory_space<vmem>>, %arg16: memref<129x64xf32, #tpu.memory_space<vmem>>, %arg17: memref<33x32xf32, #tpu.memory_space<vmem>>, %arg18: memref<16x16xf32, #tpu.memory_space<vmem>>, %arg19: memref<1x16xf32, #tpu.memory_space<vmem>>, %arg20: memref<1x8x32xf32, #tpu.memory_space<vmem>>, %arg21: memref<1x64x16xf32, #tpu.memory_space<vmem>>, %arg22: memref<1x8x3xf32, #tpu.memory_space<vmem>>, %arg23: memref<1x4x64xf32, #tpu.memory_space<vmem>>) attributes {dimension_semantics = [#tpu.dimension_semantics<parallel>], iteration_bounds = array<i64: 2>, scalar_prefetch = 0 : i64, scratch_operands = 0 : i64, tpu.core_type = #tpu.core_type<tc>, window_params = [{transform_indices = @transform_0, window_bounds = array<i64: 1, 8, 32>}, {transform_indices = @transform_1, window_bounds = array<i64: 1, 64, 16>}, {transform_indices = @transform_2, window_bounds = array<i64: 1, 64, 4>}, {transform_indices = @transform_3, window_bounds = array<i64: 1, 64, 1>}, {transform_indices = @transform_4, window_bounds = array<i64: 1, 8, 1>}, {transform_indices = @transform_5, window_bounds = array<i64: 1, 8, 3>}, {transform_indices = @transform_6, window_bounds = array<i64: 1, 2, 16>}, {transform_indices = @transform_7, window_bounds = array<i64: 1, 2, 32>}, {pipeline_mode = #tpu.pipeline_mode<synchronous>, transform_indices = @transform_8, window_bounds = array<i64: 33, 128>}, {pipeline_mode = #tpu.pipeline_mode<synchronous>, transform_indices = @transform_9, window_bounds = array<i64: 17, 16>}, {pipeline_mode = #tpu.pipeline_mode<synchronous>, transform_indices = @transform_10, window_bounds = array<i64: 5, 16>}, {pipeline_mode = #tpu.pipeline_mode<synchronous>, transform_indices = @transform_11, window_bounds = array<i64: 17, 36>}, {pipeline_mode = #tpu.pipeline_mode<synchronous>, transform_indices = @transform_12, window_bounds = array<i64: 17, 20>}, {pipeline_mode = #tpu.pipeline_mode<synchronous>, transform_indices = @transform_13, window_bounds = array<i64: 32, 4>}, {pipeline_mode = #tpu.pipeline_mode<synchronous>, transform_indices = @transform_14, window_bounds = array<i64: 129, 32>}, {pipeline_mode = #tpu.pipeline_mode<synchronous>, transform_indices = @transform_15, window_bounds = array<i64: 129, 64>}, {pipeline_mode = #tpu.pipeline_mode<synchronous>, transform_indices = @transform_16, window_bounds = array<i64: 33, 32>}, {pipeline_mode = #tpu.pipeline_mode<synchronous>, transform_indices = @transform_17, window_bounds = array<i64: 16, 16>}, {pipeline_mode = #tpu.pipeline_mode<synchronous>, transform_indices = @transform_18, window_bounds = array<i64: 1, 16>}, {transform_indices = @transform_19, window_bounds = array<i64: 1, 8, 32>}, {transform_indices = @transform_20, window_bounds = array<i64: 1, 64, 16>}, {transform_indices = @transform_21, window_bounds = array<i64: 1, 8, 3>}, {transform_indices = @transform_22, window_bounds = array<i64: 1, 4, 64>}]} {
    %c0 = arith.constant 0 : index
    %c0_0 = arith.constant 0 : index
    %c0_1 = arith.constant 0 : index
    %0 = vector.load %arg1[%c0, %c0_0, %c0_1] : memref<1x8x32xf32, #tpu.memory_space<vmem>>, vector<1x8x32xf32>
    %1 = vector.shape_cast %0 : vector<1x8x32xf32> to vector<8x32xf32>
    %c0_2 = arith.constant 0 : index
    %c0_3 = arith.constant 0 : index
    %c0_4 = arith.constant 0 : index
    %2 = vector.load %arg2[%c0_2, %c0_3, %c0_4] : memref<1x64x16xf32, #tpu.memory_space<vmem>>, vector<1x64x16xf32>
    %3 = vector.shape_cast %2 : vector<1x64x16xf32> to vector<64x16xf32>
    %c0_5 = arith.constant 0 : index
    %c0_6 = arith.constant 0 : index
    %c0_7 = arith.constant 0 : index
    %4 = vector.load %arg3[%c0_5, %c0_6, %c0_7] : memref<1x64x4xf32, #tpu.memory_space<vmem>>, vector<1x64x4xf32>
    %5 = vector.shape_cast %4 : vector<1x64x4xf32> to vector<64x4xf32>
    %c0_8 = arith.constant 0 : index
    %c0_9 = arith.constant 0 : index
    %c0_10 = arith.constant 0 : index
    %6 = vector.load %arg4[%c0_8, %c0_9, %c0_10] : memref<1x64x1xf32, #tpu.memory_space<vmem>>, vector<1x64x1xf32>
    %7 = vector.shape_cast %6 : vector<1x64x1xf32> to vector<64x1xf32>
    %c0_11 = arith.constant 0 : index
    %c0_12 = arith.constant 0 : index
    %c0_13 = arith.constant 0 : index
    %8 = vector.load %arg5[%c0_11, %c0_12, %c0_13] : memref<1x8x1xf32, #tpu.memory_space<vmem>>, vector<1x8x1xf32>
    %9 = vector.shape_cast %8 : vector<1x8x1xf32> to vector<8x1xf32>
    %c0_14 = arith.constant 0 : index
    %c0_15 = arith.constant 0 : index
    %c0_16 = arith.constant 0 : index
    %10 = vector.load %arg6[%c0_14, %c0_15, %c0_16] : memref<1x8x3xf32, #tpu.memory_space<vmem>>, vector<1x8x3xf32>
    %11 = vector.shape_cast %10 : vector<1x8x3xf32> to vector<8x3xf32>
    %12 = vector.shape_cast %7 : vector<64x1xf32> to vector<64x1xf32>
    %13 = vector.broadcast %12 : vector<64x1xf32> to vector<64x16xf32>
    %14 = vector.shape_cast %7 : vector<64x1xf32> to vector<64x1xf32>
    %15 = vector.broadcast %14 : vector<64x1xf32> to vector<64x4xf32>
    %16 = vector.shape_cast %9 : vector<8x1xf32> to vector<8x1xf32>
    %17 = vector.broadcast %16 : vector<8x1xf32> to vector<8x32xf32>
    %18 = vector.shape_cast %9 : vector<8x1xf32> to vector<8x1xf32>
    %19 = vector.broadcast %18 : vector<8x1xf32> to vector<8x128xf32>
    %cst = arith.constant 1.000000e+00 : f32
    %20 = vector.broadcast %cst : f32 to vector<64x16xf32>
    %21 = arith.subf %20, %13 : vector<64x16xf32>
    %cst_17 = arith.constant 1.000000e+05 : f32
    %22 = vector.broadcast %cst_17 : f32 to vector<64x16xf32>
    %23 = arith.mulf %22, %21 : vector<64x16xf32>
    %cst_18 = arith.constant 1.000000e+00 : f32
    %24 = vector.broadcast %cst_18 : f32 to vector<8x1xf32>
    %25 = arith.subf %24, %9 : vector<8x1xf32>
    %cst_19 = arith.constant 1.000000e+05 : f32
    %26 = vector.broadcast %cst_19 : f32 to vector<8x1xf32>
    %27 = arith.mulf %26, %25 : vector<8x1xf32>
    %28 = vector.shape_cast %27 : vector<8x1xf32> to vector<1x8x1xf32>
    %29 = vector.shape_cast %9 : vector<8x1xf32> to vector<1x8x1xf32>
    %cst_20 = arith.constant dense<0.000000e+00> : vector<1xf32>
    %30 = vector.multi_reduction <add>, %9, %cst_20 [0] : vector<8x1xf32> to vector<1xf32>
    %31 = vector.shape_cast %30 : vector<1xf32> to vector<1x1xf32>
    %32 = tpu.reciprocal %31 {approx = true} : vector<1x1xf32> -> vector<1x1xf32>
    %33 = arith.mulf %32, %32 : vector<1x1xf32>
    %34 = tpu.iota {dimensions = array<i32: 0>} : vector<64x8xi32>
    %35 = tpu.iota {dimensions = array<i32: 1>} : vector<64x8xi32>
    %c8_i32 = arith.constant 8 : i32
    %36 = vector.broadcast %c8_i32 : i32 to vector<64x8xi32>
    %37 = arith.muli %35, %36 : vector<64x8xi32>
    %38 = arith.cmpi sge, %34, %37 : vector<64x8xi32>
    %c1_i32 = arith.constant 1 : i32
    %39 = vector.broadcast %c1_i32 : i32 to vector<64x8xi32>
    %40 = arith.addi %35, %39 : vector<64x8xi32>
    %c8_i32_21 = arith.constant 8 : i32
    %41 = vector.broadcast %c8_i32_21 : i32 to vector<64x8xi32>
    %42 = arith.muli %40, %41 : vector<64x8xi32>
    %43 = arith.cmpi slt, %34, %42 : vector<64x8xi32>
    %44 = arith.andi %38, %43 : vector<64x8xi1>
    %cst_22 = arith.constant 1.000000e+00 : f32
    %cst_23 = arith.constant 0.000000e+00 : f32
    %45 = vector.broadcast %cst_22 : f32 to vector<64x8xf32>
    %46 = vector.broadcast %cst_23 : f32 to vector<64x8xf32>
    %47 = arith.select %44, %45, %46 : vector<64x8xi1>, vector<64x8xf32>
    %48 = tpu.iota {dimensions = array<i32: 1>} : vector<8x64xi32>
    %49 = tpu.iota {dimensions = array<i32: 0>} : vector<8x64xi32>
    %c8_i32_24 = arith.constant 8 : i32
    %50 = vector.broadcast %c8_i32_24 : i32 to vector<8x64xi32>
    %51 = arith.muli %49, %50 : vector<8x64xi32>
    %52 = arith.cmpi sge, %48, %51 : vector<8x64xi32>
    %c1_i32_25 = arith.constant 1 : i32
    %53 = vector.broadcast %c1_i32_25 : i32 to vector<8x64xi32>
    %54 = arith.addi %49, %53 : vector<8x64xi32>
    %c8_i32_26 = arith.constant 8 : i32
    %55 = vector.broadcast %c8_i32_26 : i32 to vector<8x64xi32>
    %56 = arith.muli %54, %55 : vector<8x64xi32>
    %57 = arith.cmpi slt, %48, %56 : vector<8x64xi32>
    %58 = arith.andi %52, %57 : vector<8x64xi1>
    %cst_27 = arith.constant 1.000000e+00 : f32
    %cst_28 = arith.constant 0.000000e+00 : f32
    %59 = vector.broadcast %cst_27 : f32 to vector<8x64xf32>
    %60 = vector.broadcast %cst_28 : f32 to vector<8x64xf32>
    %61 = arith.select %58, %59, %60 : vector<8x64xi1>, vector<8x64xf32>
    %c0_29 = arith.constant 0 : index
    %c0_30 = arith.constant 0 : index
    %62 = vector.load %arg11[%c0_29, %c0_30] : memref<5x16xf32, #tpu.memory_space<vmem>>, vector<4x16xf32>
    %cst_31 = arith.constant dense<0.000000e+00> : vector<64x16xf32>
    %63 = tpu.matmul %5, %62, %cst_31 {dimension_numbers = #tpu.dot_dimension_numbers<[1], [0], [0], [1], [0, 0, 1, 1], [], []>} : vector<64x4xf32>, vector<4x16xf32>, vector<64x16xf32> -> vector<64x16xf32>
    %c4 = arith.constant 4 : index
    %c0_32 = arith.constant 0 : index
    %64 = vector.load %arg11[%c4, %c0_32] : memref<5x16xf32, #tpu.memory_space<vmem>>, vector<1x16xf32>
    %65 = vector.broadcast %64 : vector<1x16xf32> to vector<64x16xf32>
    %66 = arith.addf %63, %65 : vector<64x16xf32>
    %cst_33 = arith.constant 0.000000e+00 : f32
    %67 = vector.broadcast %cst_33 : f32 to vector<64x16xf32>
    %68 = arith.maximumf %66, %67 : vector<64x16xf32>
    %69 = arith.mulf %68, %13 : vector<64x16xf32>
    %c0_34 = arith.constant 0 : index
    %c0_35 = arith.constant 0 : index
    %70 = vector.load %arg9[%c0_34, %c0_35] : memref<33x128xf32, #tpu.memory_space<vmem>>, vector<32x128xf32>
    %cst_36 = arith.constant dense<0.000000e+00> : vector<8x128xf32>
    %71 = tpu.matmul %1, %70, %cst_36 {dimension_numbers = #tpu.dot_dimension_numbers<[1], [0], [0], [1], [0, 0, 1, 1], [], []>} : vector<8x32xf32>, vector<32x128xf32>, vector<8x128xf32> -> vector<8x128xf32>
    %c32 = arith.constant 32 : index
    %c0_37 = arith.constant 0 : index
    %72 = vector.load %arg9[%c32, %c0_37] : memref<33x128xf32, #tpu.memory_space<vmem>>, vector<1x128xf32>
    %73 = vector.broadcast %72 : vector<1x128xf32> to vector<8x128xf32>
    %74 = arith.addf %71, %73 : vector<8x128xf32>
    %75 = arith.mulf %74, %19 : vector<8x128xf32>
    %76 = vector.extract_strided_slice %75 {offsets = [0, 0], sizes = [8, 48], strides = [1, 1]} : vector<8x128xf32> to vector<8x48xf32>
    %cst_38 = arith.constant dense<0.000000e+00> : vector<64x48xf32>
    %77 = tpu.matmul %47, %76, %cst_38 {dimension_numbers = #tpu.dot_dimension_numbers<[1], [0], [0], [1], [0, 0, 1, 1], [], []>} : vector<64x8xf32>, vector<8x48xf32>, vector<64x48xf32> -> vector<64x48xf32>
    %78 = vector.extract_strided_slice %77 {offsets = [0, 0], sizes = [64, 32], strides = [1, 1]} : vector<64x48xf32> to vector<64x32xf32>
    %79 = vector.extract_strided_slice %77 {offsets = [0, 32], sizes = [64, 16], strides = [1, 1]} : vector<64x48xf32> to vector<64x16xf32>
    %80 = vector.extract_strided_slice %75 {offsets = [0, 48], sizes = [8, 80], strides = [1, 1]} : vector<8x128xf32> to vector<8x80xf32>
    %81 = tpu.concatenate %80, %80, %80, %80, %80, %80, %80, %80 in 0 : vector<8x80xf32>, vector<8x80xf32>, vector<8x80xf32>, vector<8x80xf32>, vector<8x80xf32>, vector<8x80xf32>, vector<8x80xf32>, vector<8x80xf32> -> vector<64x80xf32>
    %82 = vector.extract_strided_slice %81 {offsets = [0, 0], sizes = [64, 32], strides = [1, 1]} : vector<64x80xf32> to vector<64x32xf32>
    %83 = vector.extract_strided_slice %81 {offsets = [0, 32], sizes = [64, 32], strides = [1, 1]} : vector<64x80xf32> to vector<64x32xf32>
    %84 = vector.extract_strided_slice %81 {offsets = [0, 64], sizes = [64, 16], strides = [1, 1]} : vector<64x80xf32> to vector<64x16xf32>
    %c0_39 = arith.constant 0 : index
    %c0_40 = arith.constant 0 : index
    %85 = vector.load %arg10[%c0_39, %c0_40] : memref<17x16xf32, #tpu.memory_space<vmem>>, vector<16x16xf32>
    %cst_41 = arith.constant dense<0.000000e+00> : vector<64x16xf32>
    %86 = tpu.matmul %3, %85, %cst_41 {dimension_numbers = #tpu.dot_dimension_numbers<[1], [0], [0], [1], [0, 0, 1, 1], [], []>} : vector<64x16xf32>, vector<16x16xf32>, vector<64x16xf32> -> vector<64x16xf32>
    %c16 = arith.constant 16 : index
    %c0_42 = arith.constant 0 : index
    %87 = vector.load %arg10[%c16, %c0_42] : memref<17x16xf32, #tpu.memory_space<vmem>>, vector<1x16xf32>
    %88 = vector.broadcast %87 : vector<1x16xf32> to vector<64x16xf32>
    %89 = arith.addf %86, %88 : vector<64x16xf32>
    %90 = arith.mulf %89, %84 : vector<64x16xf32>
    %91 = arith.mulf %90, %79 : vector<64x16xf32>
    %92 = arith.mulf %91, %13 : vector<64x16xf32>
    %c0_43 = arith.constant 0 : index
    %c0_44 = arith.constant 0 : index
    %93 = vector.load %arg12[%c0_43, %c0_44] : memref<17x36xf32, #tpu.memory_space<vmem>>, vector<16x36xf32>
    %cst_45 = arith.constant dense<0.000000e+00> : vector<64x36xf32>
    %94 = tpu.matmul %69, %93, %cst_45 {dimension_numbers = #tpu.dot_dimension_numbers<[1], [0], [0], [1], [0, 0, 1, 1], [], []>} : vector<64x16xf32>, vector<16x36xf32>, vector<64x36xf32> -> vector<64x36xf32>
    %c16_46 = arith.constant 16 : index
    %c0_47 = arith.constant 0 : index
    %95 = vector.load %arg12[%c16_46, %c0_47] : memref<17x36xf32, #tpu.memory_space<vmem>>, vector<1x36xf32>
    %96 = vector.broadcast %95 : vector<1x36xf32> to vector<64x36xf32>
    %97 = arith.addf %94, %96 : vector<64x36xf32>
    %98 = vector.extract_strided_slice %97 {offsets = [0, 0], sizes = [64, 16], strides = [1, 1]} : vector<64x36xf32> to vector<64x16xf32>
    %99 = vector.extract_strided_slice %97 {offsets = [0, 16], sizes = [64, 16], strides = [1, 1]} : vector<64x36xf32> to vector<64x16xf32>
    %100 = vector.extract_strided_slice %97 {offsets = [0, 32], sizes = [64, 4], strides = [1, 1]} : vector<64x36xf32> to vector<64x4xf32>
    %101 = arith.addf %92, %98 : vector<64x16xf32>
    %102 = arith.mulf %92, %99 : vector<64x16xf32>
    %103 = arith.addf %101, %102 : vector<64x16xf32>
    %104 = arith.mulf %103, %13 : vector<64x16xf32>
    %c0_48 = arith.constant 0 : index
    %c0_49 = arith.constant 0 : index
    %c0_50 = arith.constant 0 : index
    %105 = vector.load %arg7[%c0_48, %c0_49, %c0_50] : memref<1x2x16xf32, #tpu.memory_space<vmem>>, vector<1x1x16xf32>
    %106 = vector.shape_cast %105 : vector<1x1x16xf32> to vector<1x16xf32>
    %c0_51 = arith.constant 0 : index
    %c1 = arith.constant 1 : index
    %c0_52 = arith.constant 0 : index
    %107 = vector.load %arg7[%c0_51, %c1, %c0_52] : memref<1x2x16xf32, #tpu.memory_space<vmem>>, vector<1x1x16xf32>
    %108 = vector.shape_cast %107 : vector<1x1x16xf32> to vector<1x16xf32>
    %109 = vector.broadcast %106 : vector<1x16xf32> to vector<64x16xf32>
    %110 = arith.addf %104, %109 : vector<64x16xf32>
    %111 = vector.broadcast %108 : vector<1x16xf32> to vector<64x16xf32>
    %112 = arith.mulf %104, %111 : vector<64x16xf32>
    %113 = arith.addf %110, %112 : vector<64x16xf32>
    %114 = arith.mulf %113, %13 : vector<64x16xf32>
    %c0_53 = arith.constant 0 : index
    %c0_54 = arith.constant 0 : index
    %115 = vector.load %arg13[%c0_53, %c0_54] : memref<17x20xf32, #tpu.memory_space<vmem>>, vector<16x20xf32>
    %cst_55 = arith.constant dense<0.000000e+00> : vector<64x20xf32>
    %116 = tpu.matmul %114, %115, %cst_55 {dimension_numbers = #tpu.dot_dimension_numbers<[1], [0], [0], [1], [0, 0, 1, 1], [], []>} : vector<64x16xf32>, vector<16x20xf32>, vector<64x20xf32> -> vector<64x20xf32>
    %c16_56 = arith.constant 16 : index
    %c0_57 = arith.constant 0 : index
    %117 = vector.load %arg13[%c16_56, %c0_57] : memref<17x20xf32, #tpu.memory_space<vmem>>, vector<1x20xf32>
    %118 = vector.broadcast %117 : vector<1x20xf32> to vector<64x20xf32>
    %119 = arith.addf %116, %118 : vector<64x20xf32>
    %120 = vector.extract_strided_slice %119 {offsets = [0, 0], sizes = [64, 4], strides = [1, 1]} : vector<64x20xf32> to vector<64x4xf32>
    %121 = vector.extract_strided_slice %119 {offsets = [0, 4], sizes = [64, 16], strides = [1, 1]} : vector<64x20xf32> to vector<64x16xf32>
    %122 = arith.mulf %121, %13 : vector<64x16xf32>
    %c0_58 = arith.constant 0 : index
    %c0_59 = arith.constant 0 : index
    %c0_60 = arith.constant 0 : index
    %123 = vector.load %arg21[%c0_58, %c0_59, %c0_60] : memref<1x64x16xf32, #tpu.memory_space<vmem>>, vector<1x64x16xf32>
    %124 = vector.shape_cast %123 : vector<1x64x16xf32> to vector<64x16xf32>
    %125 = vector.shape_cast %122 : vector<64x16xf32> to vector<1x64x16xf32>
    tpu.vector_store %arg21[%c0_58, %c0_59, %c0_60], %125 {strides = array<i32>} : memref<1x64x16xf32, #tpu.memory_space<vmem>>, vector<1x64x16xf32>,
    %126 = arith.mulf %78, %82 : vector<64x32xf32>
    %cst_61 = arith.constant 2.500000e-01 : f32
    %127 = vector.broadcast %cst_61 : f32 to vector<64x32xf32>
    %128 = arith.mulf %126, %127 : vector<64x32xf32>
    %c0_62 = arith.constant 0 : index
    %c0_63 = arith.constant 0 : index
    %129 = vector.load %arg14[%c0_62, %c0_63] : memref<32x4xf32, #tpu.memory_space<vmem>>, vector<32x4xf32>
    %cst_64 = arith.constant dense<0.000000e+00> : vector<64x4xf32>
    %130 = tpu.matmul %128, %129, %cst_64 {dimension_numbers = #tpu.dot_dimension_numbers<[1], [0], [0], [1], [0, 0, 1, 1], [], []>} : vector<64x32xf32>, vector<32x4xf32>, vector<64x4xf32> -> vector<64x4xf32>
    %131 = arith.mulf %130, %15 : vector<64x4xf32>
    %132 = arith.mulf %120, %131 : vector<64x4xf32>
    %133 = arith.addf %131, %132 : vector<64x4xf32>
    %134 = arith.mulf %100, %133 : vector<64x4xf32>
    %135 = arith.addf %133, %134 : vector<64x4xf32>
    %136 = arith.mulf %135, %15 : vector<64x4xf32>
    %137 = vector.shape_cast %136 : vector<64x4xf32> to vector<8x8x4xf32>
    %cst_65 = arith.constant 0.000000e+00 : f32
    %138 = vector.broadcast %cst_65 : f32 to vector<1x8x1xf32>
    %139 = arith.cmpf ogt, %29, %138 : vector<1x8x1xf32>
    %cst_66 = arith.constant -1.000000e+30 : f32
    %140 = vector.shape_cast %139 : vector<1x8x1xi1> to vector<1x8x1xi1>
    %141 = vector.broadcast %140 : vector<1x8x1xi1> to vector<8x8x4xi1>
    %142 = vector.broadcast %cst_66 : f32 to vector<8x8x4xf32>
    %143 = arith.select %141, %137, %142 : vector<8x8x4xi1>, vector<8x8x4xf32>
    %cst_67 = arith.constant dense<0xFF800000> : vector<8x4xf32>
    %144 = vector.multi_reduction <maximumf>, %143, %cst_67 [1] : vector<8x8x4xf32> to vector<8x4xf32>
    %145 = vector.shape_cast %144 : vector<8x4xf32> to vector<8x1x4xf32>
    %146 = vector.broadcast %145 : vector<8x1x4xf32> to vector<8x8x4xf32>
    %147 = arith.subf %143, %146 : vector<8x8x4xf32>
    %148 = math.exp %147 : vector<8x8x4xf32>
    %cst_68 = arith.constant dense<0.000000e+00> : vector<8x4xf32>
    %149 = vector.multi_reduction <add>, %148, %cst_68 [1] : vector<8x8x4xf32> to vector<8x4xf32>
    %150 = vector.shape_cast %149 : vector<8x4xf32> to vector<8x1x4xf32>
    %151 = tpu.reciprocal %150 {approx = true} : vector<8x1x4xf32> -> vector<8x1x4xf32>
    %152 = vector.broadcast %151 : vector<8x1x4xf32> to vector<8x8x4xf32>
    %153 = arith.mulf %148, %152 : vector<8x8x4xf32>
    %154 = vector.shape_cast %153 : vector<8x8x4xf32> to vector<64x4xf32>
    %155 = vector.extract_strided_slice %154 {offsets = [0, 0], sizes = [64, 1], strides = [1, 1]} : vector<64x4xf32> to vector<64x1xf32>
    %156 = vector.broadcast %155 : vector<64x1xf32> to vector<64x32xf32>
    %157 = arith.mulf %156, %83 : vector<64x32xf32>
    %158 = vector.extract_strided_slice %154 {offsets = [0, 1], sizes = [64, 1], strides = [1, 1]} : vector<64x4xf32> to vector<64x1xf32>
    %159 = vector.broadcast %158 : vector<64x1xf32> to vector<64x32xf32>
    %160 = arith.mulf %159, %83 : vector<64x32xf32>
    %161 = vector.extract_strided_slice %154 {offsets = [0, 2], sizes = [64, 1], strides = [1, 1]} : vector<64x4xf32> to vector<64x1xf32>
    %162 = vector.broadcast %161 : vector<64x1xf32> to vector<64x32xf32>
    %163 = arith.mulf %162, %83 : vector<64x32xf32>
    %164 = vector.extract_strided_slice %154 {offsets = [0, 3], sizes = [64, 1], strides = [1, 1]} : vector<64x4xf32> to vector<64x1xf32>
    %165 = vector.broadcast %164 : vector<64x1xf32> to vector<64x32xf32>
    %166 = arith.mulf %165, %83 : vector<64x32xf32>
    %167 = tpu.concatenate %157, %160, %163, %166 in 1 : vector<64x32xf32>, vector<64x32xf32>, vector<64x32xf32>, vector<64x32xf32> -> vector<64x128xf32>
    %cst_69 = arith.constant dense<0.000000e+00> : vector<8x128xf32>
    %168 = tpu.matmul %61, %167, %cst_69 {dimension_numbers = #tpu.dot_dimension_numbers<[1], [0], [0], [1], [0, 0, 1, 1], [], []>} : vector<8x64xf32>, vector<64x128xf32>, vector<8x128xf32> -> vector<8x128xf32>
    %c0_70 = arith.constant 0 : index
    %c0_71 = arith.constant 0 : index
    %169 = vector.load %arg15[%c0_70, %c0_71] : memref<129x32xf32, #tpu.memory_space<vmem>>, vector<128x32xf32>
    %cst_72 = arith.constant dense<0.000000e+00> : vector<8x32xf32>
    %170 = tpu.matmul %168, %169, %cst_72 {dimension_numbers = #tpu.dot_dimension_numbers<[1], [0], [0], [1], [0, 0, 1, 1], [], []>} : vector<8x128xf32>, vector<128x32xf32>, vector<8x32xf32> -> vector<8x32xf32>
    %c128 = arith.constant 128 : index
    %c0_73 = arith.constant 0 : index
    %171 = vector.load %arg15[%c128, %c0_73] : memref<129x32xf32, #tpu.memory_space<vmem>>, vector<1x32xf32>
    %172 = vector.broadcast %171 : vector<1x32xf32> to vector<8x32xf32>
    %173 = arith.addf %170, %172 : vector<8x32xf32>
    %174 = arith.mulf %173, %17 : vector<8x32xf32>
    %175 = arith.mulf %114, %114 : vector<64x16xf32>
    %176 = tpu.concatenate %114, %175 in 1 : vector<64x16xf32>, vector<64x16xf32> -> vector<64x32xf32>
    %cst_74 = arith.constant dense<0.000000e+00> : vector<8x32xf32>
    %177 = tpu.matmul %61, %176, %cst_74 {dimension_numbers = #tpu.dot_dimension_numbers<[1], [0], [0], [1], [0, 0, 1, 1], [], []>} : vector<8x64xf32>, vector<64x32xf32>, vector<8x32xf32> -> vector<8x32xf32>
    %178 = vector.extract_strided_slice %177 {offsets = [0, 0], sizes = [8, 16], strides = [1, 1]} : vector<8x32xf32> to vector<8x16xf32>
    %179 = vector.extract_strided_slice %177 {offsets = [0, 16], sizes = [8, 16], strides = [1, 1]} : vector<8x32xf32> to vector<8x16xf32>
    %180 = vector.broadcast %32 : vector<1x1xf32> to vector<8x16xf32>
    %181 = arith.mulf %178, %180 : vector<8x16xf32>
    %cst_75 = arith.constant 2.000000e+00 : f32
    %182 = vector.broadcast %cst_75 : f32 to vector<8x16xf32>
    %183 = arith.mulf %182, %181 : vector<8x16xf32>
    %184 = arith.mulf %183, %178 : vector<8x16xf32>
    %185 = arith.subf %179, %184 : vector<8x16xf32>
    %186 = arith.mulf %181, %181 : vector<8x16xf32>
    %187 = vector.broadcast %31 : vector<1x1xf32> to vector<8x16xf32>
    %188 = arith.mulf %186, %187 : vector<8x16xf32>
    %189 = arith.addf %185, %188 : vector<8x16xf32>
    %190 = vector.broadcast %32 : vector<1x1xf32> to vector<8x16xf32>
    %191 = arith.mulf %189, %190 : vector<8x16xf32>
    %192 = vector.shape_cast %114 : vector<64x16xf32> to vector<8x8x16xf32>
    %193 = vector.broadcast %28 : vector<1x8x1xf32> to vector<8x8x16xf32>
    %194 = arith.addf %192, %193 : vector<8x8x16xf32>
    %cst_76 = arith.constant dense<0x7F800000> : vector<8x16xf32>
    %195 = vector.multi_reduction <minimumf>, %194, %cst_76 [1] : vector<8x8x16xf32> to vector<8x16xf32>
    %196 = vector.broadcast %28 : vector<1x8x1xf32> to vector<8x8x16xf32>
    %197 = arith.subf %192, %196 : vector<8x8x16xf32>
    %cst_77 = arith.constant dense<0xFF800000> : vector<8x16xf32>
    %198 = vector.multi_reduction <maximumf>, %197, %cst_77 [1] : vector<8x8x16xf32> to vector<8x16xf32>
    %199 = tpu.concatenate %181, %195, %198, %191 in 1 : vector<8x16xf32>, vector<8x16xf32>, vector<8x16xf32>, vector<8x16xf32> -> vector<8x64xf32>
    %200 = arith.mulf %69, %69 : vector<64x16xf32>
    %201 = tpu.concatenate %69, %200 in 1 : vector<64x16xf32>, vector<64x16xf32> -> vector<64x32xf32>
    %cst_78 = arith.constant dense<0.000000e+00> : vector<8x32xf32>
    %202 = tpu.matmul %61, %201, %cst_78 {dimension_numbers = #tpu.dot_dimension_numbers<[1], [0], [0], [1], [0, 0, 1, 1], [], []>} : vector<8x64xf32>, vector<64x32xf32>, vector<8x32xf32> -> vector<8x32xf32>
    %203 = vector.extract_strided_slice %202 {offsets = [0, 0], sizes = [8, 16], strides = [1, 1]} : vector<8x32xf32> to vector<8x16xf32>
    %204 = vector.extract_strided_slice %202 {offsets = [0, 16], sizes = [8, 16], strides = [1, 1]} : vector<8x32xf32> to vector<8x16xf32>
    %205 = vector.broadcast %32 : vector<1x1xf32> to vector<8x16xf32>
    %206 = arith.mulf %203, %205 : vector<8x16xf32>
    %cst_79 = arith.constant 2.000000e+00 : f32
    %207 = vector.broadcast %cst_79 : f32 to vector<8x16xf32>
    %208 = arith.mulf %207, %206 : vector<8x16xf32>
    %209 = arith.mulf %208, %203 : vector<8x16xf32>
    %210 = arith.subf %204, %209 : vector<8x16xf32>
    %211 = arith.mulf %206, %206 : vector<8x16xf32>
    %212 = vector.broadcast %31 : vector<1x1xf32> to vector<8x16xf32>
    %213 = arith.mulf %211, %212 : vector<8x16xf32>
    %214 = arith.addf %210, %213 : vector<8x16xf32>
    %215 = vector.broadcast %32 : vector<1x1xf32> to vector<8x16xf32>
    %216 = arith.mulf %214, %215 : vector<8x16xf32>
    %217 = vector.shape_cast %69 : vector<64x16xf32> to vector<8x8x16xf32>
    %218 = vector.broadcast %28 : vector<1x8x1xf32> to vector<8x8x16xf32>
    %219 = arith.addf %217, %218 : vector<8x8x16xf32>
    %cst_80 = arith.constant dense<0x7F800000> : vector<8x16xf32>
    %220 = vector.multi_reduction <minimumf>, %219, %cst_80 [1] : vector<8x8x16xf32> to vector<8x16xf32>
    %221 = vector.broadcast %28 : vector<1x8x1xf32> to vector<8x8x16xf32>
    %222 = arith.subf %217, %221 : vector<8x8x16xf32>
    %cst_81 = arith.constant dense<0xFF800000> : vector<8x16xf32>
    %223 = vector.multi_reduction <maximumf>, %222, %cst_81 [1] : vector<8x8x16xf32> to vector<8x16xf32>
    %224 = tpu.concatenate %206, %220, %223, %216 in 1 : vector<8x16xf32>, vector<8x16xf32>, vector<8x16xf32>, vector<8x16xf32> -> vector<8x64xf32>
    %225 = tpu.concatenate %199, %224 in 1 : vector<8x64xf32>, vector<8x64xf32> -> vector<8x128xf32>
    %c0_82 = arith.constant 0 : index
    %c0_83 = arith.constant 0 : index
    %226 = vector.load %arg16[%c0_82, %c0_83] : memref<129x64xf32, #tpu.memory_space<vmem>>, vector<128x64xf32>
    %cst_84 = arith.constant dense<0.000000e+00> : vector<8x64xf32>
    %227 = tpu.matmul %225, %226, %cst_84 {dimension_numbers = #tpu.dot_dimension_numbers<[1], [0], [0], [1], [0, 0, 1, 1], [], []>} : vector<8x128xf32>, vector<128x64xf32>, vector<8x64xf32> -> vector<8x64xf32>
    %c128_85 = arith.constant 128 : index
    %c0_86 = arith.constant 0 : index
    %228 = vector.load %arg16[%c128_85, %c0_86] : memref<129x64xf32, #tpu.memory_space<vmem>>, vector<1x64xf32>
    %229 = vector.broadcast %228 : vector<1x64xf32> to vector<8x64xf32>
    %230 = arith.addf %227, %229 : vector<8x64xf32>
    %231 = vector.extract_strided_slice %230 {offsets = [0, 0], sizes = [8, 32], strides = [1, 1]} : vector<8x64xf32> to vector<8x32xf32>
    %cst_87 = arith.constant 1.000000e+00 : f32
    %232 = vector.broadcast %cst_87 : f32 to vector<8x32xf32>
    %233 = arith.addf %232, %231 : vector<8x32xf32>
    %234 = arith.mulf %174, %233 : vector<8x32xf32>
    %235 = vector.extract_strided_slice %230 {offsets = [0, 32], sizes = [8, 32], strides = [1, 1]} : vector<8x64xf32> to vector<8x32xf32>
    %cst_88 = arith.constant 1.000000e+00 : f32
    %236 = vector.broadcast %cst_88 : f32 to vector<8x32xf32>
    %237 = arith.addf %236, %235 : vector<8x32xf32>
    %238 = arith.mulf %234, %237 : vector<8x32xf32>
    %c0_89 = arith.constant 0 : index
    %c0_90 = arith.constant 0 : index
    %c0_91 = arith.constant 0 : index
    %239 = vector.load %arg8[%c0_89, %c0_90, %c0_91] : memref<1x2x32xf32, #tpu.memory_space<vmem>>, vector<1x1x32xf32>
    %240 = vector.shape_cast %239 : vector<1x1x32xf32> to vector<1x32xf32>
    %c0_92 = arith.constant 0 : index
    %c1_93 = arith.constant 1 : index
    %c0_94 = arith.constant 0 : index
    %241 = vector.load %arg8[%c0_92, %c1_93, %c0_94] : memref<1x2x32xf32, #tpu.memory_space<vmem>>, vector<1x1x32xf32>
    %242 = vector.shape_cast %241 : vector<1x1x32xf32> to vector<1x32xf32>
    %cst_95 = arith.constant 1.000000e+00 : f32
    %243 = vector.broadcast %cst_95 : f32 to vector<1x32xf32>
    %244 = arith.addf %242, %243 : vector<1x32xf32>
    %245 = vector.broadcast %244 : vector<1x32xf32> to vector<8x32xf32>
    %246 = arith.mulf %238, %245 : vector<8x32xf32>
    %247 = vector.broadcast %240 : vector<1x32xf32> to vector<8x32xf32>
    %248 = arith.addf %246, %247 : vector<8x32xf32>
    %c0_96 = arith.constant 0 : index
    %c0_97 = arith.constant 0 : index
    %249 = vector.load %arg17[%c0_96, %c0_97] : memref<33x32xf32, #tpu.memory_space<vmem>>, vector<32x32xf32>
    %cst_98 = arith.constant dense<0.000000e+00> : vector<8x32xf32>
    %250 = tpu.matmul %248, %249, %cst_98 {dimension_numbers = #tpu.dot_dimension_numbers<[1], [0], [0], [1], [0, 0, 1, 1], [], []>} : vector<8x32xf32>, vector<32x32xf32>, vector<8x32xf32> -> vector<8x32xf32>
    %c32_99 = arith.constant 32 : index
    %c0_100 = arith.constant 0 : index
    %251 = vector.load %arg17[%c32_99, %c0_100] : memref<33x32xf32, #tpu.memory_space<vmem>>, vector<1x32xf32>
    %252 = vector.broadcast %251 : vector<1x32xf32> to vector<8x32xf32>
    %253 = arith.addf %250, %252 : vector<8x32xf32>
    %254 = arith.mulf %253, %17 : vector<8x32xf32>
    %c0_101 = arith.constant 0 : index
    %c0_102 = arith.constant 0 : index
    %c0_103 = arith.constant 0 : index
    %255 = vector.load %arg20[%c0_101, %c0_102, %c0_103] : memref<1x8x32xf32, #tpu.memory_space<vmem>>, vector<1x8x32xf32>
    %256 = vector.shape_cast %255 : vector<1x8x32xf32> to vector<8x32xf32>
    %257 = vector.shape_cast %254 : vector<8x32xf32> to vector<1x8x32xf32>
    tpu.vector_store %arg20[%c0_101, %c0_102, %c0_103], %257 {strides = array<i32>} : memref<1x8x32xf32, #tpu.memory_space<vmem>>, vector<1x8x32xf32>,
    %cst_104 = arith.constant 1.000000e+00 : f32
    %258 = vector.broadcast %cst_104 : f32 to vector<8x32xf32>
    %259 = arith.subf %258, %17 : vector<8x32xf32>
    %cst_105 = arith.constant 1.000000e+05 : f32
    %260 = vector.broadcast %cst_105 : f32 to vector<8x32xf32>
    %261 = arith.mulf %260, %259 : vector<8x32xf32>
    %cst_106 = arith.constant dense<0.000000e+00> : vector<32xf32>
    %262 = vector.multi_reduction <add>, %248, %cst_106 [0] : vector<8x32xf32> to vector<32xf32>
    %263 = vector.shape_cast %262 : vector<32xf32> to vector<1x32xf32>
    %264 = vector.broadcast %32 : vector<1x1xf32> to vector<1x32xf32>
    %265 = arith.mulf %263, %264 : vector<1x32xf32>
    %266 = arith.addf %248, %261 : vector<8x32xf32>
    %cst_107 = arith.constant dense<0x7F800000> : vector<32xf32>
    %267 = vector.multi_reduction <minimumf>, %266, %cst_107 [0] : vector<8x32xf32> to vector<32xf32>
    %268 = vector.shape_cast %267 : vector<32xf32> to vector<1x32xf32>
    %269 = arith.subf %248, %261 : vector<8x32xf32>
    %cst_108 = arith.constant dense<0xFF800000> : vector<32xf32>
    %270 = vector.multi_reduction <maximumf>, %269, %cst_108 [0] : vector<8x32xf32> to vector<32xf32>
    %271 = vector.shape_cast %270 : vector<32xf32> to vector<1x32xf32>
    %272 = vector.broadcast %265 : vector<1x32xf32> to vector<8x32xf32>
    %273 = arith.subf %248, %272 : vector<8x32xf32>
    %274 = arith.mulf %273, %17 : vector<8x32xf32>
    %275 = arith.mulf %274, %274 : vector<8x32xf32>
    %cst_109 = arith.constant dense<0.000000e+00> : vector<32xf32>
    %276 = vector.multi_reduction <add>, %275, %cst_109 [0] : vector<8x32xf32> to vector<32xf32>
    %277 = vector.shape_cast %276 : vector<32xf32> to vector<1x32xf32>
    %278 = vector.broadcast %32 : vector<1x1xf32> to vector<1x32xf32>
    %279 = arith.mulf %277, %278 : vector<1x32xf32>
    %280 = tpu.concatenate %265, %268, %271, %279 in 0 : vector<1x32xf32>, vector<1x32xf32>, vector<1x32xf32>, vector<1x32xf32> -> vector<4x32xf32>
    %cst_110 = arith.constant dense<0.000000e+00> : vector<16xf32>
    %281 = vector.multi_reduction <add>, %104, %cst_110 [0] : vector<64x16xf32> to vector<16xf32>
    %282 = vector.shape_cast %281 : vector<16xf32> to vector<1x16xf32>
    %283 = vector.broadcast %33 : vector<1x1xf32> to vector<1x16xf32>
    %284 = arith.mulf %282, %283 : vector<1x16xf32>
    %285 = arith.addf %104, %23 : vector<64x16xf32>
    %cst_111 = arith.constant dense<0x7F800000> : vector<16xf32>
    %286 = vector.multi_reduction <minimumf>, %285, %cst_111 [0] : vector<64x16xf32> to vector<16xf32>
    %287 = vector.shape_cast %286 : vector<16xf32> to vector<1x16xf32>
    %288 = arith.subf %104, %23 : vector<64x16xf32>
    %cst_112 = arith.constant dense<0xFF800000> : vector<16xf32>
    %289 = vector.multi_reduction <maximumf>, %288, %cst_112 [0] : vector<64x16xf32> to vector<16xf32>
    %290 = vector.shape_cast %289 : vector<16xf32> to vector<1x16xf32>
    %291 = vector.broadcast %284 : vector<1x16xf32> to vector<64x16xf32>
    %292 = arith.subf %104, %291 : vector<64x16xf32>
    %293 = arith.mulf %292, %13 : vector<64x16xf32>
    %294 = arith.mulf %293, %293 : vector<64x16xf32>
    %cst_113 = arith.constant dense<0.000000e+00> : vector<16xf32>
    %295 = vector.multi_reduction <add>, %294, %cst_113 [0] : vector<64x16xf32> to vector<16xf32>
    %296 = vector.shape_cast %295 : vector<16xf32> to vector<1x16xf32>
    %297 = vector.broadcast %33 : vector<1x1xf32> to vector<1x16xf32>
    %298 = arith.mulf %296, %297 : vector<1x16xf32>
    %299 = tpu.concatenate %284, %287, %290, %298 in 0 : vector<1x16xf32>, vector<1x16xf32>, vector<1x16xf32>, vector<1x16xf32> -> vector<4x16xf32>
    %cst_114 = arith.constant dense<0.000000e+00> : vector<16xf32>
    %300 = vector.multi_reduction <add>, %69, %cst_114 [0] : vector<64x16xf32> to vector<16xf32>
    %301 = vector.shape_cast %300 : vector<16xf32> to vector<1x16xf32>
    %302 = vector.broadcast %33 : vector<1x1xf32> to vector<1x16xf32>
    %303 = arith.mulf %301, %302 : vector<1x16xf32>
    %304 = arith.addf %69, %23 : vector<64x16xf32>
    %cst_115 = arith.constant dense<0x7F800000> : vector<16xf32>
    %305 = vector.multi_reduction <minimumf>, %304, %cst_115 [0] : vector<64x16xf32> to vector<16xf32>
    %306 = vector.shape_cast %305 : vector<16xf32> to vector<1x16xf32>
    %307 = arith.subf %69, %23 : vector<64x16xf32>
    %cst_116 = arith.constant dense<0xFF800000> : vector<16xf32>
    %308 = vector.multi_reduction <maximumf>, %307, %cst_116 [0] : vector<64x16xf32> to vector<16xf32>
    %309 = vector.shape_cast %308 : vector<16xf32> to vector<1x16xf32>
    %310 = vector.broadcast %303 : vector<1x16xf32> to vector<64x16xf32>
    %311 = arith.subf %69, %310 : vector<64x16xf32>
    %312 = arith.mulf %311, %13 : vector<64x16xf32>
    %313 = arith.mulf %312, %312 : vector<64x16xf32>
    %cst_117 = arith.constant dense<0.000000e+00> : vector<16xf32>
    %314 = vector.multi_reduction <add>, %313, %cst_117 [0] : vector<64x16xf32> to vector<16xf32>
    %315 = vector.shape_cast %314 : vector<16xf32> to vector<1x16xf32>
    %316 = vector.broadcast %33 : vector<1x1xf32> to vector<1x16xf32>
    %317 = arith.mulf %315, %316 : vector<1x16xf32>
    %318 = tpu.concatenate %303, %306, %309, %317 in 0 : vector<1x16xf32>, vector<1x16xf32>, vector<1x16xf32>, vector<1x16xf32> -> vector<4x16xf32>
    %319 = tpu.concatenate %280, %299, %318 in 1 : vector<4x32xf32>, vector<4x16xf32>, vector<4x16xf32> -> vector<4x64xf32>
    %c0_118 = arith.constant 0 : index
    %c0_119 = arith.constant 0 : index
    %c0_120 = arith.constant 0 : index
    %320 = vector.load %arg23[%c0_118, %c0_119, %c0_120] : memref<1x4x64xf32, #tpu.memory_space<vmem>>, vector<1x4x64xf32>
    %321 = vector.shape_cast %320 : vector<1x4x64xf32> to vector<4x64xf32>
    %322 = vector.shape_cast %319 : vector<4x64xf32> to vector<1x4x64xf32>
    tpu.vector_store %arg23[%c0_118, %c0_119, %c0_120], %322 {strides = array<i32>} : memref<1x4x64xf32, #tpu.memory_space<vmem>>, vector<1x4x64xf32>,
    %c0_121 = arith.constant 0 : index
    %c0_122 = arith.constant 0 : index
    %323 = vector.load %arg18[%c0_121, %c0_122] : memref<16x16xf32, #tpu.memory_space<vmem>>, vector<16x16xf32>
    %cst_123 = arith.constant dense<0.000000e+00> : vector<64x16xf32>
    %324 = tpu.matmul %104, %323, %cst_123 {dimension_numbers = #tpu.dot_dimension_numbers<[1], [0], [0], [1], [0, 0, 1, 1], [], []>} : vector<64x16xf32>, vector<16x16xf32>, vector<64x16xf32> -> vector<64x16xf32>
    %cst_124 = arith.constant 0.000000e+00 : f32
    %325 = vector.broadcast %cst_124 : f32 to vector<64x16xf32>
    %326 = arith.maximumf %324, %325 : vector<64x16xf32>
    %c0_125 = arith.constant 0 : index
    %c0_126 = arith.constant 0 : index
    %327 = vector.load %arg19[%c0_125, %c0_126] : memref<1x16xf32, #tpu.memory_space<vmem>>, vector<1x16xf32>
    %328 = vector.broadcast %327 : vector<1x16xf32> to vector<64x16xf32>
    %329 = arith.mulf %326, %328 : vector<64x16xf32>
    %cst_127 = arith.constant dense<0.000000e+00> : vector<64xf32>
    %330 = vector.multi_reduction <add>, %329, %cst_127 [1] : vector<64x16xf32> to vector<64xf32>
    %331 = vector.shape_cast %330 : vector<64xf32> to vector<64x1xf32>
    %332 = tpu.concatenate %11, %11, %11, %11, %11, %11, %11, %11 in 0 : vector<8x3xf32>, vector<8x3xf32>, vector<8x3xf32>, vector<8x3xf32>, vector<8x3xf32>, vector<8x3xf32>, vector<8x3xf32>, vector<8x3xf32> -> vector<64x3xf32>
    %333 = vector.broadcast %331 : vector<64x1xf32> to vector<64x3xf32>
    %334 = arith.mulf %333, %332 : vector<64x3xf32>
    %335 = tpu.concatenate %331, %334 in 1 : vector<64x1xf32>, vector<64x3xf32> -> vector<64x4xf32>
    %cst_128 = arith.constant dense<0.000000e+00> : vector<8x4xf32>
    %336 = tpu.matmul %61, %335, %cst_128 {dimension_numbers = #tpu.dot_dimension_numbers<[1], [0], [0], [1], [0, 0, 1, 1], [], []>} : vector<8x64xf32>, vector<64x4xf32>, vector<8x4xf32> -> vector<8x4xf32>
    %337 = vector.extract_strided_slice %336 {offsets = [0, 0], sizes = [8, 1], strides = [1, 1]} : vector<8x4xf32> to vector<8x1xf32>
    %338 = vector.broadcast %337 : vector<8x1xf32> to vector<8x3xf32>
    %339 = arith.mulf %338, %11 : vector<8x3xf32>
    %340 = vector.extract_strided_slice %336 {offsets = [0, 1], sizes = [8, 3], strides = [1, 1]} : vector<8x4xf32> to vector<8x3xf32>
    %341 = arith.subf %339, %340 : vector<8x3xf32>
    %342 = vector.broadcast %9 : vector<8x1xf32> to vector<8x3xf32>
    %343 = arith.mulf %341, %342 : vector<8x3xf32>
    %cst_129 = arith.constant dense<0.000000e+00> : vector<3xf32>
    %344 = vector.multi_reduction <add>, %343, %cst_129 [0] : vector<8x3xf32> to vector<3xf32>
    %345 = vector.shape_cast %344 : vector<3xf32> to vector<1x3xf32>
    %346 = vector.broadcast %32 : vector<1x1xf32> to vector<1x3xf32>
    %347 = arith.mulf %345, %346 : vector<1x3xf32>
    %348 = vector.broadcast %347 : vector<1x3xf32> to vector<8x3xf32>
    %349 = vector.broadcast %9 : vector<8x1xf32> to vector<8x3xf32>
    %350 = arith.mulf %348, %349 : vector<8x3xf32>
    %351 = arith.subf %343, %350 : vector<8x3xf32>
    %c0_130 = arith.constant 0 : index
    %c0_131 = arith.constant 0 : index
    %c0_132 = arith.constant 0 : index
    %352 = vector.load %arg22[%c0_130, %c0_131, %c0_132] : memref<1x8x3xf32, #tpu.memory_space<vmem>>, vector<1x8x3xf32>
    %353 = vector.shape_cast %352 : vector<1x8x3xf32> to vector<8x3xf32>
    %354 = vector.shape_cast %351 : vector<8x3xf32> to vector<1x8x3xf32>
    tpu.vector_store %arg22[%c0_130, %c0_131, %c0_132], %354 {strides = array<i32>} : memref<1x8x3xf32, #tpu.memory_space<vmem>>, vector<1x8x3xf32>,
    return
  }
  func.func @transform_0(%arg0: i32) -> (i32, i32, i32) {
    %c0_i32 = arith.constant 0 : i32
    %c0_i32_0 = arith.constant 0 : i32
    %c0_i32_1 = arith.constant 0 : i32
    return %arg0, %c0_i32, %c0_i32_0 : i32, i32, i32
  }
  func.func @transform_1(%arg0: i32) -> (i32, i32, i32) {
    %c0_i32 = arith.constant 0 : i32
    %c0_i32_0 = arith.constant 0 : i32
    %c0_i32_1 = arith.constant 0 : i32
    return %arg0, %c0_i32, %c0_i32_0 : i32, i32, i32
  }
  func.func @transform_2(%arg0: i32) -> (i32, i32, i32) {
    %c0_i32 = arith.constant 0 : i32
    %c0_i32_0 = arith.constant 0 : i32
    %c0_i32_1 = arith.constant 0 : i32
    return %arg0, %c0_i32, %c0_i32_0 : i32, i32, i32
  }
  func.func @transform_3(%arg0: i32) -> (i32, i32, i32) {
    %c0_i32 = arith.constant 0 : i32
    %c0_i32_0 = arith.constant 0 : i32
    %c0_i32_1 = arith.constant 0 : i32
    return %arg0, %c0_i32, %c0_i32_0 : i32, i32, i32
  }
  func.func @transform_4(%arg0: i32) -> (i32, i32, i32) {
    %c0_i32 = arith.constant 0 : i32
    %c0_i32_0 = arith.constant 0 : i32
    %c0_i32_1 = arith.constant 0 : i32
    return %arg0, %c0_i32, %c0_i32_0 : i32, i32, i32
  }
  func.func @transform_5(%arg0: i32) -> (i32, i32, i32) {
    %c0_i32 = arith.constant 0 : i32
    %c0_i32_0 = arith.constant 0 : i32
    %c0_i32_1 = arith.constant 0 : i32
    return %arg0, %c0_i32, %c0_i32_0 : i32, i32, i32
  }
  func.func @transform_6(%arg0: i32) -> (i32, i32, i32) {
    %c0_i32 = arith.constant 0 : i32
    %c0_i32_0 = arith.constant 0 : i32
    %c0_i32_1 = arith.constant 0 : i32
    return %arg0, %c0_i32, %c0_i32_0 : i32, i32, i32
  }
  func.func @transform_7(%arg0: i32) -> (i32, i32, i32) {
    %c0_i32 = arith.constant 0 : i32
    %c0_i32_0 = arith.constant 0 : i32
    %c0_i32_1 = arith.constant 0 : i32
    return %arg0, %c0_i32, %c0_i32_0 : i32, i32, i32
  }
  func.func @transform_8(%arg0: i32) -> (i32, i32) {
    %c0_i32 = arith.constant 0 : i32
    %c0_i32_0 = arith.constant 0 : i32
    %c0_i32_1 = arith.constant 0 : i32
    return %c0_i32, %c0_i32_0 : i32, i32
  }
  func.func @transform_9(%arg0: i32) -> (i32, i32) {
    %c0_i32 = arith.constant 0 : i32
    %c0_i32_0 = arith.constant 0 : i32
    %c0_i32_1 = arith.constant 0 : i32
    return %c0_i32, %c0_i32_0 : i32, i32
  }
  func.func @transform_10(%arg0: i32) -> (i32, i32) {
    %c0_i32 = arith.constant 0 : i32
    %c0_i32_0 = arith.constant 0 : i32
    %c0_i32_1 = arith.constant 0 : i32
    return %c0_i32, %c0_i32_0 : i32, i32
  }
  func.func @transform_11(%arg0: i32) -> (i32, i32) {
    %c0_i32 = arith.constant 0 : i32
    %c0_i32_0 = arith.constant 0 : i32
    %c0_i32_1 = arith.constant 0 : i32
    return %c0_i32, %c0_i32_0 : i32, i32
  }
  func.func @transform_12(%arg0: i32) -> (i32, i32) {
    %c0_i32 = arith.constant 0 : i32
    %c0_i32_0 = arith.constant 0 : i32
    %c0_i32_1 = arith.constant 0 : i32
    return %c0_i32, %c0_i32_0 : i32, i32
  }
  func.func @transform_13(%arg0: i32) -> (i32, i32) {
    %c0_i32 = arith.constant 0 : i32
    %c0_i32_0 = arith.constant 0 : i32
    %c0_i32_1 = arith.constant 0 : i32
    return %c0_i32, %c0_i32_0 : i32, i32
  }
  func.func @transform_14(%arg0: i32) -> (i32, i32) {
    %c0_i32 = arith.constant 0 : i32
    %c0_i32_0 = arith.constant 0 : i32
    %c0_i32_1 = arith.constant 0 : i32
    return %c0_i32, %c0_i32_0 : i32, i32
  }
  func.func @transform_15(%arg0: i32) -> (i32, i32) {
    %c0_i32 = arith.constant 0 : i32
    %c0_i32_0 = arith.constant 0 : i32
    %c0_i32_1 = arith.constant 0 : i32
    return %c0_i32, %c0_i32_0 : i32, i32
  }
  func.func @transform_16(%arg0: i32) -> (i32, i32) {
    %c0_i32 = arith.constant 0 : i32
    %c0_i32_0 = arith.constant 0 : i32
    %c0_i32_1 = arith.constant 0 : i32
    return %c0_i32, %c0_i32_0 : i32, i32
  }
  func.func @transform_17(%arg0: i32) -> (i32, i32) {
    %c0_i32 = arith.constant 0 : i32
    %c0_i32_0 = arith.constant 0 : i32
    %c0_i32_1 = arith.constant 0 : i32
    return %c0_i32, %c0_i32_0 : i32, i32
  }
  func.func @transform_18(%arg0: i32) -> (i32, i32) {
    %c0_i32 = arith.constant 0 : i32
    %c0_i32_0 = arith.constant 0 : i32
    %c0_i32_1 = arith.constant 0 : i32
    return %c0_i32, %c0_i32_0 : i32, i32
  }
  func.func @transform_19(%arg0: i32) -> (i32, i32, i32) {
    %c0_i32 = arith.constant 0 : i32
    %c0_i32_0 = arith.constant 0 : i32
    %c0_i32_1 = arith.constant 0 : i32
    return %arg0, %c0_i32, %c0_i32_0 : i32, i32, i32
  }
  func.func @transform_20(%arg0: i32) -> (i32, i32, i32) {
    %c0_i32 = arith.constant 0 : i32
    %c0_i32_0 = arith.constant 0 : i32
    %c0_i32_1 = arith.constant 0 : i32
    return %arg0, %c0_i32, %c0_i32_0 : i32, i32, i32
  }
  func.func @transform_21(%arg0: i32) -> (i32, i32, i32) {
    %c0_i32 = arith.constant 0 : i32
    %c0_i32_0 = arith.constant 0 : i32
    %c0_i32_1 = arith.constant 0 : i32
    return %arg0, %c0_i32, %c0_i32_0 : i32, i32, i32
  }
  func.func @transform_22(%arg0: i32) -> (i32, i32, i32) {
    %c0_i32 = arith.constant 0 : i32
    %c0_i32_0 = arith.constant 0 : i32
    %c0_i32_1 = arith.constant 0 : i32
    return %arg0, %c0_i32, %c0_i32_0 : i32, i32, i32
  }
}

</mosaic_0001>

<bundles_post_ra>
// kernel: node_edge_block_forward.1
= control target key start
LH: loop header
LB: loop body
LE: loop exit
PB: predicated region body
PF: predicated region fallthrough
CT: control target
= control target key end

     0   :  { %s7553_s0 = inlined_call_operand.vmem [shape: f32[2,8,32], index: 0, kind: input, shape index: {}]   ;;  %s7554_s1 = inlined_call_operand.vmem [shape: f32[2,64,16], index: 1, kind: input, shape index: {}]   ;;  %s7555_s2 = inlined_call_operand.vmem [shape: f32[2,64,4], index: 2, kind: input, shape index: {}]   ;;  %s7556_s3 = inlined_call_operand.vmem [shape: f32[2,64,1], index: 3, kind: input, shape index: {}]   ;;  %s7557_s4 = inlined_call_operand.vmem [shape: f32[2,8,1], index: 4, kind: input, shape index: {}]   ;;  %s7558_s5 = inlined_call_operand.vmem [shape: f32[2,8,3], index: 5, kind: input, shape index: {}]   ;;  %s7559_s6 = inlined_call_operand.vmem [shape: f32[2,2,16], index: 6, kind: input, shape index: {}]   ;;  %s7560_s7 = inlined_call_operand.vmem [shape: f32[2,2,32], index: 7, kind: input, shape index: {}]   ;;  %s7561_s8 = inlined_call_operand.vmem [shape: f32[33,128], index: 8, kind: input, shape index: {}]   ;;  %s7562_s9 = inlined_call_operand.vmem [shape: f32[17,16], index: 9, kind: input, shape index: {}]   ;;  %s7563_s10 = inlined_call_operand.vmem [shape: f32[5,16], index: 10, kind: input, shape index: {}]   ;;  %s7564_s11 = inlined_call_operand.vmem [shape: f32[17,36], index: 11, kind: input, shape index: {}]   ;;  %s7565_s12 = inlined_call_operand.vmem [shape: f32[17,20], index: 12, kind: input, shape index: {}]   ;;  %s7566_s13 = inlined_call_operand.vmem [shape: f32[32,4], index: 13, kind: input, shape index: {}]   ;;  %s7567_s14 = inlined_call_operand.vmem [shape: f32[129,32], index: 14, kind: input, shape index: {}]   ;;  %s7568_s15 = inlined_call_operand.vmem [shape: f32[129,64], index: 15, kind: input, shape index: {}]   ;;  %s7569_s16 = inlined_call_operand.vmem [shape: f32[33,32], index: 16, kind: input, shape index: {}]   ;;  %s7570_s17 = inlined_call_operand.vmem [shape: f32[16,16], index: 17, kind: input, shape index: {}]   ;;  %s7571_s18 = inlined_call_operand.vmem [shape: f32[1,16], index: 18, kind: input, shape index: {}]   ;;  %s7572_s19 = inlined_call_operand.hbm [shape: f32[2,8,32], index: 19, kind: output, shape index: {0}]   ;;  %s7573_s20 = inlined_call_operand.hbm [shape: f32[2,64,16], index: 20, kind: output, shape index: {1}]   ;;  %s7574_s21 = inlined_call_operand.vmem [shape: f32[2,8,3], index: 21, kind: output, shape index: {2}]   ;;  %s7575_s22 = inlined_call_operand.vmem [shape: f32[2,4,64], index: 22, kind: output, shape index: {3}]  }
   0x1   :  { %7643 = sst [smem:[#allocation39_spill]] %s7553_s0 }
   0x2   :  { %7644 = sst [smem:[#allocation40_spill]] %s7554_s1 }
   0x3   :  { %7645 = sst [smem:[#allocation41_spill]] %s7555_s2 }
   0x4   :  { %7646 = sst [smem:[#allocation42_spill]] %s7556_s3 }
   0x5   :  { %7647 = sst [smem:[#allocation43_spill]] %s7557_s4 }
   0x6   :  { %7648 = sst [smem:[#allocation44_spill]] %s7558_s5 }
   0x7   :  { %7649 = sst [smem:[#allocation45_spill]] %s7559_s6 }
   0x8   :  { %7650 = sst [smem:[#allocation46_spill]] %s7560_s7 }
   0x9   :  { %7651 = sst [smem:[#allocation47_spill]] %s7561_s8 }
   0xa   :  { %7652 = sst [smem:[#allocation48_spill]] %s7574_s21 }
   0xb   :  { %28 = vsyncpa [#allocation3], 0 }
   0xc   :  { %30 = vsyncpa [#allocation3 + $0x1], 0 }
   0xd   :  { %31 = vsyncpa [#allocation5], 0 }
   0xe   :  { %33 = vsyncpa [#allocation5 + $0x1], 0  ;;  %s5823_s3 = smov 0   ;;  %s5825_s28 = smov 0  }
   0xf   :  { %s5827_s29 = smov 0   ;;  %s5829_s30 = smov 0  }
  0x10 LB: > { %7653 = sst [smem:[#allocation8_spill]] %s5673_s3  ;;  %s5844_s4 = sadd.s32 4294967295, %s5685_s30   ;;  %s5685_s30 = sphi %s5829_s30, %s7775_s30   ;;  %s5681_s29 = sphi %s5827_s29, %s7777_s29   ;;  %s5677_s28 = sphi %s5825_s28, %s7779_s28   ;;  %s5673_s3 = sphi %s5823_s3, %s7778_s3  }
  0x11   : > { %7654 = sst [smem:[#allocation9_spill]] %s5681_s29  ;;  %s4643_s0 = sadd.s32 4294967294, %s5685_s30  }
  0x12   : > { %7655 = sst [smem:[#allocation10_spill]] %s5685_s30  ;;  %s5848_s23 = sadd.s32 1, %s5685_s30  }
  0x13   : > { %7656 = sst [smem:[#allocation11_spill]] %s5848_s23  ;;  %s485_s1 = sadd.s32 1, %s5681_s29 }
  0x14   : > { %s482_s5 = ssub.s32 %s5685_s30, %s5848_s23  ;;  %p495_p0 = scmp.ne.s32.totalorder %s5681_s29, %s5677_s28 }
  0x15   : > { %p483_p1 = scmp.eq.s32.totalorder %s482_s5, 0  ;;  %p496_p2 = scmp.eq.s32.totalorder %s5844_s4, 1 }
  0x16   : > { %p501_p3 = scmp.ne.s32.totalorder %s5677_s28, %s5673_s3  ;;  %p502_p4 = scmp.eq.s32.totalorder %s4643_s0, 1 }
  0x17   : > { %s5859_s24 = scalar_select %p483_p1, %s5681_s29, %s485_s1  }
  0x18   : > { %p5861_p5 = por %p496_p2, %p495_p0  ;;  %p5865_p6 = por %p502_p4, %p501_p3 }
  0x19   : > { %7657 = sst [smem:[#allocation12_spill]] %s5859_s24  ;;  %p4646_p7 = scmp.ge.s32.totalorder %s5685_s30, 1 }
  0x1a   : > { %s7659_s25 = scalar_select %p5865_p6, 1, 0 }
  0x1b   : > { %p690_p8 = scmp.lt.s32.totalorder %s5685_s30, 3 }
  0x1c   : > { %7660 = sst [smem:[#allocation13_spill]] %s7659_s25 }
  0x1d   : > { %p691_p9 = pnand %p4646_p7, %p690_p8 }
  0x1f   : > { %694 = sbr.rel (%p691_p9) target bundleno = 3334 (0xd06), region = 96 }
  0x26   : > { %s7661_s8 = sld [smem:[#allocation47_spill]]  ;;  %v991_v2 = vld [vmem:[%s7563_s10] sm:$0xf]  ;;  %vm1022_vm0 = vcmask 1043456   ;;  %v7587_v3 = vmov 0.0|0.0   ;;  %p795_p10 = scmp.lt.s32.totalorder %s5844_s4, 1  ;;  %v938_v39 = vlaneseq }
  0x27   : > { %5178 = vmatprep.subr.bf16.mxu1 %v7587_v3  ;;  %4898 = vmatprep.subr.msk.mxu0 %vm1022_vm0, %v991_v2  ;;  %vm7583_vm1 = vmmov 0   ;;  %v7585_v7 = vmov 0.0   ;;  %v1361_v8 = vld [vmem:[%s7562_s9] sm:$0xff]  ;;  %v1362_v9 = vld [vmem:[%s7562_s9 + $0x8] sm:$0xff]  ;;  %v7589_v11 = vmov 0   ;;  %vm7582_vm2 = vcmask 31744  }
  0x28   : > { %4899 = vmatpush3.msk.msra.mxu0 %vm1022_vm0, %v991_v2  ;;  %4920 = vmatprep.mubr.msk.f32.mxu1 %vm7583_vm1, %v7585_v7  ;;  %s5897_s24 = scalar_select %p795_p10, %s5844_s4, 1  ;;  %v5184_v12 = vpack.c.bf16 %v1362_v9, %v1361_v8  ;;  %vm1156_vm3 = vcmask 261120   ;;  %vm1368_vm4 = vcmask 130048   ;;  %v5971_v40 = vand.u32 127, %v938_v39  ;;  %v1558_v2 = vld [vmem:[%s7564_s11] sm:$0xff] }
  0x29   : > { %5373 = vset.pattern.permute.xlu0 %v7589_v11  ;;  %5374 = vset.pattern.permute.xlu1 %v7589_v11  ;;  %s7662_s0 = sld [smem:[#allocation41_spill]]  ;;  %s7663_s25 = sld [smem:[#allocation39_spill]]  ;;  %v5974_v42 = vshrl.u32 %v938_v39, 7  ;;  %vm1231_vm10 = vcmask 64512   ;;  %v2003_v9 = vld [vmem:[%s7566_s13] sm:$0xff] }
  0x2a   : > { %s5903_s29 = sshll.u32 %s5897_s24, 6  ;;  %s5906_s26 = sshll.u32 %s5897_s24, 3  ;;  %5185 = vmatprep.subr.bf16.mxu0 %v5184_v12  ;;  %v958_v41 = vadd.s32 1, %v5971_v40  ;;  %v949_v43 = vmul.u32 8, %v5971_v40 }
  0x2b   : > { %s7666_s27 = sld [smem:[#allocation40_spill]]  ;;  %v940_v45 = vadd.s32 8, %v5974_v42  ;;  %v941_v48 = vadd.s32 16, %v5974_v42  ;;  %v942_v49 = vadd.s32 24, %v5974_v42  ;;  %v943_v52 = vadd.s32 32, %v5974_v42  ;;  %s5694_s2 = smov 112  }
  0x2c   : > { %v1147_v0 = vld [vmem:[%s7661_s8] sm:$0xff]  ;;  %v1148_v1 = vld [vmem:[%s7661_s8 + $0x8] sm:$0xff]  ;;  %v1149_v5 = vld [vmem:[%s7661_s8 + $0x10] sm:$0xff]  ;;  %v959_v44 = vmul.u32 8, %v958_v41  ;;  %vm950_vm5 = vcmp.ge.s32.totalorder %v5974_v42, %v949_v43  ;;  %v944_v53 = vadd.s32 40, %v5974_v42  ;;  %v945_v56 = vadd.s32 48, %v5974_v42 }
  0x2d   : > { %v5179_v4 = vpack.c.bf16 %v1148_v1, %v1147_v0  ;;  %v1150_v6 = vld [vmem:[%s7661_s8 + $0x18] sm:$0xff]  ;;  %vm951_vm8 = vcmp.ge.s32.totalorder %v940_v45, %v949_v43  ;;  %vm952_vm12 = vcmp.ge.s32.totalorder %v941_v48, %v949_v43  ;;  %vm953_vm15 = vcmp.ge.s32.totalorder %v942_v49, %v949_v43  ;;  %v4672_v60 = vld [vmem:[%s7661_s8 + $0x20] ss:$0 sm:$0xff]  ;;  %s7614_s23 = sshll.u32 %s5897_s24, 1  ;;  %s7732_s7 = sld [smem:[#allocation46_spill]] }
  0x2e   : > { %v5182_v10 = vpack.c.bf16 %v1150_v6, %v1149_v5  ;;  %vm960_vm6 = vcmp.lt.s32.totalorder %v5974_v42, %v959_v44  ;;  %vm961_vm9 = vcmp.lt.s32.totalorder %v940_v45, %v959_v44  ;;  %vm962_vm13 = vcmp.lt.s32.totalorder %v941_v48, %v959_v44 }
  0x2f   : > { %5180 = vmatpush3.bf16.msra.mxu1 %v5179_v4  ;;  %s5912_s1 = scalar_lea.vmem %s7662_s0, %s5903_s29  ;;  %s798_s3 = scalar_lea.vmem %s7663_s25, %s5906_s26  ;;  %vm968_vm7 = vmand %vm950_vm5, %vm960_vm6  ;;  %vm963_vm0 = vcmp.lt.s32.totalorder %v942_v49, %v959_v44  ;;  %vm954_vm6 = vcmp.ge.s32.totalorder %v943_v52, %v949_v43  ;;  %v946_v57 = vadd.s32 56, %v5974_v42  ;;  %v1559_v4 = vld [vmem:[%s7564_s11 + $0x8] sm:$0xff] }
  0x30   : > { %5181 = vmatprep.subr.bf16.mxu1 %v7587_v3  ;;  %v847_v13 = vld [vmem:[%s5912_s1] sm:$0xff]  ;;  %v848_v14 = vld [vmem:[%s5912_s1 + $0x8] sm:$0xff]  ;;  %v849_v16 = vld [vmem:[%s5912_s1 + $0x10] sm:$0xff]  ;;  %s7664_s0 = sld [smem:[#allocation43_spill]]  ;;  %s7665_s25 = sld [smem:[#allocation42_spill]]  ;;  %v976_v46 = vsel %vm968_vm7, 1.0, %v7585_v7  ;;  %vm964_vm7 = vcmp.lt.s32.totalorder %v943_v52, %v959_v44 }
  0x31   : > { %v838_v15 = vld [vmem:[%s798_s3] sm:$0xff]  ;;  %4900 = vmatprep.mubr.msk.f32.mxu0 %vm7582_vm2, %v847_v13  ;;  %v850_v17 = vld [vmem:[%s5912_s1 + $0x18] sm:$0xff]  ;;  %v852_v23 = vld [vmem:[%s5912_s1 + $0x28] sm:$0xff]  ;;  %v5188_v13 = vpack.c.bf16 %v1559_v4, %v1558_v2  ;;  %s7693_s3 = sld [smem:[#allocation45_spill]] }
  0x32   : > { %4901 = vmatmul.mubr.msk.f32.vlgmr.msra.gmra.mrb[0].mxu0 %vm7582_vm2, %v848_v14  ;;  %v851_v19 = vld [vmem:[%s5912_s1 + $0x20] sm:$0xff]  ;;  %v853_v24 = vld [vmem:[%s5912_s1 + $0x30] sm:$0xff]  ;;  %v854_v27 = vld [vmem:[%s5912_s1 + $0x38] sm:$0xff] }
  0x33   : > { %5183 = vmatpush3.bf16.msra.mxu1 %v5182_v10  ;;  %4903 = vmatprep.mubr.msk.f32.mxu0 %vm7582_vm2, %v849_v16  ;;  %vm5981_vm11 = vmand %vm951_vm8, %vm961_vm9  ;;  %vm955_vm9 = vcmp.ge.s32.totalorder %v944_v53, %v949_v43  ;;  %v2004_v10 = vld [vmem:[%s7566_s13 + $0x8] sm:$0xff] }
  0x34   : > { %5187 = vmatpush3.bf16.msra.mxu0 %v5184_v12  ;;  %vm5988_vm14 = vmand %vm952_vm12, %vm962_vm13  ;;  %vm965_vm12 = vcmp.lt.s32.totalorder %v944_v53, %v959_v44  ;;  %v977_v14 = vsel %vm5981_vm11, 1.0, %v7585_v7  ;;  %v5196_v16 = vpack.c.bf16 %v2004_v10, %v2003_v9  ;;  %v2005_v10 = vld [vmem:[%s7566_s13 + $0x10] sm:$0xff]  ;;  %vm7707_vm11 = vcmask 31744  }
  0x35   : > { %vm5992_vm5 = vmand %vm953_vm15, %vm963_vm0  ;;  %vm956_vm15 = vcmp.ge.s32.totalorder %v945_v56, %v949_v43  ;;  %vm966_vm0 = vcmp.lt.s32.totalorder %v945_v56, %v959_v44 }
  0x36   : > { %s5926_s30 = scalar_lea.vmem %s7664_s0, %s5906_s26  ;;  %s5933_s21 = scalar_lea.vmem %s7665_s25, %s5903_s29  ;;  %4921 = vmatmul.mubr.msk.f32.vlgmr.msra.gmra.mrb[0].mxu1 %vm1156_vm3, %v838_v15  ;;  %4904 = vmatmul.mubr.msk.f32.gmra.mrb[2].mxu0 %vm7582_vm2, %v850_v17  ;;  %vm5998_vm8 = vmand %vm954_vm6, %vm964_vm7  ;;  %vm957_vm6 = vcmp.ge.s32.totalorder %v946_v57, %v949_v43  ;;  %vm967_vm7 = vcmp.lt.s32.totalorder %v946_v57, %v959_v44  ;;  %v978_v15 = vsel %vm5988_vm14, 1.0, %v7585_v7 }
  0x37   : > { %v5939_v18 = vld [vmem:[%s5926_s30] sm:$0xff]  ;;  %v856_v20 = vld [vmem:[%s5933_s21 + $0x8] sm:$0xff]  ;;  %v857_v22 = vld [vmem:[%s5933_s21 + $0x10] sm:$0xff]  ;;  %4906 = vmatprep.mubr.msk.f32.mxu0 %vm7582_vm2, %v851_v19  ;;  %s803_s0 = scalar_lea.vmem %s7666_s27, %s5903_s29  ;;  %4925 = vmatprep.mubr.msk.f32.mxu1 %vm1231_vm10, %v976_v46  ;;  %s5692_s29 = smov 16  }
  0x38   : > { %907 = vperm.xlu0 %5373, %v5939_v18   ;;  %v855_v21 = vld [vmem:[%s5933_s21] sm:$0xff]  ;;  %872 = vperm.xlu1 %5374, %v856_v20   ;;  %v858_v25 = vld [vmem:[%s5933_s21 + $0x18] sm:$0xff]  ;;  %v860_v29 = vld [vmem:[%s5933_s21 + $0x28] sm:$0xff]  ;;  %s5693_s27 = smov 96   ;;  %s5695_s25 = smov 32  }
  0x39   : > { %v859_v26 = vld [vmem:[%s5933_s21 + $0x20] sm:$0xff]  ;;  %v861_v30 = vld [vmem:[%s5933_s21 + $0x30] sm:$0xff]  ;;  %v840_v31 = vld [vmem:[%s803_s0 + $0x8] sm:$0xff] }
  0x3a   : > { %4907 = vmatmul.mubr.msk.f32.gmra.mrb[4].mxu0 %vm7582_vm2, %v852_v23  ;;  %v839_v28 = vld [vmem:[%s803_s0] sm:$0xff]  ;;  %v841_v32 = vld [vmem:[%s803_s0 + $0x10] sm:$0xff]  ;;  %v862_v33 = vld [vmem:[%s5933_s21 + $0x38] sm:$0xff]  ;;  %s5691_s21 = smov 80  }
  0x3b   : > { %4909 = vmatprep.mubr.msk.f32.mxu0 %vm7582_vm2, %v853_v24  ;;  %v842_v34 = vld [vmem:[%s803_s0 + $0x18] sm:$0xff]  ;;  %v843_v35 = vld [vmem:[%s803_s0 + $0x20] sm:$0xff]  ;;  %v844_v36 = vld [vmem:[%s803_s0 + $0x28] sm:$0xff] }
  0x3c   : > { %867 = vperm.xlu0 %5373, %v855_v21   ;;  %877 = vperm.xlu1 %5374, %v857_v22   ;;  %v845_v37 = vld [vmem:[%s803_s0 + $0x30] sm:$0xff]  ;;  %v846_v38 = vld [vmem:[%s803_s0 + $0x38] sm:$0xff]  ;;  %vm6002_vm13 = vmand %vm955_vm9, %vm965_vm12  ;;  %v979_v21 = vsel %vm5992_vm5, 1.0, %v7585_v7  ;;  %v980_v22 = vsel %vm5998_vm8, 1.0, %v7585_v7  ;;  %s825_s0 = scalar_lea.vmem %s7693_s3, %s7614_s23  ;;  %s7613_s3 = smov 48  }
  0x3d   : > { %vm6012_vm1 = vmand %vm957_vm6, %vm967_vm7  ;;  %v4662_v19 = vld [vmem:[%s7563_s10 + $0x4] ss:$0 sm:$0xff]  ;;  %s7731_s23 = sshll.u32 %s5897_s24, 1 }
  0x3e   : > { %4910 = vmatmul.mubr.msk.f32.gmra.mrb[6].mxu0 %vm7582_vm2, %v854_v27  ;;  %vm6008_vm2 = vmand %vm956_vm15, %vm966_vm0  ;;  %v981_v27 = vsel %vm6002_vm13, 1.0, %v7585_v7  ;;  %s829_s5 = scalar_lea.vmem %s7732_s7, %s7731_s23  ;;  %s5704_s7 = smov [#allocation2]  }
  0x3f   : > { %4941 = vmatprep.mubr.msk.f32.mxu0 %vm1368_vm4, %v839_v28  ;;  %vm7708_vm14 = vmmov %vm7707_vm11  ;;  %s5595_s8 = sshll.u32 %s5704_s7, 4  ;;  %s5596_s8 = int_to_ptr.vmem [resolvable:$false] %s5595_s8 }
  0x40   : > { %882 = vperm.xlu0 %5373, %v858_v25   ;;  %887 = vperm.xlu1 %5374, %v859_v26   ;;  %vm7709_vm5 = vmmov %vm7707_vm11 }
  0x41   : > { %vm7710_vm8 = vmmov %vm7709_vm5 }
  0x42   : > { %4942 = vmatmul.mubr.msk.f32.vlgmr.msra.gmra.mrb[8].mxu0 %vm1368_vm4, %v840_v31  ;;  %vm7711_vm9 = vmmov %vm7709_vm5 }
  0x43   : > { %4944 = vmatprep.mubr.msk.f32.mxu0 %vm1368_vm4, %v841_v32  ;;  %vm7712_vm12 = vmmov %vm7709_vm5 }
  0x44   : > { %892 = vperm.xlu0 %5373, %v860_v29   ;;  %897 = vperm.xlu1 %5374, %v861_v30   ;;  %v982_v29 = vsel %vm6008_vm2, 1.0, %v7585_v7  ;;  %vm2248_vm2 = vcmp.gt.f32.partialorder %v5939_v18, 0.0  ;;  %vm7713_vm13 = vmmov %vm7709_vm5 }
  0x45   : > { %vm7714_vm15 = vmmov %vm7709_vm5 }
  0x46   : > { %4945 = vmatmul.mubr.msk.f32.gmra.mrb[10].mxu0 %vm1368_vm4, %v842_v34  ;;  %vm7715_vm0 = vmmov %vm7709_vm5 }
  0x47   : > { %4947 = vmatprep.mubr.msk.f32.mxu0 %vm1368_vm4, %v843_v35  ;;  %v983_v35 = vsel %vm6012_vm1, 1.0, %v7585_v7  ;;  %vm7692_vm1 = vmmov 0   ;;  %vm7716_vm6 = vmmov %vm7715_vm0 }
  0x48   : > { %902 = vperm.xlu0 %5373, %v862_v33   ;;  %vm7717_vm7 = vmmov %vm7715_vm0 }
  0x4a   : > { %4948 = vmatmul.mubr.msk.f32.gmra.mrb[12].mxu0 %vm1368_vm4, %v844_v36 }
  0x4b   : > { %4950 = vmatprep.mubr.msk.f32.mxu0 %vm1368_vm4, %v845_v37 }
  0x4e   : > { %4951 = vmatmul.mubr.msk.f32.gmra.mrb[14].mxu0 %vm1368_vm4, %v846_v38 }
  0xb7   : > { %v6025_v5 = vpop.permute.xlu0 %907  ;;  %v6059_v25 = vpop.permute.xlu1 %872 }
  0xb8   : > { %7681 = vst [vmem:[#allocation14_spill] sm:$0xff] %v6025_v5  ;;  %7682 = vst [vmem:[#allocation15_spill] sm:$0xff] %v6059_v25 }
  0xbb   : > { %v6069_v30 = vpop.permute.xlu0 %867  ;;  %v6080_v38 = vpop.permute.xlu1 %877 }
  0xbc   : > { %7683 = vst [vmem:[#allocation16_spill] sm:$0xff] %v6069_v30  ;;  %7684 = vst [vmem:[#allocation17_spill] sm:$0xff] %v6080_v38 }
  0xbf   : > { %v6090_v46 = vpop.permute.xlu0 %882  ;;  %v6102_v54 = vpop.permute.xlu1 %887 }
  0xc0   : > { %7686 = vst [vmem:[#allocation19_spill] sm:$0xff] %v6090_v46  ;;  %7687 = vst [vmem:[#allocation20_spill] sm:$0xff] %v6102_v54 }
  0xc3   : > { %v6113_v59 = vpop.permute.xlu0 %892  ;;  %v6129_v2 = vpop.permute.xlu1 %897 }
  0xc4   : > { %7688 = vst [vmem:[#allocation21_spill] sm:$0xff] %v6113_v59  ;;  %7689 = vst [vmem:[#allocation22_spill] sm:$0xff] %v6129_v2 }
 0x105   : > { %v4902_v61 = vpop.f32.mrb[0].mxu0 }
 0x106   : > { %v1092_v62 = vpop.f32.mrb[1].mxu0  ;;  %v1098_v28 = vadd.f32 %v4902_v61, %v4662_v19 }
 0x107   : > { %v1093_v23 = vadd.f32 %v4662_v19, %v1092_v62 }
 0x108   : > { %v1132_v36 = vmax.f32 %v1098_v28, 0.0 }
 0x109   : > { %v1226_v63 = vpop.f32.mrb[0].mxu1  ;;  %v4905_v8 = vpop.f32.mrb[2].mxu0  ;;  %v1131_v31 = vmax.f32 %v1093_v23, 0.0 }
 0x10a   : > { %v1227_v0 = vadd.f32 %v4672_v60, %v1226_v63  ;;  %v4922_v1 = vpop.f32.mrb[1].mxu1  ;;  %v1102_v12 = vpop.f32.mrb[3].mxu0  ;;  %v1108_v37 = vadd.f32 %v4905_v8, %v4662_v19  ;;  %v6095_v47 = vmul.f32 %v1132_v36, %v6059_v25  ;;  %v1800_v36 = vld [vmem:[%s7565_s12] sm:$0xff] }
 0x10b   : > { %v1103_v32 = vadd.f32 %v4662_v19, %v1102_v12  ;;  %v6083_v39 = vmul.f32 %v1131_v31, %v6069_v30  ;;  %v6136_v8 = vpop.permute.xlu0 %902  ;;  %v2006_v12 = vld [vmem:[%s7566_s13 + $0x18] sm:$0xff] }
 0x10c   : > { %v6028_v6 = vmul.f32 %v1227_v0, %v6025_v5  ;;  %v1134_v48 = vmax.f32 %v1108_v37, 0.0  ;;  %7690 = vst [vmem:[#allocation23_spill] sm:$0xff] %v6136_v8  ;;  %v1801_v37 = vld [vmem:[%s7565_s12 + $0x8] sm:$0xff] }
 0x10d   : > { %v4908_v17 = vpop.f32.mrb[4].mxu0  ;;  %7685 = vst [vmem:[#allocation18_spill] sm:$0xff] %v6083_v39  ;;  %v1133_v41 = vmax.f32 %v1103_v32, 0.0 }
 0x10e   : > { %1984 = vrot.lane.b32.xlu0 %v6028_v6, %s5691_s21  ;;  %1499 = vrot.lane.b32.xlu1 %v6028_v6, %s5692_s29  ;;  %v1112_v20 = vpop.f32.mrb[5].mxu0  ;;  %v1118_v49 = vadd.f32 %v4908_v17, %v4662_v19  ;;  %v6111_v56 = vmul.f32 %v1134_v48, %v6090_v46 }
 0x10f   : > { %4923 = vmatprep.subr.mxu1 %v6028_v6  ;;  %v1113_v43 = vadd.f32 %v4662_v19, %v1112_v20  ;;  %v6098_v50 = vmul.f32 %v1133_v41, %v6080_v38  ;;  %v5192_v41 = vpack.c.bf16 %v1801_v37, %v1800_v36 }
 0x110   : > { %4924 = vmatpush3.msra.mxu1 %v6028_v6  ;;  %v1136_v57 = vmax.f32 %v1118_v49, 0.0 }
 0x111   : > { %4926 = vmatmul.mubr.msk.f32.vlgmr.msra.gmra.mrb[2].mxu1 %vm1231_vm10, %v977_v14  ;;  %5189 = vmatprep.subr.bf16.mxu1 %v5188_v13  ;;  %v4911_v24 = vpop.f32.mrb[6].mxu0  ;;  %v1135_v51 = vmax.f32 %v1113_v43, 0.0 }
 0x112   : > { %4928 = vmatprep.mubr.msk.f32.mxu1 %vm1231_vm10, %v978_v15  ;;  %5191 = vmatpush3.bf16.msra.mxu1 %v5188_v13  ;;  %v1122_v26 = vpop.f32.mrb[7].mxu0  ;;  %v1128_v58 = vadd.f32 %v4911_v24, %v4662_v19  ;;  %v6127_v0 = vmul.f32 %v1136_v57, %v6113_v59  ;;  %v5200_v13 = vpack.c.bf16 %v2006_v12, %v2005_v10 }
 0x113   : > { %5197 = vmatprep.subr.bf16.mxu1 %v5196_v16  ;;  %v1123_v52 = vadd.f32 %v4662_v19, %v1122_v26  ;;  %v6116_v60 = vmul.f32 %v1135_v51, %v6102_v54  ;;  %5193 = vmatprep.subr.bf16.mxu0 %v5192_v41 }
 0x114   : > { %v1138_v1 = vmax.f32 %v1128_v58, 0.0  ;;  %v4691_v58 = vld [vmem:[%s7564_s11 + $0x10] ss:$0 sm:$0xff]  ;;  %5195 = vmatpush3.bf16.msra.mxu0 %v5192_v41 }
 0x115   : > { %4929 = vmatmul.mubr.msk.f32.gmra.mrb[4].mxu1 %vm1231_vm10, %v979_v21  ;;  %v6071_v33 = vpop.f32.mrb[8].mxu0  ;;  %v1137_v61 = vmax.f32 %v1123_v52, 0.0  ;;  %5204 = vmatprep.subr.bf16.mxu0 %v7587_v3 }
 0x116   : > { %4931 = vmatprep.mubr.msk.f32.mxu1 %vm1231_vm10, %v980_v22  ;;  %v6074_v34 = vpop.f32.mrb[9].mxu0  ;;  %v6141_v9 = vmul.f32 %v1138_v1, %v6136_v8 }
 0x117   : > { %v6132_v4 = vmul.f32 %v1137_v61, %v6129_v2 }
 0x118   : > { %7691 = vst [vmem:[#allocation24_spill] sm:$0xff] %v6141_v9 }
 0x119   : > { %4932 = vmatmul.mubr.msk.f32.gmra.mrb[6].mxu1 %vm1231_vm10, %v981_v27  ;;  %v6085_v44 = vpop.f32.mrb[10].mxu0 }
 0x11a   : > { %4934 = vmatprep.mubr.msk.f32.mxu1 %vm1231_vm10, %v982_v29  ;;  %v6088_v45 = vpop.f32.mrb[11].mxu0 }
 0x11d   : > { %4935 = vmatmul.mubr.msk.f32.gmra.mrb[8].mxu1 %vm1231_vm10, %v983_v35  ;;  %v6100_v53 = vpop.f32.mrb[12].mxu0 }
 0x11e   : > { %4957 = vmatprep.mubr.msk.f32.mxu1 %vm1368_vm4, %v6083_v39  ;;  %v6106_v55 = vpop.f32.mrb[13].mxu0 }
 0x121   : > { %4958 = vmatmul.mubr.msk.f32.vlgmr.msra.gmra.mrb[10].mxu1 %vm1368_vm4, %v6095_v47  ;;  %v6118_v62 = vpop.f32.mrb[14].mxu0 }
 0x122   : > { %4960 = vmatprep.mubr.msk.f32.mxu1 %vm1368_vm4, %v6098_v50  ;;  %5199 = vmatpush3.bf16.msra.mxu1 %v5196_v16  ;;  %v6122_v63 = vpop.f32.mrb[15].mxu0 }
 0x123   : > { %5201 = vmatprep.subr.bf16.mxu1 %v5200_v13 }
 0x125   : > { %4961 = vmatmul.mubr.msk.f32.gmra.mrb[12].mxu1 %vm1368_vm4, %v6111_v56 }
 0x126   : > { %4963 = vmatprep.mubr.msk.f32.mxu1 %vm1368_vm4, %v6116_v60  ;;  %5203 = vmatpush3.bf16.msra.mxu1 %v5200_v13 }
 0x127   : > { %5216 = vmatprep.subr.bf16.mxu1 %v7587_v3 }
 0x129   : > { %4964 = vmatmul.mubr.msk.f32.gmra.mrb[14].mxu1 %vm1368_vm4, %v6127_v0 }
 0x12a   : > { %4966 = vmatprep.mubr.msk.f32.mxu1 %vm1368_vm4, %v6132_v4 }
 0x12d   : > { %4967 = vmatmul.mubr.msk.f32.gmra.mrb[16].mxu1 %vm1368_vm4, %v6141_v9 }
 0x180   : > { %v1985_v14 = vpop.permute.xlu0 %1984 }
 0x1e4   : > { %v4927_v15 = vpop.f32.mrb[2].mxu1 }
 0x1e5   : > { %v1988_v16 = vmul.f32 %v4927_v15, %v1985_v14  ;;  %1520 = vrot.lane.b32.xlu1 %v4927_v15, %s5693_s27  ;;  %v1322_v17 = vpop.f32.mrb[3].mxu1 }
 0x1e6   : > { %v1987_v19 = vmul.f32 %v1985_v14, %v1322_v17  ;;  %1518 = vrot.lane.b32.xlu0 %v1322_v17, %s5693_s27 }
 0x1e7   : > { %v1996_v22 = vmul.f32 0.25, %v1988_v16 }
 0x1e8   : > { %v1995_v20 = vmul.f32 0.25, %v1987_v19  ;;  %v4930_v21 = vpop.f32.mrb[4].mxu1 }
 0x1e9   : > { %v1990_v23 = vmul.f32 %v4930_v21, %v1985_v14  ;;  %v1332_v24 = vpop.f32.mrb[5].mxu1 }
 0x1ea   : > { %v1989_v26 = vmul.f32 %v1985_v14, %v1332_v24  ;;  %4993 = vmatprep.mubr.msk.f32.mxu1 %vm1156_vm3, %v1995_v20  ;;  %1524 = vrot.lane.b32.xlu0 %v4930_v21, %s5693_s27 }
 0x1eb   : > { %4994 = vmatmul.mubr.msk.f32.vlgmr.msra.gmra.mrb[18].mxu1 %vm1156_vm3, %v1996_v22  ;;  %v1998_v29 = vmul.f32 0.25, %v1990_v23 }
 0x1ec   : > { %v1997_v27 = vmul.f32 0.25, %v1989_v26  ;;  %v4933_v28 = vpop.f32.mrb[6].mxu1 }
 0x1ed   : > { %v1992_v31 = vmul.f32 %v4933_v28, %v1985_v14  ;;  %v1342_v32 = vpop.f32.mrb[7].mxu1 }
 0x1ee   : > { %v1991_v35 = vmul.f32 %v1985_v14, %v1342_v32  ;;  %1522 = vrot.lane.b32.xlu0 %v1332_v24, %s5693_s27  ;;  %4996 = vmatprep.mubr.msk.f32.mxu1 %vm1156_vm3, %v1997_v27 }
 0x1ef   : > { %4997 = vmatmul.mubr.msk.f32.gmra.mrb[20].mxu1 %vm1156_vm3, %v1998_v29  ;;  %v2000_v49 = vmul.f32 0.25, %v1992_v31  ;;  %v4682_v31 = vld [vmem:[%s7562_s9 + $0x10] ss:$0 sm:$0xff] }
 0x1f0   : > { %v1999_v43 = vmul.f32 0.25, %v1991_v35  ;;  %v4936_v48 = vpop.f32.mrb[8].mxu1  ;;  %v1465_v35 = vadd.f32 %v6071_v33, %v4682_v31  ;;  %v1460_v41 = vadd.f32 %v4682_v31, %v6074_v34  ;;  %v1470_v33 = vadd.f32 %v4682_v31, %v6088_v45 }
 0x1f1   : > { %v1994_v51 = vmul.f32 %v4936_v48, %v1985_v14  ;;  %1532 = vrot.lane.b32.xlu1 %v4936_v48, %s5693_s27  ;;  %v1352_v52 = vpop.f32.mrb[9].mxu1  ;;  %v1495_v34 = vadd.f32 %v6118_v62, %v4682_v31 }
 0x1f2   : > { %v1993_v57 = vmul.f32 %v1985_v14, %v1352_v52  ;;  %1528 = vrot.lane.b32.xlu0 %v4933_v28, %s5693_s27  ;;  %4999 = vmatprep.mubr.msk.f32.mxu1 %vm1156_vm3, %v1999_v43 }
 0x1f3   : > { %5000 = vmatmul.mubr.msk.f32.gmra.mrb[22].mxu1 %vm1156_vm3, %v2000_v49  ;;  %v2002_v10 = vmul.f32 0.25, %v1994_v51  ;;  %v1475_v51 = vadd.f32 %v6085_v44, %v4682_v31 }
 0x1f4   : > { %v2001_v61 = vmul.f32 0.25, %v1993_v57  ;;  %v4959_v1 = vpop.f32.mrb[10].mxu1 }
 0x1f5   : > { %v6174_v12 = vadd.f32 %v4959_v1, %v4691_v58  ;;  %v1655_v13 = vpop.f32.mrb[11].mxu1 }
 0x1f6   : > { %1526 = vrot.lane.b32.xlu0 %v1342_v32, %s5693_s27  ;;  %5002 = vmatprep.mubr.msk.f32.mxu1 %vm1156_vm3, %v2001_v61  ;;  %v6183_v15 = vadd.f32 %v4691_v58, %v1655_v13  ;;  %v1500_v32 = vpop.permute.xlu1 %1499 }
 0x1f7   : > { %5003 = vmatmul.mubr.msk.f32.gmra.mrb[24].mxu1 %vm1156_vm3, %v2002_v10  ;;  %1712 = vrot.lane.b32.xlu1 %v6174_v12, %s5694_s2  ;;  %v1503_v43 = vmul.f32 %v1500_v32, %v1465_v35  ;;  %v1502_v57 = vmul.f32 %v1500_v32, %v1460_v41  ;;  %v1505_v13 = vmul.f32 %v1500_v32, %v1475_v51 }
 0x1f8   : > { %v4962_v14 = vpop.f32.mrb[12].mxu1  ;;  %5056 = vmatprep.mubr.msk.f32.mxu1 %vm7692_vm1, %v7585_v7  ;;  %v1504_v35 = vmul.f32 %v1500_v32, %v1470_v33  ;;  %v1509_v45 = vmul.f32 %v1500_v32, %v1495_v34 }
 0x1f9   : > { %v1665_v16 = vpop.f32.mrb[13].mxu1  ;;  %v6188_v19 = vadd.f32 %v4962_v14, %v4691_v58 }
 0x1fa   : > { %1530 = vrot.lane.b32.xlu0 %v1352_v52, %s5693_s27  ;;  %v6196_v23 = vadd.f32 %v4691_v58, %v1665_v16  ;;  %v1485_v52 = vadd.f32 %v6100_v53, %v4682_v31 }
 0x1fb   : > { %1710 = vrot.lane.b32.xlu1 %v6183_v15, %s5694_s2 }
 0x1fc   : > { %v4965_v17 = vpop.f32.mrb[14].mxu1  ;;  %v1507_v14 = vmul.f32 %v1500_v32, %v1485_v52 }
 0x1fd   : > { %v6190_v20 = vadd.f32 %v4965_v17, %v4691_v58  ;;  %v1675_v21 = vpop.f32.mrb[15].mxu1  ;;  %v1480_v17 = vadd.f32 %v4682_v31, %v6106_v55 }
 0x1fe   : > { %v6204_v27 = vadd.f32 %v4691_v58, %v1675_v21 }
 0x1ff   : > { %1720 = vrot.lane.b32.xlu0 %v6190_v20, %s5694_s2  ;;  %1716 = vrot.lane.b32.xlu1 %v6188_v19, %s5694_s2 }
 0x200   : > { %v4968_v22 = vpop.f32.mrb[16].mxu1 }
 0x201   : > { %v6198_v24 = vadd.f32 %v4968_v22, %v4691_v58  ;;  %v1685_v26 = vpop.f32.mrb[17].mxu1 }
 0x202   : > { %v6208_v28 = vadd.f32 %v4691_v58, %v1685_v26 }
 0x203   : > { %1724 = vrot.lane.b32.xlu0 %v6198_v24, %s5694_s2  ;;  %1714 = vrot.lane.b32.xlu1 %v6196_v23, %s5694_s2 }
 0x207   : > { %1718 = vrot.lane.b32.xlu1 %v6204_v27, %s5694_s2 }
 0x20b   : > { %1722 = vrot.lane.b32.xlu1 %v6208_v28, %s5694_s2 }
 0x257   : > { %v1521_v37 = vpop.permute.xlu1 %1520 }
 0x258   : > { %v1519_v29 = vpop.permute.xlu0 %1518  ;;  %v1543_v49 = vmul.f32 %v1521_v37, %v1503_v43  ;;  %v1506_v43 = vmul.f32 %v1500_v32, %v1480_v17 }
 0x259   : > { %v1542_v1 = vmul.f32 %v1519_v29, %v1502_v57 }
 0x25a   : > { %v1551_v10 = vmul.f32 %v1543_v49, %v6059_v25 }
 0x25b   : > { %v1550_v29 = vmul.f32 %v1542_v1, %v6069_v30  ;;  %v1490_v1 = vadd.f32 %v4682_v31, %v6122_v63 }
 0x25c   : > { %v1525_v36 = vpop.permute.xlu0 %1524  ;;  %v1695_v22 = vadd.f32 %v6174_v12, %v1551_v10 }
 0x25d   : > { %v1545_v44 = vmul.f32 %v1525_v36, %v1505_v13  ;;  %v1694_v52 = vadd.f32 %v6183_v15, %v1550_v29  ;;  %v6240_v13 = vld [vmem:[%s825_s0 + $0x1] ss:$0 sm:$0xff] }
 0x25f   : > { %v1553_v49 = vmul.f32 %v1545_v44, %v6090_v46 }
 0x260   : > { %v1523_v48 = vpop.permute.xlu0 %1522 }
 0x261   : > { %v1544_v41 = vmul.f32 %v1523_v48, %v1504_v35  ;;  %v1697_v17 = vadd.f32 %v6188_v19, %v1553_v49 }
 0x263   : > { %v1533_v61 = vpop.permute.xlu1 %1532 }
 0x264   : > { %v1529_v58 = vpop.permute.xlu0 %1528 }
 0x265   : > { %v1547_v21 = vmul.f32 %v1529_v58, %v1507_v14  ;;  %v6237_v58 = vld [vmem:[%s825_s0] ss:$0 sm:$0xff]  ;;  %s4739_s0 = sshll.u32 %s5844_s4, 7 }
 0x267   : > { %v1555_v36 = vmul.f32 %v1547_v21, %v6113_v59  ;;  %v1552_v21 = vmul.f32 %v1544_v41, %v6080_v38 }
 0x268   : > { %v1527_v16 = vpop.permute.xlu0 %1526 }
 0x269   : > { %v1713_v53 = vpop.permute.xlu1 %1712  ;;  %v1546_v33 = vmul.f32 %v1527_v16, %v1506_v43  ;;  %v1699_v34 = vadd.f32 %v6190_v20, %v1555_v36  ;;  %v1508_v16 = vmul.f32 %v1500_v32, %v1490_v1 }
 0x26a   : > { %v1735_v26 = vmul.f32 %v1713_v53, %v1551_v10  ;;  %v1549_v10 = vmul.f32 %v1533_v61, %v1509_v45 }
 0x26c   : > { %v1743_v62 = vadd.f32 %v1735_v26, %v1695_v22  ;;  %v1531_v37 = vpop.permute.xlu0 %1530  ;;  %v1557_v26 = vmul.f32 %v1549_v10, %v6136_v8 }
 0x26d   : > { %v1711_v55 = vpop.permute.xlu1 %1710  ;;  %v1548_v43 = vmul.f32 %v1531_v37, %v1508_v16 }
 0x26e   : > { %v6234_v51 = vmul.f32 %v1743_v62, %v6059_v25  ;;  %v1734_v57 = vmul.f32 %v1711_v55, %v1550_v29  ;;  %v1554_v29 = vmul.f32 %v1546_v33, %v6102_v54  ;;  %v1701_v10 = vadd.f32 %v6198_v24, %v1557_v26 }
 0x26f   : > { %v1556_v16 = vmul.f32 %v1548_v43, %v6129_v2 }
 0x270   : > { %v1742_v48 = vadd.f32 %v1734_v57, %v1694_v52  ;;  %v1765_v53 = vadd.f32 %v6237_v58, %v6234_v51  ;;  %v1777_v61 = vmul.f32 %v6240_v13, %v6234_v51 }
 0x271   : > { %v1721_v14 = vpop.permute.xlu0 %1720  ;;  %v1717_v44 = vpop.permute.xlu1 %1716 }
 0x272   : > { %v6248_v22 = vmul.f32 %v1742_v48, %v6069_v30  ;;  %v1739_v63 = vmul.f32 %v1721_v14, %v1555_v36  ;;  %v1737_v31 = vmul.f32 %v1717_v44, %v1553_v49  ;;  %v1696_v36 = vadd.f32 %v6196_v23, %v1552_v21 }
 0x273   : > { %v1785_v1 = vadd.f32 %v1777_v61, %v1765_v53 }
 0x274   : > { %v1747_v35 = vadd.f32 %v1739_v63, %v1699_v34  ;;  %v1745_v45 = vadd.f32 %v1737_v31, %v1697_v17  ;;  %v1764_v62 = vadd.f32 %v6237_v58, %v6248_v22  ;;  %v1776_v41 = vmul.f32 %v6240_v13, %v6248_v22 }
 0x275   : > { %v1725_v55 = vpop.permute.xlu0 %1724  ;;  %v1715_v49 = vpop.permute.xlu1 %1714  ;;  %v1698_v34 = vadd.f32 %v6204_v27, %v1554_v29  ;;  %v6278_v61 = vmul.f32 %v1785_v1, %v6059_v25 }
 0x276   : > { %v6260_v52 = vmul.f32 %v1745_v45, %v6090_v46  ;;  %v1741_v32 = vmul.f32 %v1725_v55, %v1557_v26  ;;  %v1736_v57 = vmul.f32 %v1715_v49, %v1552_v21  ;;  %v1784_v33 = vadd.f32 %v1776_v41, %v1764_v62 }
 0x277   : > { %v6264_v48 = vmul.f32 %v1747_v35, %v6113_v59  ;;  %v1700_v49 = vadd.f32 %v6208_v28, %v1556_v16 }
 0x278   : > { %v1744_v14 = vadd.f32 %v1736_v57, %v1696_v36  ;;  %v1749_v37 = vadd.f32 %v1741_v32, %v1701_v10  ;;  %v6268_v44 = vmul.f32 %v1784_v33, %v6069_v30  ;;  %v1767_v63 = vadd.f32 %v6237_v58, %v6260_v52 }
 0x279   : > { %7694 = vst [vmem:[#allocation25_spill] sm:$0xff] %v6264_v48  ;;  %v1719_v17 = vpop.permute.xlu1 %1718  ;;  %v1779_v21 = vmul.f32 %v6240_v13, %v6260_v52  ;;  %v1769_v43 = vadd.f32 %v6237_v58, %v6264_v48  ;;  %v1781_v55 = vmul.f32 %v6240_v13, %v6264_v48 }
 0x27a   : > { %v6275_v53 = vmul.f32 %v1744_v14, %v6080_v38  ;;  %v1738_v31 = vmul.f32 %v1719_v17, %v1554_v29  ;;  %4973 = vmatprep.mubr.msk.f32.mxu0 %vm1368_vm4, %v6268_v44  ;;  %v6290_v29 = vmul.f32 %v1749_v37, %v6136_v8 }
 0x27b   : > { %4974 = vmatmul.mubr.msk.f32.vlgmr.msra.gmra.mrb[16].mxu0 %vm1368_vm4, %v6278_v61  ;;  %v1787_v41 = vadd.f32 %v1779_v21, %v1767_v63  ;;  %v1789_v37 = vadd.f32 %v1781_v55, %v1769_v43 }
 0x27c   : > { %v1746_v26 = vadd.f32 %v1738_v31, %v1698_v34  ;;  %v1766_v35 = vadd.f32 %v6237_v58, %v6275_v53  ;;  %v1778_v45 = vmul.f32 %v6240_v13, %v6275_v53  ;;  %7695 = vst [vmem:[#allocation26_spill] sm:$0xff] %v6290_v29  ;;  %v1771_v17 = vadd.f32 %v6237_v58, %v6290_v29 }
 0x27d   : > { %v1723_v62 = vpop.permute.xlu1 %1722  ;;  %v6308_v34 = vmul.f32 %v1787_v41, %v6090_v46  ;;  %v1783_v63 = vmul.f32 %v6240_v13, %v6290_v29 }
 0x27e   : > { %v6297_v36 = vmul.f32 %v1746_v26, %v6102_v54  ;;  %v1740_v32 = vmul.f32 %v1723_v62, %v1556_v16  ;;  %v1786_v57 = vadd.f32 %v1778_v45, %v1766_v35  ;;  %v6329_v45 = vmul.f32 %v1789_v37, %v6113_v59  ;;  %v4702_v37 = vld [vmem:[%s7565_s12 + $0x10] ss:$0 sm:$0xff] }
 0x27f   : > { %v1791_v62 = vadd.f32 %v1783_v63, %v1771_v17 }
 0x280   : > { %7696 = vst [vmem:[#allocation27_spill] sm:$0xff] %v6297_v36  ;;  %v1748_v1 = vadd.f32 %v1740_v32, %v1700_v49  ;;  %v6301_v10 = vmul.f32 %v1786_v57, %v6080_v38  ;;  %v1768_v33 = vadd.f32 %v6237_v58, %v6297_v36  ;;  %v1780_v14 = vmul.f32 %v6240_v13, %v6297_v36 }
 0x281   : > { %v6339_v55 = vmul.f32 %v1791_v62, %v6136_v8 }
 0x282   : > { %v6315_v21 = vmul.f32 %v1748_v1, %v6129_v2  ;;  %4976 = vmatprep.mubr.msk.f32.mxu0 %vm1368_vm4, %v6301_v10  ;;  %v1788_v31 = vadd.f32 %v1780_v14, %v1768_v33 }
 0x283   : > { %4977 = vmatmul.mubr.msk.f32.gmra.mrb[18].mxu0 %vm1368_vm4, %v6308_v34 }
 0x284   : > { %7697 = vst [vmem:[#allocation28_spill] sm:$0xff] %v6315_v21  ;;  %v6322_v16 = vmul.f32 %v1788_v31, %v6102_v54  ;;  %v1770_v26 = vadd.f32 %v6237_v58, %v6315_v21  ;;  %v1782_v35 = vmul.f32 %v6240_v13, %v6315_v21 }
 0x286   : > { %4979 = vmatprep.mubr.msk.f32.mxu0 %vm1368_vm4, %v6322_v16  ;;  %v1790_v41 = vadd.f32 %v1782_v35, %v1770_v26 }
 0x287   : > { %4980 = vmatmul.mubr.msk.f32.gmra.mrb[20].mxu0 %vm1368_vm4, %v6329_v45 }
 0x288   : > { %v6336_v43 = vmul.f32 %v1790_v41, %v6129_v2 }
 0x28a   : > { %4982 = vmatprep.mubr.msk.f32.mxu0 %vm1368_vm4, %v6336_v43 }
 0x28b   : > { %4983 = vmatmul.mubr.msk.f32.gmra.mrb[22].mxu0 %vm1368_vm4, %v6339_v55 }
 0x28c   : > { %5021 = vmatprep.mubr.msk.f32.mxu0 %vm7692_vm1, %v7585_v7 }
 0x2be   : > { %v4995_v58 = vpop.f32.mrb[18].mxu1 }
 0x2bf   : > { %v2097_v13 = vpop.f32.mrb[19].mxu1  ;;  %v2137_v63 = vmul.f32 %v4995_v58, %v6059_v25 }
 0x2c0   : > { %v2136_v35 = vmul.f32 %v2097_v13, %v6069_v30 }
 0x2c2   : > { %v4998_v49 = vpop.f32.mrb[20].mxu1 }
 0x2c3   : > { %v2107_v32 = vpop.f32.mrb[21].mxu1 }
 0x2c6   : > { %v5001_v57 = vpop.f32.mrb[22].mxu1 }
 0x2c7   : > { %v2117_v1 = vpop.f32.mrb[23].mxu1 }
 0x2c8   : > { %v2140_v21 = vmul.f32 %v2117_v1, %v6102_v54 }
 0x2ca   : > { %v5004_v33 = vpop.f32.mrb[24].mxu1 }
 0x2cb   : > { %v2127_v14 = vpop.f32.mrb[25].mxu1 }
 0x34e   : > { %v4975_v17 = vpop.f32.mrb[16].mxu0 }
 0x34f   : > { %v6351_v31 = vadd.f32 %v4975_v17, %v4702_v37  ;;  %v1897_v26 = vpop.f32.mrb[17].mxu0  ;;  %v2139_v17 = vmul.f32 %v4998_v49, %v6090_v46 }
 0x350   : > { %v6354_v62 = vadd.f32 %v4702_v37, %v1897_v26  ;;  %v2138_v26 = vmul.f32 %v2107_v32, %v6080_v38 }
 0x351   : > { %7698 = vst [vmem:[#allocation29_spill] sm:$0xff] %v6351_v31  ;;  %v2145_v41 = vmul.f32 %v2137_v63, %v6351_v31 }
 0x352   : > { %7699 = vst [vmem:[#allocation30_spill] sm:$0xff] %v6354_v62  ;;  %v2144_v7 = vmul.f32 %v2136_v35, %v6354_v62 }
 0x353   : > { %v6358_v3 = vadd.f32 %v2145_v41, %v2137_v63  ;;  %v2141_v41 = vmul.f32 %v5001_v57, %v6113_v59  ;;  %v2143_v57 = vmul.f32 %v5004_v33, %v6136_v8 }
 0x354   : > { %v6360_v11 = vadd.f32 %v2144_v7, %v2136_v35 }
 0x355   : > { %2170 = vrot.lane.b32.xlu0 %v6358_v3, %s5695_s25 }
 0x356   : > { %v4978_v58 = vpop.f32.mrb[18].mxu0  ;;  %2168 = vrot.lane.b32.xlu1 %v6360_v11, %s5695_s25 }
 0x357   : > { %v6365_v29 = vadd.f32 %v4978_v58, %v4702_v37  ;;  %v1907_v13 = vpop.f32.mrb[19].mxu0 }
 0x358   : > { %v6370_v31 = vadd.f32 %v4702_v37, %v1907_v13 }
 0x359   : > { %7700 = vst [vmem:[#allocation31_spill] sm:$0xff] %v6365_v29  ;;  %v2147_v7 = vmul.f32 %v2139_v17, %v6365_v29 }
 0x35a   : > { %7701 = vst [vmem:[#allocation32_spill] sm:$0xff] %v6370_v31  ;;  %v2146_v63 = vmul.f32 %v2138_v26, %v6370_v31  ;;  %v4981_v35 = vpop.f32.mrb[20].mxu0 }
 0x35b   : > { %v6375_v62 = vadd.f32 %v4981_v35, %v4702_v37  ;;  %v1917_v49 = vpop.f32.mrb[21].mxu0  ;;  %v6377_v58 = vadd.f32 %v2147_v7, %v2139_v17 }
 0x35c   : > { %v6380_v48 = vadd.f32 %v4702_v37, %v1917_v49  ;;  %v6382_v36 = vadd.f32 %v2146_v63, %v2138_v26  ;;  %v2142_v26 = vmul.f32 %v2127_v14, %v6129_v2 }
 0x35d   : > { %7702 = vst [vmem:[#allocation33_spill] sm:$0xff] %v6375_v62  ;;  %v2149_v32 = vmul.f32 %v2141_v41, %v6375_v62  ;;  %2174 = vrot.lane.b32.xlu0 %v6377_v58, %s5695_s25 }
 0x35e   : > { %7703 = vst [vmem:[#allocation34_spill] sm:$0xff] %v6380_v48  ;;  %v2148_v13 = vmul.f32 %v2140_v21, %v6380_v48  ;;  %v4984_v29 = vpop.f32.mrb[22].mxu0  ;;  %2172 = vrot.lane.b32.xlu1 %v6382_v36, %s5695_s25 }
 0x35f   : > { %v6391_v17 = vadd.f32 %v4984_v29, %v4702_v37  ;;  %v1927_v1 = vpop.f32.mrb[23].mxu0  ;;  %v6393_v7 = vadd.f32 %v2149_v32, %v2141_v41 }
 0x360   : > { %v6396_v63 = vadd.f32 %v4702_v37, %v1927_v1  ;;  %v6398_v35 = vadd.f32 %v2148_v13, %v2140_v21  ;;  %v7706_v21 = vmov 0  }
 0x361   : > { %7704 = vst [vmem:[#allocation35_spill] sm:$0xff] %v6391_v17  ;;  %v2151_v49 = vmul.f32 %v2143_v57, %v6391_v17  ;;  %2178 = vrot.lane.b32.xlu0 %v6393_v7, %s5695_s25  ;;  %v2249_v14 = vsel %vm2248_vm2, 1, %v7706_v21  ;;  %vm7718_vm2 = vmmov %vm7715_vm0 }
 0x362   : > { %7705 = vst [vmem:[#allocation36_spill] sm:$0xff] %v6396_v63  ;;  %v2150_v62 = vmul.f32 %v2142_v26, %v6396_v63  ;;  %2176 = vrot.lane.b32.xlu1 %v6398_v35, %s5695_s25 }
 0x363   : > { %v6406_v29 = vadd.f32 %v2151_v49, %v2143_v57 }
 0x364   : > { %v6408_v33 = vadd.f32 %v2150_v62, %v2142_v26 }
 0x365   : > { %2182 = vrot.lane.b32.xlu0 %v6406_v29, %s5695_s25 }
 0x366   : > { %2180 = vrot.lane.b32.xlu1 %v6408_v33, %s5695_s25 }
 0x36a   : > { %2251 = vperm.xlu1 %5374, %v2249_v14  }
 0x3c7   : > { %v2171_v37 = vpop.permute.xlu0 %2170 }
 0x3c8   : > { %v2193_v41 = vmul.f32 %v2171_v37, %v6174_v12  ;;  %v2169_v32 = vpop.permute.xlu1 %2168 }
 0x3c9   : > { %v2192_v13 = vmul.f32 %v2169_v32, %v6183_v15 }
 0x3ca   : > { %2210 = vrot.lane.b32.xlu1 %v2193_v41, %s5693_s27  ;;  %v7603_v41 = vmov 2  }
 0x3cb   : > { %2208 = vrot.lane.b32.xlu0 %v2192_v13, %s5693_s27 }
 0x3cc   : > { %5376 = vset.pattern.permute.xlu0 %v7603_v41 }
 0x3cf   : > { %v2175_v18 = vpop.permute.xlu0 %2174 }
 0x3d0   : > { %v2195_v62 = vmul.f32 %v2175_v18, %v6188_v19  ;;  %v2173_v57 = vpop.permute.xlu1 %2172 }
 0x3d1   : > { %v2194_v1 = vmul.f32 %v2173_v57, %v6196_v23 }
 0x3d2   : > { %2214 = vrot.lane.b32.xlu1 %v2195_v62, %s5693_s27 }
 0x3d3   : > { %v2179_v26 = vpop.permute.xlu0 %2178  ;;  %2212 = vrot.lane.b32.xlu0 %v2194_v1, %s5693_s27 }
 0x3d4   : > { %v2197_v12 = vmul.f32 %v2179_v26, %v6190_v20  ;;  %v2177_v49 = vpop.permute.xlu1 %2176 }
 0x3d5   : > { %v2196_v15 = vmul.f32 %v2177_v49, %v6204_v27 }
 0x3d6   : > { %2218 = vrot.lane.b32.xlu1 %v2197_v12, %s5693_s27 }
 0x3d7   : > { %v2183_v14 = vpop.permute.xlu0 %2182  ;;  %2216 = vrot.lane.b32.xlu0 %v2196_v15, %s5693_s27 }
 0x3d8   : > { %v2199_v19 = vmul.f32 %v2183_v14, %v6198_v24  ;;  %v2181_v37 = vpop.permute.xlu1 %2180 }
 0x3d9   : > { %v2198_v23 = vmul.f32 %v2181_v37, %v6208_v28 }
 0x3da   : > { %2222 = vrot.lane.b32.xlu1 %v2199_v19, %s5693_s27 }
 0x3db   : > { %2220 = vrot.lane.b32.xlu0 %v2198_v23, %s5693_s27 }
 0x3e9   : > { %v6433_v20 = vpop.permute.xlu1 %2251 }
 0x3ea   : > { %vm2253_vm10 = vcmp.eq.s32.totalorder %v6433_v20, 1 }
 0x43c   : > { %v2211_v27 = vpop.permute.xlu1 %2210 }
 0x43d   : > { %v2233_v32 = vadd.f32 %v2211_v27, %v6358_v3  ;;  %v2209_v13 = vpop.permute.xlu0 %2208 }
 0x43e   : > { %v2232_v18 = vadd.f32 %v2209_v13, %v6360_v11 }
 0x43f   : > { %v2241_v24 = vmul.f32 %v2233_v32, %v6059_v25 }
 0x440   : > { %v2240_v28 = vmul.f32 %v2232_v18, %v6069_v30 }
 0x441   : > { %v2255_v62 = vsel %vm2253_vm10, %v2241_v24, -1e+30 }
 0x442   : > { %v2269_v57 = vsel %vm7707_vm11, %v2255_v62, -inf  ;;  %v2254_v1 = vsel %vm2253_vm10, %v2240_v28, -1e+30  ;;  %vm7720_vm11 = vmmov %vm7715_vm0 }
 0x443   : > { %v2270_v26 = vrot.slane %v2269_v57, 4  ;;  %v2262_v3 = vsel %vm7708_vm14, %v2254_v1, -inf  ;;  %vm7721_vm14 = vmmov %vm7715_vm0 }
 0x444   : > { %v2215_v12 = vpop.permute.xlu1 %2214  ;;  %v2263_v49 = vrot.slane %v2262_v3, 4 }
 0x445   : > { %v2235_v11 = vadd.f32 %v2215_v12, %v6377_v58  ;;  %v2213_v15 = vpop.permute.xlu0 %2212  ;;  %v2271_v14 = vmax.f32 %v2269_v57, %v2270_v26 }
 0x446   : > { %v2234_v19 = vadd.f32 %v2213_v15, %v6382_v36  ;;  %v2264_v37 = vmax.f32 %v2262_v3, %v2263_v49 }
 0x447   : > { %v2243_v23 = vmul.f32 %v2235_v11, %v6090_v46  ;;  %v2272_v27 = vrot.slane %v2271_v14, 2 }
 0x448   : > { %v2242_v32 = vmul.f32 %v2234_v19, %v6080_v38  ;;  %v2219_v13 = vpop.permute.xlu1 %2218  ;;  %v2265_v18 = vrot.slane %v2264_v37, 2 }
 0x449   : > { %v2257_v24 = vsel %vm2253_vm10, %v2243_v23, -1e+30  ;;  %v2237_v28 = vadd.f32 %v2219_v13, %v6393_v7  ;;  %v2217_v41 = vpop.permute.xlu0 %2216  ;;  %v2273_v17 = vmax.f32 %v2271_v14, %v2272_v27 }
 0x44a   : > { %v2283_v58 = vsel %vm7709_vm5, %v2257_v24, -inf  ;;  %v2256_v36 = vsel %vm2253_vm10, %v2242_v32, -1e+30  ;;  %v2236_v57 = vadd.f32 %v2217_v41, %v6398_v35  ;;  %v2266_v26 = vmax.f32 %v2264_v37, %v2265_v18  ;;  %vm7722_vm5 = vmmov %vm7715_vm0 }
 0x44b   : > { %v2284_v3 = vrot.slane %v2283_v58, 4  ;;  %v2276_v12 = vsel %vm7710_vm8, %v2256_v36, -inf  ;;  %v2245_v49 = vmul.f32 %v2237_v28, %v6113_v59  ;;  %v2274_v11 = vrot.slane %v2273_v17, 1 }
 0x44c   : > { %v2277_v15 = vrot.slane %v2276_v12, 4  ;;  %v2244_v19 = vmul.f32 %v2236_v57, %v6102_v54  ;;  %v2223_v7 = vpop.permute.xlu1 %2222  ;;  %v2267_v23 = vrot.slane %v2266_v26, 1  ;;  %vm928_vm8 = vcmask 7168  }
 0x44d   : > { %v2285_v14 = vmax.f32 %v2283_v58, %v2284_v3  ;;  %v2259_v27 = vsel %vm2253_vm10, %v2245_v49, -1e+30  ;;  %v2239_v32 = vadd.f32 %v2223_v7, %v6406_v29  ;;  %v2275_v13 = vmax.f32 %v2273_v17, %v2274_v11  ;;  %v2221_v18 = vpop.permute.xlu0 %2220 }
 0x44e   : > { %v2278_v35 = vmax.f32 %v2276_v12, %v2277_v15  ;;  %v2297_v41 = vsel %vm7711_vm9, %v2259_v27, -inf  ;;  %v6466_v37 = vsel %vm2253_vm10, %v2244_v19, -1e+30  ;;  %v2268_v28 = vmax.f32 %v2266_v26, %v2267_v23 }
 0x44f   : > { %v2286_v63 = vrot.slane %v2285_v14, 2  ;;  %v2298_v57 = vrot.slane %v2297_v41, 4  ;;  %v2290_v58 = vsel %vm7712_vm12, %v6466_v37, -inf  ;;  %v2319_v3 = vsub.f32 %v2255_v62, %v2275_v13 }
 0x450   : > { %v2279_v48 = vrot.slane %v2278_v35, 2  ;;  %v2291_v49 = vrot.slane %v2290_v58, 4  ;;  %v2247_v29 = vmul.f32 %v2239_v32, %v6136_v8  ;;  %v2318_v17 = vsub.f32 %v2254_v1, %v2268_v28 }
 0x451   : > { %v2287_v12 = vmax.f32 %v2285_v14, %v2286_v63  ;;  %v2299_v11 = vmax.f32 %v2297_v41, %v2298_v57  ;;  %v2238_v15 = vadd.f32 %v2221_v18, %v6408_v33  ;;  %v2328_v7 = vmul.f32 1.442695, %v2319_v3 }
 0x452   : > { %v2280_v19 = vmax.f32 %v2278_v35, %v2279_v48  ;;  %v2292_v31 = vmax.f32 %v2290_v58, %v2291_v49  ;;  %v6474_v26 = vsel %vm2253_vm10, %v2247_v29, -1e+30  ;;  %v2326_v23 = vmul.f32 1.442695, %v2318_v17 }
 0x453   : > { %v2288_v59 = vrot.slane %v2287_v12, 1  ;;  %v2300_v54 = vrot.slane %v2299_v11, 2  ;;  %v2311_v62 = vsel %vm7713_vm13, %v6474_v26, -inf  ;;  %5556 = vpow2.f32 %v2328_v7 }
 0x454   : > { %v2281_v32 = vrot.slane %v2280_v19, 1  ;;  %v2293_v1 = vrot.slane %v2292_v31, 2  ;;  %v2312_v63 = vrot.slane %v2311_v62, 4  ;;  %5558 = vpow2.f32 %v2326_v23 }
 0x455   : > { %v2289_v14 = vmax.f32 %v2287_v12, %v2288_v59  ;;  %v2301_v33 = vmax.f32 %v2299_v11, %v2300_v54  ;;  %v2246_v48 = vmul.f32 %v2238_v15, %v6129_v2  ;;  %vm2718_vm9 = vcmask 523264  }
 0x456   : > { %v2282_v13 = vmax.f32 %v2280_v19, %v2281_v32  ;;  %v2294_v35 = vmax.f32 %v2292_v31, %v2293_v1  ;;  %v2313_v28 = vmax.f32 %v2311_v62, %v2312_v63  ;;  %vm2727_vm12 = vcmask 785408  }
 0x457   : > { %v2321_v41 = vsub.f32 %v2257_v24, %v2289_v14  ;;  %v2302_v18 = vrot.slane %v2301_v33, 1  ;;  %v2260_v57 = vsel %vm2253_vm10, %v2246_v48, -1e+30  ;;  %vm7719_vm10 = vmmov %vm7715_vm0 }
 0x458   : > { %v2320_v58 = vsub.f32 %v2256_v36, %v2282_v13  ;;  %v2304_v3 = vsel %vm7714_vm15, %v2260_v57, -inf  ;;  %v2295_v17 = vrot.slane %v2294_v35, 1  ;;  %v2314_v59 = vrot.slane %v2313_v28, 2 }
 0x459   : > { %v2332_v49 = vmul.f32 1.442695, %v2321_v41  ;;  %v2303_v29 = vmax.f32 %v2301_v33, %v2302_v18  ;;  %v2305_v7 = vrot.slane %v2304_v3, 4 }
 0x45a   : > { %v2330_v23 = vmul.f32 1.442695, %v2320_v58  ;;  %v2296_v24 = vmax.f32 %v2294_v35, %v2295_v17  ;;  %v2315_v36 = vmax.f32 %v2313_v28, %v2314_v59 }
 0x45b   : > { %5560 = vpow2.f32 %v2332_v49  ;;  %v2323_v54 = vsub.f32 %v2259_v27, %v2303_v29  ;;  %v2306_v12 = vmax.f32 %v2304_v3, %v2305_v7 }
 0x45c   : > { %5562 = vpow2.f32 %v2330_v23  ;;  %v2322_v27 = vsub.f32 %v6466_v37, %v2296_v24  ;;  %v2316_v13 = vrot.slane %v2315_v36, 1 }
 0x45d   : > { %v2336_v31 = vmul.f32 1.442695, %v2323_v54  ;;  %v2307_v11 = vrot.slane %v2306_v12, 2  ;;  %v5557_v15 = vpop.eup %5556 }
 0x45e   : > { %v6482_v19 = vpop.eup %5558  ;;  %v2349_v20 = vsel %vm7715_vm0, %v5557_v15, 0.0  ;;  %v2334_v3 = vmul.f32 1.442695, %v2322_v27  ;;  %v2317_v54 = vmax.f32 %v2315_v36, %v2316_v13 }
 0x45f   : > { %5564 = vpow2.f32 %v2336_v31  ;;  %v2308_v62 = vmax.f32 %v2306_v12, %v2307_v11  ;;  %v2350_v32 = vrot.slane %v2349_v20, 4  ;;  %v2342_v1 = vsel %vm7716_vm6, %v6482_v19, 0.0 }
 0x460   : > { %v2343_v63 = vrot.slane %v2342_v1, 4  ;;  %5566 = vpow2.f32 %v2334_v3  ;;  %vm3186_vm6 = vcmask 1041409  }
 0x461   : > { %v2309_v14 = vrot.slane %v2308_v62, 1  ;;  %v2351_v33 = vadd.f32 %v2350_v32, %v2349_v20 }
 0x462   : > { %v2344_v48 = vadd.f32 %v2343_v63, %v2342_v1 }
 0x463   : > { %v2310_v35 = vmax.f32 %v2308_v62, %v2309_v14  ;;  %v2352_v41 = vrot.slane %v2351_v33, 2 }
 0x464   : > { %v2345_v58 = vrot.slane %v2344_v48, 2 }
 0x465   : > { %v6488_v18 = vpop.eup %5560  ;;  %v2324_v29 = vsub.f32 %v2260_v57, %v2310_v35  ;;  %v2353_v17 = vadd.f32 %v2352_v41, %v2351_v33  ;;  %v2325_v57 = vsub.f32 %v6474_v26, %v2317_v54 }
 0x466   : > { %v6490_v49 = vpop.eup %5562  ;;  %v2363_v28 = vsel %vm7717_vm7, %v6488_v18, 0.0  ;;  %v2346_v7 = vadd.f32 %v2345_v58, %v2344_v48  ;;  %vm3188_vm7 = vcmask 1042434  }
 0x467   : > { %v2364_v23 = vrot.slane %v2363_v28, 4  ;;  %v2356_v37 = vsel %vm7718_vm2, %v6490_v49, 0.0  ;;  %v2354_v12 = vrot.slane %v2353_v17, 1  ;;  %v2338_v62 = vmul.f32 1.442695, %v2324_v29 }
 0x468   : > { %v2357_v59 = vrot.slane %v2356_v37, 4  ;;  %v2347_v11 = vrot.slane %v2346_v7, 1  ;;  %v2340_v48 = vmul.f32 1.442695, %v2325_v57  ;;  %vm3190_vm2 = vcmask 1043459  }
 0x469   : > { %v6496_v31 = vpop.eup %5564  ;;  %v2365_v24 = vadd.f32 %v2364_v23, %v2363_v28  ;;  %v2355_v32 = vadd.f32 %v2354_v12, %v2353_v17 }
 0x46a   : > { %v2358_v20 = vadd.f32 %v2357_v59, %v2356_v37  ;;  %v2348_v63 = vadd.f32 %v2347_v11, %v2346_v7  ;;  %v2377_v27 = vsel %vm7719_vm10, %v6496_v31, 0.0  ;;  %v6501_v41 = vpop.eup %5566  ;;  %vm3192_vm10 = vcmask 1044484  }
 0x46b   : > { %v2366_v1 = vrot.slane %v2365_v24, 2  ;;  %5568 = vrcp.f32 %v2355_v32  ;;  %v2378_v33 = vrot.slane %v2377_v27, 4  ;;  %v2370_v29 = vsel %vm7720_vm11, %v6501_v41, 0.0 }
 0x46c   : > { %v2359_v14 = vrot.slane %v2358_v20, 2  ;;  %5570 = vpow2.f32 %v2338_v62  ;;  %v2371_v54 = vrot.slane %v2370_v29, 4  ;;  %vm3194_vm11 = vcmask 1045509  }
 0x46d   : > { %v2367_v36 = vadd.f32 %v2366_v1, %v2365_v24  ;;  %5572 = vrcp.f32 %v2348_v63  ;;  %v2379_v58 = vadd.f32 %v2378_v33, %v2377_v27 }
 0x46e   : > { %v2360_v35 = vadd.f32 %v2359_v14, %v2358_v20  ;;  %5574 = vpow2.f32 %v2340_v48  ;;  %v2372_v62 = vadd.f32 %v2371_v54, %v2370_v29 }
 0x46f   : > { %v2368_v13 = vrot.slane %v2367_v36, 1  ;;  %v2380_v17 = vrot.slane %v2379_v58, 2 }
 0x470   : > { %v2361_v28 = vrot.slane %v2360_v35, 1  ;;  %v2373_v63 = vrot.slane %v2372_v62, 2 }
 0x471   : > { %v2369_v3 = vadd.f32 %v2368_v13, %v2367_v36  ;;  %v2381_v24 = vadd.f32 %v2380_v17, %v2379_v58 }
 0x472   : > { %v2362_v59 = vadd.f32 %v2361_v28, %v2360_v35  ;;  %v2374_v48 = vadd.f32 %v2373_v63, %v2372_v62  ;;  %v7723_v28 = vmov 2  }
 0x473   : > { %5576 = vrcp.f32 %v2369_v3  ;;  %v2382_v1 = vrot.slane %v2381_v24, 1 }
 0x474   : > { %5578 = vrcp.f32 %v2362_v59 }
 0x475   : > { %v5569_v26 = vpop.eup %5568  ;;  %v2383_v33 = vadd.f32 %v2382_v1, %v2381_v24 }
 0x476   : > { %v2407_v7 = vmul.f32 %v5569_v26, %v5557_v15  ;;  %v6505_v23 = vpop.eup %5570  ;;  %v5697_v15 = vmov 1   ;;  %v2375_v26 = vrot.slane %v2374_v48, 1 }
 0x477   : > { %v5573_v37 = vpop.eup %5572  ;;  %v2384_v12 = vsel %vm7721_vm14, %v6505_v23, 0.0  ;;  %5580 = vrcp.f32 %v2383_v33  ;;  %vm3196_vm14 = vcmask 1046534  }
 0x478   : > { %2507 = vperm.xlu0 %5376, %v2407_v7   ;;  %2421 = vperm.xlu1 %5374, %v2407_v7   ;;  %v2406_v11 = vmul.f32 %v5573_v37, %v6482_v19  ;;  %v6510_v20 = vpop.eup %5574  ;;  %v2385_v32 = vrot.slane %v2384_v12, 4  ;;  %v5698_v19 = vmov 3  }
 0x479   : > { %v2391_v57 = vsel %vm7722_vm5, %v6510_v20, 0.0  ;;  %vm3198_vm5 = vcmask 1047559  }
 0x47a   : > { %v2386_v14 = vadd.f32 %v2385_v32, %v2384_v12  ;;  %v2392_v36 = vrot.slane %v2391_v57, 4 }
 0x47c   : > { %5378 = vset.pattern.permute.xlu0 %v7706_v21  ;;  %5375 = vset.pattern.permute.xlu1 %v5697_v15  ;;  %v2387_v35 = vrot.slane %v2386_v14, 2  ;;  %v2393_v3 = vadd.f32 %v2392_v36, %v2391_v57 }
 0x47d   : > { %2416 = vperm.xlu0 %5378, %v2406_v11   ;;  %2467 = vperm.xlu1 %5375, %v2407_v7   ;;  %v5577_v27 = vpop.eup %5576 }
 0x47e   : > { %v2409_v13 = vmul.f32 %v5577_v27, %v6488_v18  ;;  %v5579_v58 = vpop.eup %5578  ;;  %v2388_v29 = vadd.f32 %v2387_v35, %v2386_v14  ;;  %v2394_v37 = vrot.slane %v2393_v3, 2  ;;  %v2376_v18 = vadd.f32 %v2375_v26, %v2374_v48 }
 0x47f   : > { %v2408_v17 = vmul.f32 %v5579_v58, %v6490_v49 }
 0x480   : > { %v2395_v54 = vadd.f32 %v2394_v37, %v2393_v3  ;;  %5582 = vrcp.f32 %v2376_v18 }
 0x481   : > { %5379 = vset.pattern.permute.xlu0 %v5697_v15  ;;  %5377 = vset.pattern.permute.xlu1 %v5698_v19  ;;  %v5581_v59 = vpop.eup %5580 }
 0x482   : > { %2463 = vperm.xlu0 %5379, %v2406_v11   ;;  %2547 = vperm.xlu1 %5377, %v2407_v7   ;;  %v2389_v7 = vrot.slane %v2388_v29, 1  ;;  %v2396_v49 = vrot.slane %v2395_v54, 1  ;;  %v2411_v24 = vmul.f32 %v5581_v59, %v6496_v31 }
 0x484   : > { %v2390_v12 = vadd.f32 %v2389_v7, %v2388_v29 }
 0x486   : > { %5380 = vset.pattern.permute.xlu1 %v7723_v28  ;;  %2475 = vperm.xlu0 %5379, %v2409_v13   ;;  %5584 = vrcp.f32 %v2390_v12 }
 0x487   : > { %2503 = vperm.xlu1 %5380, %v2406_v11  }
 0x48a   : > { %5385 = vset.pattern.permute.xlu0 %v7706_v21  ;;  %v5583_v62 = vpop.eup %5582 }
 0x48b   : > { %5381 = vset.pattern.permute.xlu1 %v5698_v19  ;;  %2426 = vperm.xlu0 %5385, %v2408_v17   ;;  %v2410_v32 = vmul.f32 %v5583_v62, %v6501_v41 }
 0x48c   : > { %2543 = vperm.xlu1 %5381, %v2406_v11   ;;  %v2397_v11 = vadd.f32 %v2396_v49, %v2395_v54 }
 0x48e   : > { %5586 = vrcp.f32 %v2397_v11 }
 0x48f   : > { %5388 = vset.pattern.permute.xlu0 %v5698_v19 }
 0x490   : > { %5382 = vset.pattern.permute.xlu1 %v7706_v21  ;;  %2551 = vperm.xlu0 %5388, %v2408_v17   ;;  %v5585_v31 = vpop.eup %5584 }
 0x491   : > { %2431 = vperm.xlu1 %5382, %v2409_v13   ;;  %v2412_v1 = vmul.f32 %v5585_v31, %v6505_v23 }
 0x494   : > { %5389 = vset.pattern.permute.xlu0 %v7706_v21 }
 0x495   : > { %5383 = vset.pattern.permute.xlu1 %v7723_v28  ;;  %2441 = vperm.xlu0 %5389, %v2411_v24  }
 0x496   : > { %2515 = vperm.xlu1 %5383, %v2409_v13  }
 0x498   : > { %v5587_v57 = vpop.eup %5586 }
 0x499   : > { %5392 = vset.pattern.permute.xlu0 %v5698_v19  ;;  %v2413_v63 = vmul.f32 %v5587_v57, %v6510_v20 }
 0x49a   : > { %5384 = vset.pattern.permute.xlu1 %v5698_v19  ;;  %2563 = vperm.xlu0 %5392, %v2411_v24  }
 0x49b   : > { %2555 = vperm.xlu1 %5384, %v2409_v13  }
 0x49e   : > { %5395 = vset.pattern.permute.xlu0 %v7723_v28 }
 0x49f   : > { %5386 = vset.pattern.permute.xlu1 %v5697_v15  ;;  %2519 = vperm.xlu0 %5395, %v2410_v32  }
 0x4a0   : > { %2471 = vperm.xlu1 %5386, %v2408_v17  }
 0x4a3   : > { %5400 = vset.pattern.permute.xlu0 %v5697_v15 }
 0x4a4   : > { %5387 = vset.pattern.permute.xlu1 %v7723_v28  ;;  %2487 = vperm.xlu0 %5400, %v2412_v1  }
 0x4a5   : > { %2511 = vperm.xlu1 %5387, %v2408_v17  }
 0x4a8   : > { %5401 = vset.pattern.permute.xlu0 %v7723_v28 }
 0x4a9   : > { %5390 = vset.pattern.permute.xlu1 %v5697_v15  ;;  %2531 = vperm.xlu0 %5401, %v2413_v63  }
 0x4aa   : > { %2483 = vperm.xlu1 %5390, %v2411_v24  }
 0x4ad   : > { %5524 = vset.pattern.permute.xlu0 %v7706_v21 }
 0x4ae   : > { %5391 = vset.pattern.permute.xlu1 %v7723_v28 }
 0x4af   : > { %2523 = vperm.xlu1 %5391, %v2411_v24  }
 0x4b3   : > { %5393 = vset.pattern.permute.xlu1 %v7706_v21 }
 0x4b4   : > { %2436 = vperm.xlu1 %5393, %v2410_v32  }
 0x4b8   : > { %5394 = vset.pattern.permute.xlu1 %v5697_v15 }
 0x4b9   : > { %2479 = vperm.xlu1 %5394, %v2410_v32  }
 0x4bd   : > { %5396 = vset.pattern.permute.xlu1 %v5698_v19 }
 0x4be   : > { %2559 = vperm.xlu1 %5396, %v2410_v32  }
 0x4c2   : > { %5397 = vset.pattern.permute.xlu1 %v7706_v21 }
 0x4c3   : > { %2451 = vperm.xlu1 %5397, %v2413_v63  }
 0x4c7   : > { %5398 = vset.pattern.permute.xlu1 %v5697_v15 }
 0x4c8   : > { %2491 = vperm.xlu1 %5398, %v2413_v63  }
 0x4cc   : > { %5399 = vset.pattern.permute.xlu1 %v7706_v21 }
 0x4cd   : > { %2446 = vperm.xlu1 %5399, %v2412_v1  }
 0x4d1   : > { %5402 = vset.pattern.permute.xlu1 %v7723_v28 }
 0x4d2   : > { %2527 = vperm.xlu1 %5402, %v2412_v1  }
 0x4d6   : > { %5403 = vset.pattern.permute.xlu1 %v5698_v19 }
 0x4d7   : > { %2567 = vperm.xlu1 %5403, %v2412_v1  }
 0x4db   : > { %2571 = vperm.xlu1 %5403, %v2413_v63  }
 0x4df   : > { %5525 = vset.pattern.permute.xlu1 %v7706_v21 }
 0x4f7   : > { %v2508_v41 = vpop.permute.xlu0 %2507  ;;  %v2422_v23 = vpop.permute.xlu1 %2421 }
 0x4f8   : > { %v2455_v14 = vmul.f32 %v2422_v23, %v6028_v6  ;;  %v2535_v58 = vmul.f32 %v2508_v41, %v6028_v6 }
 0x4fc   : > { %v2417_v20 = vpop.permute.xlu0 %2416  ;;  %v2468_v27 = vpop.permute.xlu1 %2467 }
 0x4fd   : > { %v2454_v15 = vmul.f32 %v2417_v20, %v6028_v6  ;;  %v2495_v19 = vmul.f32 %v2468_v27, %v6028_v6 }
 0x4ff   : > { %v5404_v36 = vpack.i.bf16 %v2455_v14, %v2454_v15 }
 0x501   : > { %v2464_v33 = vpop.permute.xlu0 %2463  ;;  %5405 = vrot.lane.b32.xlu0 %v5404_v36, %s7613_s3  ;;  %v2548_v48 = vpop.permute.xlu1 %2547 }
 0x502   : > { %v2494_v13 = vmul.f32 %v2464_v33, %v6028_v6  ;;  %v2575_v17 = vmul.f32 %v2548_v48, %v6028_v6 }
 0x504   : > { %v5409_v35 = vpack.i.bf16 %v2495_v19, %v2494_v13 }
 0x505   : > { %v2476_v28 = vpop.permute.xlu0 %2475 }
 0x506   : > { %5410 = vrot.lane.b32.xlu1 %v5409_v35, %s5691_s21  ;;  %v2504_v21 = vpop.permute.xlu1 %2503  ;;  %v2497_v32 = vmul.f32 %v2476_v28, %v6028_v6 }
 0x507   : > { %v2534_v3 = vmul.f32 %v2504_v21, %v6028_v6 }
 0x509   : > { %v5414_v26 = vpack.i.bf16 %v2535_v58, %v2534_v3 }
 0x50a   : > { %v2427_v18 = vpop.permute.xlu0 %2426 }
 0x50b   : > { %5415 = vrot.lane.b32.xlu0 %v5414_v26, %s5694_s2  ;;  %v2544_v29 = vpop.permute.xlu1 %2543  ;;  %v2456_v59 = vmul.f32 %v2427_v18, %v6028_v6 }
 0x50c   : > { %v2574_v37 = vmul.f32 %v2544_v29, %v6028_v6 }
 0x50e   : > { %v5419_v7 = vpack.i.bf16 %v2575_v17, %v2574_v37 }
 0x50f   : > { %v2552_v1 = vpop.permute.xlu0 %2551 }
 0x510   : > { %5420 = vrot.lane.b32.xlu1 %v5419_v7, %s5692_s29  ;;  %v2432_v54 = vpop.permute.xlu1 %2431  ;;  %v2576_v41 = vmul.f32 %v2552_v1, %v6028_v6 }
 0x511   : > { %v2457_v12 = vmul.f32 %v2432_v54, %v6028_v6 }
 0x513   : > { %v5424_v49 = vpack.i.bf16 %v2457_v12, %v2456_v59 }
 0x514   : > { %v2442_v36 = vpop.permute.xlu0 %2441 }
 0x515   : > { %5425 = vrot.lane.b32.xlu0 %v5424_v49, %s7613_s3  ;;  %v2516_v24 = vpop.permute.xlu1 %2515  ;;  %v2459_v35 = vmul.f32 %v2442_v36, %v6028_v6 }
 0x516   : > { %v2537_v20 = vmul.f32 %v2516_v24, %v6028_v6 }
 0x519   : > { %v2564_v19 = vpop.permute.xlu0 %2563 }
 0x51a   : > { %v2556_v11 = vpop.permute.xlu1 %2555  ;;  %v2579_v59 = vmul.f32 %v2564_v19, %v6028_v6 }
 0x51b   : > { %v2577_v57 = vmul.f32 %v2556_v11, %v6028_v6  ;;  %v6587_v11 = vld [vmem:[%s5926_s30] sm:$0xff]  ;;  %s5701_s30 = smov 1  }
 0x51d   : > { %v5439_v14 = vpack.i.bf16 %v2577_v57, %v2576_v41 }
 0x51e   : > { %v2520_v58 = vpop.permute.xlu0 %2519 }
 0x51f   : > { %v2472_v62 = vpop.permute.xlu1 %2471  ;;  %v2538_v26 = vmul.f32 %v2520_v58, %v6028_v6  ;;  %v2901_v58 = vmul.f32 %v6268_v44, %v6268_v44 }
 0x520   : > { %v2496_v31 = vmul.f32 %v2472_v62, %v6028_v6  ;;  %v929_v62 = vsel %vm928_vm8, %v6587_v11, 0.0 }
 0x522   : > { %v5429_v63 = vpack.i.bf16 %v2497_v32, %v2496_v31  ;;  %v930_v31 = vrot.slane %v929_v62, 4 }
 0x523   : > { %v2488_v32 = vpop.permute.xlu0 %2487 }
 0x524   : > { %5430 = vrot.lane.b32.xlu1 %v5429_v63, %s5691_s21  ;;  %v2512_v23 = vpop.permute.xlu1 %2511  ;;  %v2500_v57 = vmul.f32 %v2488_v32, %v6028_v6  ;;  %v2903_v32 = vmul.f32 %v6301_v10, %v6301_v10 }
 0x525   : > { %v2536_v27 = vmul.f32 %v2512_v23, %v6028_v6  ;;  %v931_v23 = vadd.f32 %v930_v31, %v929_v62 }
 0x527   : > { %v5434_v15 = vpack.i.bf16 %v2537_v20, %v2536_v27 }
 0x528   : > { %5440 = vrot.lane.b32.xlu1 %v5439_v14, %s5692_s29  ;;  %v2532_v36 = vpop.permute.xlu0 %2531 }
 0x529   : > { %5435 = vrot.lane.b32.xlu0 %v5434_v15, %s5694_s2  ;;  %v2484_v33 = vpop.permute.xlu1 %2483  ;;  %v932_v15 = vrot.slane %v931_v23, 2  ;;  %v2541_v19 = vmul.f32 %v2532_v36, %v6028_v6 }
 0x52a   : > { %v2499_v17 = vmul.f32 %v2484_v33, %v6028_v6 }
 0x52e   : > { %v2524_v48 = vpop.permute.xlu1 %2523 }
 0x52f   : > { %v2539_v3 = vmul.f32 %v2524_v48, %v6028_v6 }
 0x531   : > { %v5454_v18 = vpack.i.bf16 %v2539_v3, %v2538_v26 }
 0x533   : > { %v2437_v13 = vpop.permute.xlu1 %2436 }
 0x534   : > { %v2458_v21 = vmul.f32 %v2437_v13, %v6028_v6 }
 0x536   : > { %v5444_v28 = vpack.i.bf16 %v2459_v35, %v2458_v21  ;;  %v933_v35 = vadd.f32 %v932_v15, %v931_v23  ;;  %v2908_v23 = vmul.f32 %v6339_v55, %v6339_v55  ;;  %v3232_v15 = vmul.f32 %v6111_v56, %v6111_v56 }
 0x538   : > { %5445 = vrot.lane.b32.xlu0 %v5444_v28, %s7613_s3  ;;  %v2480_v29 = vpop.permute.xlu1 %2479  ;;  %v2902_v28 = vmul.f32 %v6278_v61, %v6278_v61  ;;  %v934_v26 = vrot.slane %v933_v35, 1 }
 0x539   : > { %v2498_v37 = vmul.f32 %v2480_v29, %v6028_v6 }
 0x53a   : > { %v5484_v29 = vpack.i.bf16 %v2902_v28, %v2901_v58  ;;  %v2810_v28 = vld [vmem:[%s7567_s14 + $0x8] sm:$0xff] }
 0x53b   : > { %v5449_v7 = vpack.i.bf16 %v2499_v17, %v2498_v37  ;;  %v2905_v17 = vmul.f32 %v6322_v16, %v6322_v16 }
 0x53c   : > { %5455 = vrot.lane.b32.xlu0 %v5454_v18, %s5694_s2  ;;  %v2906_v18 = vmul.f32 %v6329_v45, %v6329_v45 }
 0x53d   : > { %5450 = vrot.lane.b32.xlu1 %v5449_v7, %s5691_s21  ;;  %v2560_v54 = vpop.permute.xlu1 %2559 }
 0x53e   : > { %v2578_v12 = vmul.f32 %v2560_v54, %v6028_v6 }
 0x540   : > { %v5459_v49 = vpack.i.bf16 %v2579_v59, %v2578_v12  ;;  %v935_v59 = vadd.f32 %v934_v26, %v933_v35  ;;  %v5494_v12 = vpack.i.bf16 %v2906_v18, %v2905_v17  ;;  %v926_v35 = vsub.f32 1.0, %v6587_v11  ;;  %v2811_v26 = vld [vmem:[%s7567_s14 + $0x10] sm:$0xff]  ;;  %v2812_v11 = vld [vmem:[%s7567_s14 + $0x18] sm:$0xff] }
 0x541   : > { %v5220_v18 = vpack.c.bf16 %v2812_v11, %v2811_v26  ;;  %v2822_v11 = vld [vmem:[%s7567_s14 + $0x68] sm:$0xff] }
 0x542   : > { %5460 = vrot.lane.b32.xlu1 %v5459_v49, %s5692_s29  ;;  %v2452_v24 = vpop.permute.xlu1 %2451  ;;  %v3229_v49 = vmul.f32 %v6083_v39, %v6083_v39  ;;  %5588 = vrcp.f32 %v935_v59 }
 0x543   : > { %v2461_v27 = vmul.f32 %v2452_v24, %v6028_v6  ;;  %v3230_v24 = vmul.f32 %v6095_v47, %v6095_v47 }
 0x545   : > { %v5504_v31 = vpack.i.bf16 %v3230_v24, %v3229_v49 }
 0x547   : > { %v2492_v1 = vpop.permute.xlu1 %2491 }
 0x548   : > { %v2501_v63 = vmul.f32 %v2492_v1, %v6028_v6  ;;  %v3233_v1 = vmul.f32 %v6116_v60, %v6116_v60 }
 0x54a   : > { %v5469_v41 = vpack.i.bf16 %v2501_v63, %v2500_v57  ;;  %v3234_v57 = vmul.f32 %v6127_v0, %v6127_v0 }
 0x54c   : > { %5470 = vrot.lane.b32.xlu1 %v5469_v41, %s5691_s21  ;;  %v2447_v20 = vpop.permute.xlu1 %2446  ;;  %v2907_v41 = vmul.f32 %v6336_v43, %v6336_v43  ;;  %v6636_v36 = vpop.eup %5588 }
 0x54d   : > { %v2460_v14 = vmul.f32 %v2447_v20, %v6028_v6  ;;  %v5514_v20 = vpack.i.bf16 %v3234_v57, %v3233_v1  ;;  %v2815_v57 = vld [vmem:[%s7567_s14 + $0x30] sm:$0xff] }
 0x54f   : > { %v5464_v33 = vpack.i.bf16 %v2461_v27, %v2460_v14  ;;  %v5499_v27 = vpack.i.bf16 %v2908_v23, %v2907_v41  ;;  %v3231_v14 = vmul.f32 %v6098_v50, %v6098_v50 }
 0x551   : > { %5465 = vrot.lane.b32.xlu0 %v5464_v33, %s7613_s3  ;;  %v2528_v48 = vpop.permute.xlu1 %2527  ;;  %v5509_v33 = vpack.i.bf16 %v3232_v15, %v3231_v14  ;;  %s5700_s3 = smov 64  }
 0x552   : > { %v2540_v13 = vmul.f32 %v2528_v48, %v6028_v6  ;;  %v3235_v48 = vmul.f32 %v6132_v4, %v6132_v4 }
 0x554   : > { %v5474_v21 = vpack.i.bf16 %v2541_v19, %v2540_v13  ;;  %v3236_v19 = vmul.f32 %v6141_v9, %v6141_v9 }
 0x556   : > { %5475 = vrot.lane.b32.xlu0 %v5474_v21, %s5694_s2  ;;  %v2568_v3 = vpop.permute.xlu1 %2567  ;;  %v5519_v13 = vpack.i.bf16 %v3236_v19, %v3235_v48  ;;  %v927_v21 = vmul.f32 100000.0, %v926_v35  ;;  %v2817_v35 = vld [vmem:[%s7567_s14 + $0x40] sm:$0xff]  ;;  %s5703_s2 = smov 124  }
 0x557   : > { %v2580_v7 = vmul.f32 %v2568_v3, %v6028_v6  ;;  %v2809_v3 = vld [vmem:[%s7567_s14] sm:$0xff] }
 0x55a   : > { %5485 = vrot.lane.b32.xlu0 %v5484_v29, %s5692_s29  ;;  %v2572_v37 = vpop.permute.xlu1 %2571  ;;  %v5217_v29 = vpack.c.bf16 %v2810_v28, %v2809_v3  ;;  %v2819_v3 = vld [vmem:[%s7567_s14 + $0x50] sm:$0xff]  ;;  %v2820_v28 = vld [vmem:[%s7567_s14 + $0x58] sm:$0xff] }
 0x55b   : > { %v2581_v54 = vmul.f32 %v2572_v37, %v6028_v6  ;;  %v2904_v6 = vmul.f32 %v6308_v34, %v6308_v34  ;;  %v5232_v26 = vpack.c.bf16 %v2820_v28, %v2819_v3 }
 0x55c   : > { %5218 = vmatpush3.bf16.msra.mxu1 %v5217_v29  ;;  %v2821_v29 = vld [vmem:[%s7567_s14 + $0x60] sm:$0xff] }
 0x55d   : > { %v5479_v62 = vpack.i.bf16 %v2581_v54, %v2580_v7  ;;  %v5489_v63 = vpack.i.bf16 %v2904_v6, %v2903_v32  ;;  %v7724_v7 = vmov 0.0|0.0   ;;  %v2813_v54 = vld [vmem:[%s7567_s14 + $0x20] sm:$0xff] }
 0x55e   : > { %5495 = vrot.lane.b32.xlu0 %v5494_v12, %s5692_s29  ;;  %5219 = vmatprep.subr.bf16.mxu1 %v7724_v7 }
 0x55f   : > { %5480 = vrot.lane.b32.xlu1 %v5479_v62, %s5692_s29 }
 0x560   : > { %5221 = vmatpush3.bf16.msra.mxu1 %v5220_v18  ;;  %v2824_v18 = vld [vmem:[%s7567_s14 + $0x78] sm:$0xff] }
 0x561   : > { %5222 = vmatprep.subr.bf16.mxu1 %v7724_v7 }
 0x562   : > { %5505 = vrot.lane.b32.xlu0 %v5504_v31, %s5692_s29 }
 0x563   : > { %5490 = vrot.lane.b32.xlu1 %v5489_v63, %s5692_s29  ;;  %v2816_v63 = vld [vmem:[%s7567_s14 + $0x38] sm:$0xff] }
 0x564   : > { %v5226_v19 = vpack.c.bf16 %v2816_v63, %v2815_v57 }
 0x566   : > { %5515 = vrot.lane.b32.xlu0 %v5514_v20, %s5692_s29 }
 0x567   : > { %5500 = vrot.lane.b32.xlu1 %v5499_v27, %s5692_s29 }
 0x56a   : > { %3021 = vperm.xlu0 %5524, %v6636_v36  }
 0x56b   : > { %5510 = vrot.lane.b32.xlu1 %v5509_v33, %s5692_s29 }
 0x56f   : > { %5520 = vrot.lane.b32.xlu1 %v5519_v13, %s5692_s29 }
 0x573   : > { %3035 = vperm.xlu1 %5525, %v935_v59   ;;  %v5406_v58 = vpop.permute.xlu0 %5405  ;;  %v2814_v59 = vld [vmem:[%s7567_s14 + $0x28] sm:$0xff] }
 0x574   : > { %v5408_v32 = vunpack.i.h.bf16 %v5406_v58  ;;  %v5407_v6 = vunpack.i.l.bf16 %v5406_v58  ;;  %v5223_v31 = vpack.c.bf16 %v2814_v59, %v2813_v54 }
 0x576   : > { %5224 = vmatpush3.bf16.msra.mxu1 %v5223_v31 }
 0x577   : > { %3047 = vperm.xlu1 %5525, %v927_v21   ;;  %5225 = vmatprep.subr.bf16.mxu1 %v7724_v7  ;;  %v2818_v21 = vld [vmem:[%s7567_s14 + $0x48] sm:$0xff] }
 0x578   : > { %v5411_v17 = vpop.permute.xlu1 %5410  ;;  %v5229_v58 = vpack.c.bf16 %v2818_v21, %v2817_v35 }
 0x579   : > { %v5413_v12 = vunpack.i.h.bf16 %v5411_v17  ;;  %v5412_v49 = vunpack.i.l.bf16 %v5411_v17  ;;  %v5235_v17 = vpack.c.bf16 %v2822_v11, %v2821_v29 }
 0x57a   : > { %5227 = vmatpush3.bf16.msra.mxu1 %v5226_v19 }
 0x57b   : > { %v2711_v41 = vsel %vm1156_vm3, %v5408_v32, %v5413_v12  ;;  %v2710_v23 = vsel %vm1156_vm3, %v5407_v6, %v5412_v49  ;;  %5228 = vmatprep.subr.bf16.mxu1 %v7724_v7 }
 0x57d   : > { %v5416_v37 = vpop.permute.xlu0 %5415 }
 0x57e   : > { %v5418_v24 = vunpack.i.h.bf16 %v5416_v37  ;;  %v5417_v62 = vunpack.i.l.bf16 %v5416_v37  ;;  %5230 = vmatpush3.bf16.msra.mxu1 %v5229_v58  ;;  %v2823_v37 = vld [vmem:[%s7567_s14 + $0x70] sm:$0xff] }
 0x57f   : > { %5231 = vmatprep.subr.bf16.mxu1 %v7724_v7  ;;  %v5238_v54 = vpack.c.bf16 %v2824_v18, %v2823_v37 }
 0x580   : > { %v2719_v14 = vsel %vm2718_vm9, %v2710_v23, %v5417_v62  ;;  %v2720_v15 = vsel %vm2718_vm9, %v2711_v41, %v5418_v24 }
 0x582   : > { %v5421_v1 = vpop.permute.xlu1 %5420  ;;  %5233 = vmatpush3.bf16.msra.mxu1 %v5232_v26 }
 0x583   : > { %v5423_v20 = vunpack.i.h.bf16 %v5421_v1  ;;  %v5422_v27 = vunpack.i.l.bf16 %v5421_v1  ;;  %5234 = vmatprep.subr.bf16.mxu1 %v7724_v7 }
 0x585   : > { %v2728_v33 = vsel %vm2727_vm12, %v2719_v14, %v5422_v27  ;;  %v2729_v48 = vsel %vm2727_vm12, %v2720_v15, %v5423_v20 }
 0x586   : > { %v5205_v13 = vpack.c.bf16 %v2729_v48, %v2728_v33  ;;  %5236 = vmatpush3.bf16.msra.mxu1 %v5235_v17 }
 0x587   : > { %5237 = vmatprep.subr.bf16.mxu1 %v7724_v7  ;;  %v5426_v12 = vpop.permute.xlu0 %5425 }
 0x588   : > { %5206 = vmatpush3.bf16.msra.mxu0 %v5205_v13  ;;  %v5428_v32 = vunpack.i.h.bf16 %v5426_v12  ;;  %v5427_v6 = vunpack.i.l.bf16 %v5426_v12 }
 0x589   : > { %5207 = vmatprep.subr.bf16.mxu0 %v7724_v7 }
 0x58a   : > { %5239 = vmatpush3.bf16.msra.mxu1 %v5238_v54 }
 0x58b   : > { %5264 = vmatprep.subr.bf16.mxu1 %v7724_v7 }
 0x596   : > { %v5431_v59 = vpop.permute.xlu1 %5430 }
 0x597   : > { %v5433_v49 = vunpack.i.h.bf16 %v5431_v59  ;;  %v5432_v24 = vunpack.i.l.bf16 %v5431_v59 }
 0x599   : > { %v2713_v63 = vsel %vm1156_vm3, %v5428_v32, %v5433_v49  ;;  %v2712_v41 = vsel %vm1156_vm3, %v5427_v6, %v5432_v24 }
 0x59a   : > { %v5441_v62 = vpop.permute.xlu1 %5440 }
 0x59b   : > { %v5436_v31 = vpop.permute.xlu0 %5435  ;;  %v5443_v23 = vunpack.i.h.bf16 %v5441_v62  ;;  %v5442_v20 = vunpack.i.l.bf16 %v5441_v62 }
 0x59c   : > { %v5438_v1 = vunpack.i.h.bf16 %v5436_v31  ;;  %v5437_v57 = vunpack.i.l.bf16 %v5436_v31  ;;  %v986_v31 = vadd.s32 1, %v5974_v42 }
 0x59e   : > { %v2721_v27 = vsel %vm2718_vm9, %v2712_v41, %v5437_v57  ;;  %v2722_v14 = vsel %vm2718_vm9, %v2713_v63, %v5438_v1  ;;  %v984_v41 = vmul.u32 8, %v5974_v42 }
 0x59f   : > { %v2730_v15 = vsel %vm2727_vm12, %v2721_v27, %v5442_v20  ;;  %v2731_v33 = vsel %vm2727_vm12, %v2722_v14, %v5443_v23  ;;  %v987_v23 = vmul.u32 8, %v986_v31 }
 0x5a0   : > { %v5208_v48 = vpack.c.bf16 %v2731_v33, %v2730_v15  ;;  %vm6729_vm13 = vcmp.ge.s32.totalorder %v5971_v40, %v984_v41 }
 0x5a1   : > { %vm6734_vm15 = vcmp.lt.s32.totalorder %v5971_v40, %v987_v23 }
 0x5a2   : > { %5209 = vmatpush3.bf16.msra.mxu0 %v5208_v48  ;;  %vm989_vm0 = vmand %vm6729_vm13, %vm6734_vm15 }
 0x5a3   : > { %5210 = vmatprep.subr.bf16.mxu0 %v7724_v7 }
 0x5aa   : > { %v5446_v19 = vpop.permute.xlu0 %5445 }
 0x5ab   : > { %v5448_v58 = vunpack.i.h.bf16 %v5446_v19  ;;  %v5447_v3 = vunpack.i.l.bf16 %v5446_v19 }
 0x5ae   : > { %v5456_v28 = vpop.permute.xlu0 %5455 }
 0x5af   : > { %v5451_v13 = vpop.permute.xlu1 %5450  ;;  %v5458_v11 = vunpack.i.h.bf16 %v5456_v28  ;;  %v5457_v17 = vunpack.i.l.bf16 %v5456_v28 }
 0x5b0   : > { %v5453_v35 = vunpack.i.h.bf16 %v5451_v13  ;;  %v5452_v21 = vunpack.i.l.bf16 %v5451_v13 }
 0x5b2   : > { %v2715_v26 = vsel %vm1156_vm3, %v5448_v58, %v5453_v35  ;;  %v2714_v29 = vsel %vm1156_vm3, %v5447_v3, %v5452_v21 }
 0x5b3   : > { %v2723_v59 = vsel %vm2718_vm9, %v2714_v29, %v5457_v17  ;;  %v2724_v12 = vsel %vm2718_vm9, %v2715_v26, %v5458_v11 }
 0x5b4   : > { %v5461_v37 = vpop.permute.xlu1 %5460 }
 0x5b5   : > { %v5463_v18 = vunpack.i.h.bf16 %v5461_v37  ;;  %v5462_v54 = vunpack.i.l.bf16 %v5461_v37 }
 0x5b7   : > { %v2732_v49 = vsel %vm2727_vm12, %v2723_v59, %v5462_v54  ;;  %v2733_v24 = vsel %vm2727_vm12, %v2724_v12, %v5463_v18 }
 0x5b8   : > { %v5211_v62 = vpack.c.bf16 %v2733_v24, %v2732_v49 }
 0x5ba   : > { %5212 = vmatpush3.bf16.msra.mxu0 %v5211_v62  ;;  %v7729_v62 = vmov 0.0  }
 0x5bb   : > { %5213 = vmatprep.subr.bf16.mxu0 %v7724_v7 }
 0x5be   : > { %v5471_v1 = vpop.permute.xlu1 %5470 }
 0x5bf   : > { %v5473_v20 = vunpack.i.h.bf16 %v5471_v1  ;;  %v5472_v27 = vunpack.i.l.bf16 %v5471_v1 }
 0x5c3   : > { %v5466_v32 = vpop.permute.xlu0 %5465 }
 0x5c4   : > { %v5468_v57 = vunpack.i.h.bf16 %v5466_v32  ;;  %v5467_v63 = vunpack.i.l.bf16 %v5466_v32  ;;  %v6751_v32 = vsel %vm989_vm0, 1.0, %v7729_v62 }
 0x5c6   : > { %v2716_v48 = vsel %vm1156_vm3, %v5467_v63, %v5472_v27  ;;  %v2717_v19 = vsel %vm1156_vm3, %v5468_v57, %v5473_v20 }
 0x5c8   : > { %v5476_v6 = vpop.permute.xlu0 %5475 }
 0x5c9   : > { %v5478_v14 = vunpack.i.h.bf16 %v5476_v6  ;;  %v5477_v15 = vunpack.i.l.bf16 %v5476_v6 }
 0x5cb   : > { %v2725_v29 = vsel %vm2718_vm9, %v2716_v48, %v5477_v15  ;;  %v2726_v11 = vsel %vm2718_vm9, %v2717_v19, %v5478_v14 }
 0x5cc   : > { %v5486_v33 = vpop.permute.xlu0 %5485 }
 0x5cd   : > { %v5488_v58 = vunpack.i.h.bf16 %v5486_v33  ;;  %v5487_v3 = vunpack.i.l.bf16 %v5486_v33 }
 0x5cf   : > { %v2942_v54 = vsel %vm1368_vm4, %v6278_v61, %v5488_v58  ;;  %v2941_v59 = vsel %vm1368_vm4, %v6268_v44, %v5487_v3 }
 0x5d0   : > { %v5496_v24 = vpop.permute.xlu0 %5495  ;;  %v5241_v6 = vpack.c.bf16 %v2942_v54, %v2941_v59 }
 0x5d1   : > { %v5481_v13 = vpop.permute.xlu1 %5480  ;;  %v5498_v31 = vunpack.i.h.bf16 %v5496_v24  ;;  %v5497_v1 = vunpack.i.l.bf16 %v5496_v24 }
 0x5d2   : > { %v5483_v28 = vunpack.i.h.bf16 %v5481_v13  ;;  %v5482_v26 = vunpack.i.l.bf16 %v5481_v13 }
 0x5d3   : > { %v2946_v20 = vsel %vm1368_vm4, %v6329_v45, %v5498_v31  ;;  %v2945_v27 = vsel %vm1368_vm4, %v6322_v16, %v5497_v1 }
 0x5d4   : > { %v2734_v17 = vsel %vm2727_vm12, %v2725_v29, %v5482_v26  ;;  %v2735_v37 = vsel %vm2727_vm12, %v2726_v11, %v5483_v28  ;;  %v5506_v33 = vpop.permute.xlu0 %5505  ;;  %v5247_v48 = vpack.c.bf16 %v2946_v20, %v2945_v27  ;;  %vm3227_vm12 = vcmask 392192  }
 0x5d5   : > { %v5214_v40 = vpack.c.bf16 %v2735_v37, %v2734_v17  ;;  %v5491_v18 = vpop.permute.xlu1 %5490  ;;  %v5508_v19 = vunpack.i.h.bf16 %v5506_v33  ;;  %v5507_v13 = vunpack.i.l.bf16 %v5506_v33 }
 0x5d6   : > { %v5493_v12 = vunpack.i.h.bf16 %v5491_v18  ;;  %v5492_v49 = vunpack.i.l.bf16 %v5491_v18 }
 0x5d7   : > { %5215 = vmatpush3.bf16.msra.mxu0 %v5214_v40  ;;  %v3270_v28 = vsel %vm1368_vm4, %v6095_v47, %v5508_v19  ;;  %v3269_v26 = vsel %vm1368_vm4, %v6083_v39, %v5507_v13 }
 0x5d8   : > { %5240 = vmatprep.subr.bf16.mxu0 %v7724_v7  ;;  %v2944_v57 = vsel %vm1368_vm4, %v6308_v34, %v5493_v12  ;;  %v2943_v63 = vsel %vm1368_vm4, %v6301_v10, %v5492_v49  ;;  %v5516_v17 = vpop.permute.xlu0 %5515  ;;  %v5253_v37 = vpack.c.bf16 %v3270_v28, %v3269_v26 }
 0x5d9   : > { %v5501_v41 = vpop.permute.xlu1 %5500  ;;  %v5244_v23 = vpack.c.bf16 %v2944_v57, %v2943_v63  ;;  %v5518_v40 = vunpack.i.h.bf16 %v5516_v17  ;;  %v5517_v18 = vunpack.i.l.bf16 %v5516_v17 }
 0x5da   : > { %5022 = vmatmul.mubr.msk.f32.vlgmr.msra.gmra.mrb[24].mxu0 %vm2718_vm9, %v6751_v32  ;;  %v5503_v14 = vunpack.i.h.bf16 %v5501_v41  ;;  %v5502_v15 = vunpack.i.l.bf16 %v5501_v41 }
 0x5db   : > { %5242 = vmatpush3.bf16.msra.mxu0 %v5241_v6  ;;  %5075 = vmatprep.mubr.msk.f32.mxu0 %vm7692_vm1, %v7729_v62  ;;  %v3274_v24 = vsel %vm1368_vm4, %v6127_v0, %v5518_v40  ;;  %v3273_v6 = vsel %vm1368_vm4, %v6116_v60, %v5517_v18 }
 0x5dc   : > { %5243 = vmatprep.subr.bf16.mxu0 %v7724_v7  ;;  %v2948_v35 = vsel %vm1368_vm4, %v6339_v55, %v5503_v14  ;;  %v2947_v21 = vsel %vm1368_vm4, %v6336_v43, %v5502_v15  ;;  %v5259_v57 = vpack.c.bf16 %v3274_v24, %v3273_v6 }
 0x5dd   : > { %v5511_v58 = vpop.permute.xlu1 %5510  ;;  %v5250_v3 = vpack.c.bf16 %v2948_v35, %v2947_v21 }
 0x5de   : > { %v5513_v29 = vunpack.i.h.bf16 %v5511_v58  ;;  %v5512_v11 = vunpack.i.l.bf16 %v5511_v58 }
 0x5df   : > { %5245 = vmatpush3.bf16.msra.mxu0 %v5244_v23 }
 0x5e0   : > { %5246 = vmatprep.subr.bf16.mxu0 %v7724_v7  ;;  %v3272_v54 = vsel %vm1368_vm4, %v6111_v56, %v5513_v29  ;;  %v3271_v59 = vsel %vm1368_vm4, %v6098_v50, %v5512_v11 }
 0x5e1   : > { %v5521_v12 = vpop.permute.xlu1 %5520  ;;  %v5256_v49 = vpack.c.bf16 %v3272_v54, %v3271_v59 }
 0x5e2   : > { %v5523_v31 = vunpack.i.h.bf16 %v5521_v12  ;;  %v5522_v1 = vunpack.i.l.bf16 %v5521_v12 }
 0x5e3   : > { %5248 = vmatpush3.bf16.msra.mxu0 %v5247_v48 }
 0x5e4   : > { %5249 = vmatprep.subr.bf16.mxu0 %v7724_v7  ;;  %v3276_v63 = vsel %vm1368_vm4, %v6141_v9, %v5523_v31  ;;  %v3275_v41 = vsel %vm1368_vm4, %v6132_v4, %v5522_v1 }
 0x5e5   : > { %v5262_v23 = vpack.c.bf16 %v3276_v63, %v3275_v41 }
 0x5e7   : > { %5251 = vmatpush3.bf16.msra.mxu0 %v5250_v3 }
 0x5e8   : > { %5252 = vmatprep.subr.bf16.mxu0 %v7724_v7 }
 0x5ea   : > { %5076 = vmatmul.mubr.msk.f32.vlgmr.msra.gmra.mrb[26].mxu0 %vm2718_vm9, %v6751_v32 }
 0x5eb   : > { %5254 = vmatpush3.bf16.msra.mxu0 %v5253_v37  ;;  %5094 = vmatprep.mubr.msk.f32.mxu0 %vm7692_vm1, %v7729_v62 }
 0x5ec   : > { %5255 = vmatprep.subr.bf16.mxu0 %v7724_v7 }
 0x5ef   : > { %5257 = vmatpush3.bf16.msra.mxu0 %v5256_v49 }
 0x5f0   : > { %5258 = vmatprep.subr.bf16.mxu0 %v7724_v7 }
 0x5f2   : > { %v6802_v20 = vpop.permute.xlu1 %3035 }
 0x5f3   : > { %5260 = vmatpush3.bf16.msra.mxu0 %v5259_v57 }
 0x5f4   : > { %5261 = vmatprep.subr.bf16.mxu0 %v7724_v7 }
 0x5f6   : > { %v6804_v27 = vpop.permute.xlu1 %3047 }
 0x5f7   : > { %5263 = vmatpush3.bf16.msra.mxu0 %v5262_v23  ;;  %v3427_v14 = vsub.f32 %v6083_v39, %v6804_v27  ;;  %v3428_v15 = vsub.f32 %v6095_v47, %v6804_v27  ;;  %v3429_v33 = vsub.f32 %v6098_v50, %v6804_v27  ;;  %v3430_v48 = vsub.f32 %v6111_v56, %v6804_v27 }
 0x5f8   : > { %5288 = vmatprep.subr.bf16.mxu0 %v7724_v7  ;;  %v3431_v19 = vsub.f32 %v6116_v60, %v6804_v27  ;;  %v3432_v13 = vsub.f32 %v6127_v0, %v6804_v27  ;;  %v3433_v35 = vsub.f32 %v6132_v4, %v6804_v27  ;;  %v3434_v58 = vsub.f32 %v6141_v9, %v6804_v27 }
 0x5f9   : > { %v3435_v21 = vsel %vm1368_vm4, %v3427_v14, -inf  ;;  %v3442_v28 = vsel %vm1368_vm4, %v3428_v15, -inf  ;;  %v3449_v29 = vsel %vm1368_vm4, %v3429_v33, -inf  ;;  %v3456_v11 = vsel %vm1368_vm4, %v3430_v48, -inf }
 0x5fa   : > { %5095 = vmatmul.mubr.msk.f32.vlgmr.msra.gmra.mrb[28].mxu0 %vm2718_vm9, %v6751_v32  ;;  %v3436_v3 = vrot.slane %v3435_v21, 4  ;;  %v3443_v26 = vrot.slane %v3442_v28, 4  ;;  %v3463_v17 = vsel %vm1368_vm4, %v3431_v19, -inf  ;;  %v3450_v40 = vrot.slane %v3449_v29, 4 }
 0x5fb   : > { %5140 = vmatprep.mubr.msk.f32.mxu0 %vm7692_vm1, %v7729_v62  ;;  %v3457_v18 = vrot.slane %v3456_v11, 4  ;;  %v3464_v59 = vrot.slane %v3463_v17, 4  ;;  %v3470_v12 = vsel %vm1368_vm4, %v3432_v13, -inf  ;;  %v3477_v49 = vsel %vm1368_vm4, %v3433_v35, -inf }
 0x5fc   : > { %v3437_v37 = vmax.f32 %v3435_v21, %v3436_v3  ;;  %v3444_v54 = vmax.f32 %v3442_v28, %v3443_v26  ;;  %v3451_v6 = vmax.f32 %v3449_v29, %v3450_v40  ;;  %v3471_v1 = vrot.slane %v3470_v12, 4 }
 0x5fd   : > { %v3458_v31 = vmax.f32 %v3456_v11, %v3457_v18  ;;  %v3465_v63 = vmax.f32 %v3463_v17, %v3464_v59  ;;  %v3478_v41 = vrot.slane %v3477_v49, 4  ;;  %v3484_v23 = vsel %vm1368_vm4, %v3434_v58, -inf }
 0x5fe   : > { %v3438_v24 = vrot.slane %v3437_v37, 2  ;;  %v3445_v57 = vrot.slane %v3444_v54, 2  ;;  %v3452_v15 = vrot.slane %v3451_v6, 2  ;;  %v3472_v48 = vmax.f32 %v3470_v12, %v3471_v1 }
 0x5ff   : > { %v3459_v33 = vrot.slane %v3458_v31, 2  ;;  %v3466_v13 = vrot.slane %v3465_v63, 2  ;;  %v3479_v35 = vmax.f32 %v3477_v49, %v3478_v41  ;;  %v3485_v21 = vrot.slane %v3484_v23, 4 }
 0x600   : > { %v3439_v14 = vmax.f32 %v3437_v37, %v3438_v24  ;;  %v3446_v19 = vmax.f32 %v3444_v54, %v3445_v57  ;;  %v3453_v28 = vmax.f32 %v3451_v6, %v3452_v15  ;;  %v3473_v29 = vrot.slane %v3472_v48, 2 }
 0x601   : > { %v3460_v26 = vmax.f32 %v3458_v31, %v3459_v33  ;;  %v3467_v17 = vmax.f32 %v3465_v63, %v3466_v13  ;;  %v3480_v40 = vrot.slane %v3479_v35, 2  ;;  %v3486_v18 = vmax.f32 %v3484_v23, %v3485_v21 }
 0x602   : > { %v3440_v3 = vrot.slane %v3439_v14, 1  ;;  %v3447_v11 = vrot.slane %v3446_v19, 1  ;;  %v3454_v59 = vrot.slane %v3453_v28, 1  ;;  %v3474_v24 = vmax.f32 %v3472_v48, %v3473_v29 }
 0x603   : > { %v3461_v37 = vrot.slane %v3460_v26, 1  ;;  %v3468_v12 = vrot.slane %v3467_v17, 1  ;;  %v3481_v1 = vmax.f32 %v3479_v35, %v3480_v40  ;;  %v3487_v54 = vrot.slane %v3486_v18, 2 }
 0x604   : > { %v3441_v58 = vmax.f32 %v3439_v14, %v3440_v3  ;;  %v3448_v2 = vmax.f32 %v3446_v19, %v3447_v11  ;;  %v3455_v57 = vmax.f32 %v3453_v28, %v3454_v59  ;;  %v3475_v41 = vrot.slane %v3474_v24, 1 }
 0x605   : > { %v3462_v49 = vmax.f32 %v3460_v26, %v3461_v37  ;;  %v3114_v6 = vsub.f32 %v6268_v44, %v6804_v27  ;;  %v3469_v31 = vmax.f32 %v3467_v17, %v3468_v12  ;;  %v3482_v15 = vrot.slane %v3481_v1, 1 }
 0x606   : > { %v3488_v33 = vmax.f32 %v3486_v18, %v3487_v54  ;;  %v3517_v63 = vsel %vm3186_vm6, %v3448_v2, %v3441_v58  ;;  %v3476_v23 = vmax.f32 %v3474_v24, %v3475_v41  ;;  %v3115_v48 = vsub.f32 %v6278_v61, %v6804_v27 }
 0x607   : > { %v3518_v14 = vsel %vm3188_vm7, %v3455_v57, %v3517_v63  ;;  %v3116_v19 = vsub.f32 %v6301_v10, %v6804_v27  ;;  %v3483_v13 = vmax.f32 %v3481_v1, %v3482_v15  ;;  %v3117_v3 = vsub.f32 %v6308_v34, %v6804_v27 }
 0x608   : > { %v3489_v35 = vrot.slane %v3488_v33, 1  ;;  %v3519_v21 = vsel %vm3190_vm2, %v3462_v49, %v3518_v14  ;;  %v3118_v2 = vsub.f32 %v6322_v16, %v6804_v27  ;;  %v3119_v26 = vsub.f32 %v6329_v45, %v6804_v27 }
 0x609   : > { %v3520_v28 = vsel %vm3192_vm10, %v3469_v31, %v3519_v21  ;;  %v3120_v29 = vsub.f32 %v6336_v43, %v6804_v27  ;;  %v3121_v40 = vsub.f32 %v6339_v55, %v6804_v27  ;;  %v3122_v18 = vsel %vm1368_vm4, %v3114_v6, -inf }
 0x60a   : > { %v3490_v11 = vmax.f32 %v3488_v33, %v3489_v35  ;;  %v3521_v17 = vsel %vm3194_vm11, %v3476_v23, %v3520_v28  ;;  %v3123_v59 = vrot.slane %v3122_v18, 4  ;;  %v3129_v37 = vsel %vm1368_vm4, %v3115_v48, -inf }
 0x60b   : > { %v3522_v58 = vsel %vm3196_vm14, %v3483_v13, %v3521_v17  ;;  %v3136_v24 = vsel %vm1368_vm4, %v3116_v19, -inf  ;;  %v3130_v1 = vrot.slane %v3129_v37, 4  ;;  %v3143_v57 = vsel %vm1368_vm4, %v3117_v3, -inf }
 0x60c   : > { %v6856_v12 = vsel %vm3198_vm5, %v3490_v11, %v3522_v58  ;;  %v3137_v54 = vrot.slane %v3136_v24, 4  ;;  %v3124_v49 = vmax.f32 %v3122_v18, %v3123_v59  ;;  %v3144_v41 = vrot.slane %v3143_v57, 4 }
 0x60d   : > { %v3150_v31 = vsel %vm1368_vm4, %v3118_v2, -inf  ;;  %v3157_v6 = vsel %vm1368_vm4, %v3119_v26, -inf  ;;  %v3131_v15 = vmax.f32 %v3129_v37, %v3130_v1  ;;  %v3164_v19 = vsel %vm1368_vm4, %v3120_v29, -inf }
 0x60e   : > { %v3138_v33 = vmax.f32 %v3136_v24, %v3137_v54  ;;  %v3151_v63 = vrot.slane %v3150_v31, 4  ;;  %v3158_v23 = vrot.slane %v3157_v6, 4  ;;  %v3125_v14 = vrot.slane %v3124_v49, 2 }
 0x60f   : > { %v3145_v48 = vmax.f32 %v3143_v57, %v3144_v41  ;;  %v3171_v13 = vsel %vm1368_vm4, %v3121_v40, -inf  ;;  %v3132_v35 = vrot.slane %v3131_v15, 2  ;;  %v3165_v18 = vrot.slane %v3164_v19, 4 }
 0x610   : > { %v3139_v21 = vrot.slane %v3138_v33, 2  ;;  %v3152_v28 = vmax.f32 %v3150_v31, %v3151_v63  ;;  %v3159_v3 = vmax.f32 %v3157_v6, %v3158_v23  ;;  %v3126_v11 = vmax.f32 %v3124_v49, %v3125_v14 }
 0x611   : > { %v3146_v17 = vrot.slane %v3145_v48, 2  ;;  %v3172_v2 = vrot.slane %v3171_v13, 4  ;;  %v3133_v58 = vmax.f32 %v3131_v15, %v3132_v35  ;;  %v3166_v54 = vmax.f32 %v3164_v19, %v3165_v18 }
 0x612   : > { %v3140_v26 = vmax.f32 %v3138_v33, %v3139_v21  ;;  %v3153_v59 = vrot.slane %v3152_v28, 2  ;;  %v3160_v37 = vrot.slane %v3159_v3, 2  ;;  %v3127_v24 = vrot.slane %v3126_v11, 1 }
 0x613   : > { %v3147_v1 = vmax.f32 %v3145_v48, %v3146_v17  ;;  %v3173_v57 = vmax.f32 %v3171_v13, %v3172_v2  ;;  %v3134_v41 = vrot.slane %v3133_v58, 1  ;;  %v3167_v31 = vrot.slane %v3166_v54, 2 }
 0x614   : > { %v3141_v29 = vrot.slane %v3140_v26, 1  ;;  %v3154_v8 = vmax.f32 %v3152_v28, %v3153_v59  ;;  %v3161_v40 = vmax.f32 %v3159_v3, %v3160_v37  ;;  %v3128_v46 = vmax.f32 %v3126_v11, %v3127_v24 }
 0x615   : > { %v3148_v38 = vrot.slane %v3147_v1, 1  ;;  %v3174_v6 = vrot.slane %v3173_v57, 2  ;;  %v3135_v49 = vmax.f32 %v3133_v58, %v3134_v41  ;;  %v3168_v15 = vmax.f32 %v3166_v54, %v3167_v31 }
 0x616   : > { %v3142_v63 = vmax.f32 %v3140_v26, %v3141_v29  ;;  %v3155_v23 = vrot.slane %v3154_v8, 1  ;;  %v3162_v14 = vrot.slane %v3161_v40, 1  ;;  %v3365_v59 = vadd.f32 %v6804_v27, %v6098_v50 }
 0x617   : > { %v3175_v33 = vmax.f32 %v3173_v57, %v3174_v6  ;;  %v3149_v35 = vmax.f32 %v3147_v1, %v3148_v38  ;;  %v3211_v21 = vsel %vm3186_vm6, %v3135_v49, %v3128_v46  ;;  %v3169_v19 = vrot.slane %v3168_v15, 1 }
 0x618   : > { %v3156_v48 = vmax.f32 %v3154_v8, %v3155_v23  ;;  %v3212_v17 = vsel %vm3188_vm7, %v3142_v63, %v3211_v21  ;;  %v3163_v28 = vmax.f32 %v3161_v40, %v3162_v14  ;;  %v3363_v46 = vadd.f32 %v6804_v27, %v6083_v39 }
 0x619   : > { %v3176_v13 = vrot.slane %v3175_v33, 1  ;;  %v3213_v3 = vsel %vm3190_vm2, %v3149_v35, %v3212_v17  ;;  %v3170_v11 = vmax.f32 %v3168_v15, %v3169_v19  ;;  %v3364_v8 = vadd.f32 %v6804_v27, %v6095_v47 }
 0x61a   : > { %v3214_v18 = vsel %vm3192_vm10, %v3156_v48, %v3213_v3  ;;  %v3371_v37 = vsel %vm1368_vm4, %v3363_v46, inf  ;;  %v3050_v57 = vadd.f32 %v6804_v27, %v6268_v44  ;;  %v3051_v41 = vadd.f32 %v6804_v27, %v6278_v61 }
 0x61b   : > { %v3177_v2 = vmax.f32 %v3175_v33, %v3176_v13  ;;  %v3215_v58 = vsel %vm3194_vm11, %v3163_v28, %v3214_v18  ;;  %v3378_v24 = vsel %vm1368_vm4, %v3364_v8, inf  ;;  %v3366_v29 = vadd.f32 %v6804_v27, %v6111_v56 }
 0x61c   : > { %v3216_v26 = vsel %vm3196_vm14, %v3170_v11, %v3215_v58  ;;  %v3372_v40 = vrot.slane %v3371_v37, 4  ;;  %v3379_v31 = vrot.slane %v3378_v24, 4  ;;  %v3385_v6 = vsel %vm1368_vm4, %v3365_v59, inf }
 0x61d   : > { %v6870_v38 = vsel %vm3198_vm5, %v3177_v2, %v3216_v26  ;;  %v3052_v49 = vadd.f32 %v6804_v27, %v6301_v10  ;;  %v3058_v63 = vsel %vm1368_vm4, %v3050_v57, inf  ;;  %v3065_v44 = vsel %vm1368_vm4, %v3051_v41, inf }
 0x61e   : > { %v3373_v23 = vmin.f32 %v3371_v37, %v3372_v40  ;;  %v3380_v14 = vmin.f32 %v3378_v24, %v3379_v31  ;;  %v3386_v61 = vrot.slane %v3385_v6, 4  ;;  %v3392_v15 = vsel %vm1368_vm4, %v3366_v29, inf }
 0x61f   : > { %v3367_v33 = vadd.f32 %v6804_v27, %v6116_v60  ;;  %v3053_v35 = vadd.f32 %v6804_v27, %v6308_v34  ;;  %v3059_v21 = vrot.slane %v3058_v63, 4  ;;  %v3066_v48 = vrot.slane %v3065_v44, 4 }
 0x620   : > { %v3072_v19 = vsel %vm1368_vm4, %v3052_v49, inf  ;;  %v3368_v10 = vadd.f32 %v6804_v27, %v6127_v0  ;;  %v3369_v13 = vadd.f32 %v6804_v27, %v6132_v4  ;;  %v3393_v17 = vrot.slane %v3392_v15, 4 }
 0x621   : > { %v3374_v28 = vrot.slane %v3373_v23, 2  ;;  %v3381_v3 = vrot.slane %v3380_v14, 2  ;;  %v3387_v11 = vmin.f32 %v3385_v6, %v3386_v61  ;;  %v3399_v18 = vsel %vm1368_vm4, %v3367_v33, inf }
 0x622   : > { %v3073_v2 = vrot.slane %v3072_v19, 4  ;;  %v3054_v34 = vadd.f32 %v6804_v27, %v6322_v16  ;;  %v3060_v58 = vmin.f32 %v3058_v63, %v3059_v21  ;;  %v3067_v26 = vmin.f32 %v3065_v44, %v3066_v48 }
 0x623   : > { %v3079_v46 = vsel %vm1368_vm4, %v3053_v35, inf  ;;  %v3370_v8 = vadd.f32 %v6804_v27, %v6141_v9  ;;  %v3394_v59 = vmin.f32 %v3392_v15, %v3393_v17  ;;  %v3406_v37 = vsel %vm1368_vm4, %v3368_v10, inf }
 0x624   : > { %v3413_v24 = vsel %vm1368_vm4, %v3369_v13, inf  ;;  %v3388_v57 = vrot.slane %v3387_v11, 2  ;;  %v3400_v41 = vrot.slane %v3399_v18, 4  ;;  %v3055_v29 = vadd.f32 %v6804_v27, %v6329_v45 }
 0x625   : > { %v3074_v16 = vmin.f32 %v3072_v19, %v3073_v2  ;;  %v3080_v40 = vrot.slane %v3079_v46, 4  ;;  %v3407_v6 = vrot.slane %v3406_v37, 4  ;;  %v3061_v49 = vrot.slane %v3060_v58, 2 }
 0x626   : > { %v3068_v63 = vrot.slane %v3067_v26, 2  ;;  %v3086_v44 = vsel %vm1368_vm4, %v3054_v34, inf  ;;  %v3395_v15 = vrot.slane %v3394_v59, 2  ;;  %v3414_v33 = vrot.slane %v3413_v24, 4 }
 0x627   : > { %v3389_v45 = vmin.f32 %v3387_v11, %v3388_v57  ;;  %v3401_v48 = vmin.f32 %v3399_v18, %v3400_v41  ;;  %v3075_v19 = vrot.slane %v3074_v16, 2  ;;  %v3081_v10 = vmin.f32 %v3079_v46, %v3080_v40 }
 0x628   : > { %v3087_v13 = vrot.slane %v3086_v44, 4  ;;  %v3093_v17 = vsel %vm1368_vm4, %v3055_v29, inf  ;;  %v3062_v2 = vmin.f32 %v3060_v58, %v3061_v49  ;;  %v3069_v34 = vmin.f32 %v3067_v26, %v3068_v63 }
 0x629   : > { %v3415_v30 = vmin.f32 %v3413_v24, %v3414_v33  ;;  %v3390_v9 = vrot.slane %v3389_v45, 1  ;;  %v3402_v11 = vrot.slane %v3401_v48, 2  ;;  %v3094_v18 = vrot.slane %v3093_v17, 4 }
 0x62a   : > { %v3076_v46 = vmin.f32 %v3074_v16, %v3075_v19  ;;  %v3082_v41 = vrot.slane %v3081_v10, 2  ;;  %v3088_v40 = vmin.f32 %v3086_v44, %v3087_v13  ;;  %v3063_v29 = vrot.slane %v3062_v2, 1  ;;  %v6925_v13 = vpop.permute.xlu0 %3021 }
 0x62b   : > { %v3416_v26 = vrot.slane %v3415_v30, 2  ;;  %v3391_v49 = vmin.f32 %v3389_v45, %v3390_v9  ;;  %v3095_v63 = vmin.f32 %v3093_v17, %v3094_v18  ;;  %7730 = vst [vmem:[#allocation37_spill] sm:$0xff] %v6925_v13 }
 0x62c   : > { %v3083_v33 = vmin.f32 %v3081_v10, %v3082_v41  ;;  %v3064_v16 = vmin.f32 %v3062_v2, %v3063_v29 }
 0x62d   : > { %v3096_v45 = vrot.slane %v3095_v63, 2 }
 0x62e   : > { %v3084_v10 = vrot.slane %v3083_v33, 1 }
 0x6ad   : > { %v2805_v1 = vpop.f32.mrb[24].mxu0 }
 0x6ae   : > { %5057 = vmatmul.mubr.f32.vlgmr.msra.gmra.mrb[26].mxu1 %v2805_v1  ;;  %v5023_v54 = vpop.f32.mrb[25].mxu0  ;;  %v3375_v1 = vmin.f32 %v3373_v23, %v3374_v28  ;;  %v3420_v23 = vsel %vm1368_vm4, %v3370_v8, inf  ;;  %v3408_v28 = vmin.f32 %v3406_v37, %v3407_v6  ;;  %v3057_v8 = vadd.f32 %v6804_v27, %v6339_v55 }
 0x6af   : > { %5129 = vmatprep.mubr.msk.f32.mxu1 %vm7692_vm1, %v7729_v62  ;;  %v3382_v54 = vmin.f32 %v3380_v14, %v3381_v3  ;;  %v3056_v14 = vadd.f32 %v6804_v27, %v6336_v43  ;;  %v3421_v3 = vrot.slane %v3420_v23, 4  ;;  %v3070_v37 = vrot.slane %v3069_v34, 1 }
 0x6b0   : > { %v3376_v35 = vrot.slane %v3375_v1, 1  ;;  %v3409_v58 = vrot.slane %v3408_v28, 2  ;;  %v3107_v24 = vsel %vm1368_vm4, %v3057_v8, inf  ;;  %v3403_v27 = vmin.f32 %v3401_v48, %v3402_v11 }
 0x6b1   : > { %v3383_v21 = vrot.slane %v3382_v54, 1  ;;  %v3100_v43 = vsel %vm1368_vm4, %v3056_v14, inf  ;;  %v3071_v14 = vmin.f32 %v3069_v34, %v3070_v37 }
 0x6b2   : > { %v3377_v25 = vmin.f32 %v3375_v1, %v3376_v35  ;;  %v3101_v6 = vrot.slane %v3100_v43, 4  ;;  %v3108_v35 = vrot.slane %v3107_v24, 4 }
 0x6b3   : > { %v3384_v57 = vmin.f32 %v3382_v54, %v3383_v21  ;;  %v3089_v54 = vrot.slane %v3088_v40, 2  ;;  %v3410_v21 = vmin.f32 %v3408_v28, %v3409_v58  ;;  %v3187_v34 = vsel %vm3186_vm6, %v3071_v14, %v3064_v16 }
 0x6b4   : > { %v3102_v44 = vmin.f32 %v3100_v43, %v3101_v6  ;;  %v3109_v2 = vmin.f32 %v3107_v24, %v3108_v35  ;;  %v3085_v24 = vmin.f32 %v3083_v33, %v3084_v10 }
 0x6b5   : > { %v3499_v1 = vsel %vm3186_vm6, %v3384_v57, %v3377_v25  ;;  %v3090_v8 = vmin.f32 %v3088_v40, %v3089_v54  ;;  %v3097_v40 = vmin.f32 %v3095_v63, %v3096_v45 }
 0x6b6   : > { %v3500_v9 = vsel %vm3188_vm7, %v3391_v49, %v3499_v1  ;;  %v3103_v11 = vrot.slane %v3102_v44, 2 }
 0x6b7   : > { %v3091_v6 = vrot.slane %v3090_v8, 1  ;;  %v3098_v54 = vrot.slane %v3097_v40, 1 }
 0x6b8   : > { %v3104_v49 = vmin.f32 %v3102_v44, %v3103_v11 }
 0x6b9   : > { %v3092_v33 = vmin.f32 %v3090_v8, %v3091_v6 }
 0x6ba   : > { %v3105_v45 = vrot.slane %v3104_v49, 1 }
 0x6bc   : > { %v3106_v11 = vmin.f32 %v3104_v49, %v3105_v45  ;;  %v3544_v49 = vld [vmem:[%s7568_s15 + $0x28] sm:$0xff] }
 0x6bd   : > { %v6913_v31 = vpop.f32.mrb[26].mxu0 }
 0x6be   : > { %v5077_v61 = vpop.f32.mrb[27].mxu0  ;;  %v6933_v28 = vmul.f32 %v6925_v13, %v6913_v31 }
 0x6bf   : > { %v3396_v61 = vmin.f32 %v3394_v59, %v3395_v15  ;;  %v3422_v59 = vmin.f32 %v3420_v23, %v3421_v3  ;;  %v3077_v15 = vrot.slane %v3076_v46, 1  ;;  %v3404_v23 = vrot.slane %v3403_v27, 1 }
 0x6c0   : > { %v3417_v3 = vmin.f32 %v3415_v30, %v3416_v26 }
 0x6c1   : > { %v3397_v55 = vrot.slane %v3396_v61, 1  ;;  %v3423_v19 = vrot.slane %v3422_v59, 2  ;;  %v3078_v17 = vmin.f32 %v3076_v46, %v3077_v15  ;;  %v3405_v57 = vmin.f32 %v3403_v27, %v3404_v23 }
 0x6c2   : > { %v3411_v46 = vrot.slane %v3410_v21, 1  ;;  %v3418_v41 = vrot.slane %v3417_v3, 1  ;;  %v3032_v27 = vmul.f32 %v6933_v28, %v6933_v28 }
 0x6c3   : > { %v3398_v48 = vmin.f32 %v3396_v61, %v3397_v55  ;;  %v3424_v18 = vmin.f32 %v3422_v59, %v3423_v19  ;;  %v3189_v58 = vsel %vm3188_vm7, %v3078_v17, %v3187_v34  ;;  %v3110_v55 = vrot.slane %v3109_v2, 2 }
 0x6c4   : > { %v3025_v59 = vmul.f32 2.0, %v6933_v28  ;;  %v3412_v15 = vmin.f32 %v3410_v21, %v3411_v46  ;;  %v3191_v16 = vsel %vm3190_vm2, %v3085_v24, %v3189_v58  ;;  %v3419_v14 = vmin.f32 %v3417_v3, %v3418_v41  ;;  %v3540_v46 = vld [vmem:[%s7568_s15 + $0x8] sm:$0xff]  ;;  %v3541_v41 = vld [vmem:[%s7568_s15 + $0x10] sm:$0xff]  ;;  %v3543_v24 = vld [vmem:[%s7568_s15 + $0x20] sm:$0xff] }
 0x6c5   : > { %v3501_v61 = vsel %vm3190_vm2, %v3398_v48, %v3500_v9  ;;  %v3425_v44 = vrot.slane %v3424_v18, 1  ;;  %v3111_v19 = vmin.f32 %v3109_v2, %v3110_v55  ;;  %v3038_v9 = vmul.f32 %v6802_v20, %v3032_v27 }
 0x6c6   : > { %v3502_v26 = vsel %vm3192_vm10, %v3405_v57, %v3501_v61  ;;  %v3026_v23 = vmul.f32 %v3025_v59, %v6913_v31  ;;  %v3193_v21 = vsel %vm3192_vm10, %v3092_v33, %v3191_v16  ;;  %v3099_v48 = vmin.f32 %v3097_v40, %v3098_v54  ;;  %v3546_v54 = vld [vmem:[%s7568_s15 + $0x38] sm:$0xff]  ;;  %v3547_v33 = vld [vmem:[%s7568_s15 + $0x40] sm:$0xff] }
 0x6c7   : > { %v3503_v35 = vsel %vm3194_vm11, %v3412_v15, %v3502_v26  ;;  %v3426_v8 = vmin.f32 %v3424_v18, %v3425_v44  ;;  %v3112_v3 = vrot.slane %v3111_v19, 1  ;;  %v3539_v18 = vld [vmem:[%s7568_s15] sm:$0xff]  ;;  %v3545_v15 = vld [vmem:[%s7568_s15 + $0x30] sm:$0xff] }
 0x6c8   : > { %v3504_v17 = vsel %vm3196_vm14, %v3419_v14, %v3503_v35  ;;  %v3195_v10 = vsel %vm3194_vm11, %v3099_v48, %v3193_v21  ;;  %v3548_v14 = vld [vmem:[%s7568_s15 + $0x48] sm:$0xff]  ;;  %v3550_v35 = vld [vmem:[%s7568_s15 + $0x58] sm:$0xff]  ;;  %v3553_v21 = vld [vmem:[%s7568_s15 + $0x70] sm:$0xff] }
 0x6c9   : > { %v3505_v2 = vsel %vm3198_vm5, %v3426_v8, %v3504_v17  ;;  %v3113_v34 = vmin.f32 %v3111_v19, %v3112_v3  ;;  %v5277_v44 = vpack.c.bf16 %v3548_v14, %v3547_v33  ;;  %v3554_v48 = vld [vmem:[%s7568_s15 + $0x78] sm:$0xff] }
 0x6ca   : > { %v5286_v17 = vpack.c.bf16 %v3554_v48, %v3553_v21 }
 0x6cd   : > { %v6928_v25 = vpop.f32.mrb[28].mxu0 }
 0x6ce   : > { %v6937_v30 = vmul.f32 %v6928_v25, %v6925_v13  ;;  %v5096_v43 = vpop.f32.mrb[29].mxu0 }
 0x6d0   : > { %v3348_v29 = vmul.f32 2.0, %v6937_v30  ;;  %v3355_v37 = vmul.f32 %v6937_v30, %v6937_v30 }
 0x6d2   : > { %v3349_v63 = vmul.f32 %v3348_v29, %v6928_v25  ;;  %v3356_v1 = vmul.f32 %v3355_v37, %v6802_v20  ;;  %v3197_v20 = vsel %vm3196_vm14, %v3106_v11, %v3195_v10  ;;  %v5265_v29 = vpack.c.bf16 %v3540_v46, %v3539_v18  ;;  %v3542_v37 = vld [vmem:[%s7568_s15 + $0x18] sm:$0xff] }
 0x6d3   : > { %v3199_v43 = vsel %vm3198_vm5, %v3113_v34, %v3197_v20  ;;  %v5268_v58 = vpack.c.bf16 %v3542_v37, %v3541_v41 }
 0x6d4   : > { %3358 = vrot.lane.b32.xlu1 %v3356_v1, %s5692_s29  ;;  %3351 = vrot.lane.b32.xlu0 %v3349_v63, %s5692_s29  ;;  %v5271_v1 = vpack.c.bf16 %v3544_v49, %v3543_v24  ;;  %v4723_v49 = vld [vmem:[%s7568_s15 + $0x80] ss:$0 sm:$0xff] }
 0x6d5   : > { %5266 = vmatpush3.bf16.msra.mxu1 %v5265_v29 }
 0x6d6   : > { %5267 = vmatprep.subr.bf16.mxu1 %v7724_v7 }
 0x6d8   : > { %3040 = vrot.lane.b32.xlu1 %v3038_v9, %s5692_s29  ;;  %3028 = vrot.lane.b32.xlu0 %v3026_v23, %s5692_s29  ;;  %v3551_v23 = vld [vmem:[%s7568_s15 + $0x60] sm:$0xff]  ;;  %v3552_v9 = vld [vmem:[%s7568_s15 + $0x68] sm:$0xff] }
 0x6d9   : > { %5269 = vmatpush3.bf16.msra.mxu1 %v5268_v58  ;;  %v5283_v45 = vpack.c.bf16 %v3552_v9, %v3551_v23  ;;  %v3650_v58 = vld [vmem:[%s7569_s16] sm:$0xff] }
 0x6da   : > { %5270 = vmatprep.subr.bf16.mxu1 %v7724_v7 }
 0x6dc   : > { %3506 = vrot.lane.b32.xlu0 %v3505_v2, %s5692_s29 }
 0x6dd   : > { %5272 = vmatpush3.bf16.msra.mxu1 %v5271_v1  ;;  %v3653_v1 = vld [vmem:[%s7569_s16 + $0x18] sm:$0xff] }
 0x6de   : > { %5273 = vmatprep.subr.bf16.mxu1 %v7724_v7 }
 0x6e0   : > { %3200 = vrot.lane.b32.xlu0 %v3199_v43, %s5692_s29 }
 0x746   : > { %v3359_v61 = vpop.permute.xlu1 %3358  ;;  %v3352_v57 = vpop.permute.xlu0 %3351 }
 0x747   : > { %v3354_v40 = vsub.f32 %v6928_v25, %v3352_v57 }
 0x749   : > { %v3361_v6 = vadd.f32 %v3359_v61, %v3354_v40 }
 0x74a   : > { %v3029_v26 = vpop.permute.xlu0 %3028  ;;  %v3041_v59 = vpop.permute.xlu1 %3040 }
 0x74b   : > { %v3362_v25 = vmul.f32 %v3361_v6, %v6925_v13  ;;  %v3031_v55 = vsub.f32 %v6913_v31, %v3029_v26  ;;  %v3651_v26 = vld [vmem:[%s7569_s16 + $0x8] sm:$0xff] }
 0x74c   : > { %v5289_v24 = vpack.c.bf16 %v3651_v26, %v3650_v58 }
 0x74d   : > { %v5526_v27 = vpack.i.bf16 %v3362_v25, %v6856_v12  ;;  %v3043_v63 = vadd.f32 %v3041_v59, %v3031_v55  ;;  %v5274_v12 = vpack.c.bf16 %v3546_v54, %v3545_v15  ;;  %v4052_v15 = vld [vmem:[%s7570_s17] sm:$0xff] }
 0x74e   : > { %v3507_v10 = vpop.permute.xlu0 %3506  ;;  %5290 = vmatpush3.bf16.msra.mxu0 %v5289_v24 }
 0x74f   : > { %v3044_v16 = vmul.f32 %v3043_v63, %v6925_v13  ;;  %5527 = vrot.lane.b32.xlu1 %v5526_v27, %s5695_s25  ;;  %5275 = vmatpush3.bf16.msra.mxu1 %v5274_v12  ;;  %v3531_v34 = vsel %vm1368_vm4, %v6937_v30, %v3507_v10  ;;  %v3652_v63 = vld [vmem:[%s7569_s16 + $0x10] sm:$0xff]  ;;  %v4725_v10 = vld [vmem:[%s7569_s16 + $0x20] ss:$0 sm:$0xff] }
 0x750   : > { %5276 = vmatprep.subr.bf16.mxu1 %v7724_v7  ;;  %5291 = vmatprep.subr.bf16.mxu0 %v7724_v7  ;;  %v5292_v54 = vpack.c.bf16 %v3653_v1, %v3652_v63 }
 0x751   : > { %v5531_v31 = vpack.i.bf16 %v3044_v16, %v6870_v38  ;;  %v3549_v38 = vld [vmem:[%s7568_s15 + $0x50] sm:$0xff]  ;;  %v4053_v16 = vld [vmem:[%s7570_s17 + $0x8] sm:$0xff] }
 0x752   : > { %v5280_v19 = vpack.c.bf16 %v3550_v35, %v3549_v38  ;;  %v3201_v18 = vpop.permute.xlu0 %3200  ;;  %v5294_v33 = vpack.c.bf16 %v4053_v16, %v4052_v15  ;;  %5293 = vmatpush3.bf16.msra.mxu0 %v5292_v54  ;;  %v3642_v35 = vsub.s32 0, %v5974_v42  ;;  %v7734_v42 = vld [vmem:[#allocation27_spill] sm:$0xff] }
 0x753   : > { %5532 = vrot.lane.b32.xlu1 %v5531_v31, %s5695_s25  ;;  %5278 = vmatpush3.bf16.msra.mxu1 %v5277_v44  ;;  %v3225_v41 = vsel %vm1368_vm4, %v6933_v28, %v3201_v18  ;;  %v4720_v28 = vld [vmem:[%s7567_s14 + $0x80] ss:$0 sm:$0xff]  ;;  %v3638_v44 = vld [vmem:[%s829_s5 + $0x1] sm:$0x1] }
 0x754   : > { %5279 = vmatprep.subr.bf16.mxu1 %v7724_v7  ;;  %5295 = vmatprep.subr.bf16.mxu0 %v5294_v33  ;;  %v3639_v38 = vadd.f32 1.0, %v3638_v44 }
 0x757   : > { %5281 = vmatpush3.bf16.msra.mxu1 %v5280_v19  ;;  %v3643_v19 = vrot.slane %v3639_v38, %v3642_v35 }
 0x758   : > { %5282 = vmatprep.subr.bf16.mxu1 %v7724_v7 }
 0x75b   : > { %5284 = vmatpush3.bf16.msra.mxu1 %v5283_v45  ;;  %v4724_v45 = vld [vmem:[%s829_s5] ss:$0 sm:$0xff]  ;;  %s7738_s5 = sld [smem:[#allocation44_spill]] }
 0x75c   : > { %5285 = vmatprep.subr.bf16.mxu1 %v7724_v7 }
 0x75f   : > { %5287 = vmatpush3.bf16.msra.mxu1 %v5286_v17  ;;  %v7735_v17 = vld [vmem:[#allocation25_spill] sm:$0xff] }
 0x761   : > { %s821_s29 = scalar_lea.vmem %s7738_s5, %s5906_s26  ;;  %s7432_s5 = scalar_lea.hbm %s7572_s19, %s4739_s0 }
 0x781   : > { %v2896_v8 = vpop.f32.mrb[26].mxu1 }
 0x782   : > { %v5058_v3 = vpop.f32.mrb[27].mxu1  ;;  %v2897_v25 = vadd.f32 %v4720_v28, %v2896_v8  ;;  %v7736_v8 = vld [vmem:[#allocation28_spill] sm:$0xff] }
 0x783   : > { %v7737_v3 = vld [vmem:[#allocation26_spill] sm:$0xff] }
 0x784   : > { %v2900_v31 = vmul.f32 %v2897_v25, %v6025_v5 }
 0x7c1   : > { %v5528_v11 = vpop.permute.xlu1 %5527 }
 0x7c2   : > { %v5530_v2 = vunpack.i.h.bf16 %v5528_v11  ;;  %v5529_v20 = vunpack.i.l.bf16 %v5528_v11 }
 0x7c4   : > { %v3532_v43 = vsel %vm1156_vm3, %v3531_v34, %v5529_v20 }
 0x7c5   : > { %v3533_v61 = vsel %vm3227_vm12, %v3532_v43, %v5530_v2  ;;  %v5533_v57 = vpop.permute.xlu1 %5532 }
 0x7c6   : > { %3535 = vrot.lane.b32.xlu0 %v3533_v61, %s5700_s3  ;;  %v5534_v46 = vunpack.i.l.bf16 %v5533_v57  ;;  %v5535_v40 = vunpack.i.h.bf16 %v5533_v57  ;;  %v4735_v61 = vld [vmem:[%s7571_s18] ss:$0 sm:$0xff] }
 0x7c8   : > { %v3226_v29 = vsel %vm1156_vm3, %v3225_v41, %v5534_v46 }
 0x7c9   : > { %v3228_v37 = vsel %vm3227_vm12, %v3226_v29, %v5535_v40 }
 0x838   : > { %v3536_v6 = vpop.permute.xlu0 %3535 }
 0x839   : > { %v3538_v30 = vsel %vm2718_vm9, %v3228_v37, %v3536_v6 }
 0x83a   : > { %5130 = vmatmul.mubr.f32.vlgmr.msra.gmra.mrb[28].mxu1 %v3538_v30 }
 0x90d   : > { %v3626_v55 = vpop.f32.mrb[28].mxu1 }
 0x90e   : > { %v3627_v59 = vadd.f32 %v4723_v49, %v3626_v55  ;;  %v5131_v27 = vpop.f32.mrb[29].mxu1 }
 0x910   : > { %v3630_v12 = vadd.f32 1.0, %v3627_v59 }
 0x912   : > { %3633 = vrot.lane.b32.xlu1 %v3630_v12, %s5693_s27  ;;  %v3631_v14 = vmul.f32 %v3630_v12, %v2900_v31  ;;  %s7095_s27 = sand.u32 1, %s5677_s28  }
 0x913   : > { %s4647_s21 = sshll.u32 %s7095_s27, 3 }
 0x914   : > { %s7105_s23 = scalar_lea.vmem [#allocation2], %s4647_s21  ;;  %s5702_s21 = smov 127  }
 0x984   : > { %v3634_v23 = vpop.permute.xlu1 %3633 }
 0x985   : > { %v3636_v9 = vmul.f32 %v3634_v23, %v3631_v14 }
 0x987   : > { %v3644_v21 = vmul.f32 %v3643_v19, %v3636_v9  ;;  %v7121_v19 = vld [vmem:[%s821_s29] sm:$0xff]  ;;  %s4398_s29 = sshll.u32 %s7105_s23, 4  ;;  %s4399_s29 = int_to_ptr.vmem [resolvable:$true] %s4398_s29 }
 0x988   : > { %7739 = vst [vmem:[#allocation27_spill] sm:$0xff] %v7121_v19  ;;  %p5598_p0 = scmp.lt.s32.totalorder %s4399_s29, %s5596_s8 }
 0x989   : > { %v7071_v48 = vadd.f32 %v4724_v45, %v3644_v21 }
 0x98b   : > { %7733 = vst [vmem:[#allocation38_spill] sm:$0xff] %v7071_v48  ;;  %5141 = vmatmul.mubr.msk.f32.vlgmr.msra.gmra.mrb[30].mxu0 %vm1156_vm3, %v7071_v48 }
 0x98c   : > { %5297 = vmatpush3.bf16.msra.mxu0 %v5294_v33  ;;  %5147 = vmatprep.mubr.msk.f32.mxu0 %vm1368_vm4, %v6248_v22 }
 0x98d   : > { %5298 = vmatprep.subr.bf16.mxu0 %v7724_v7 }
 0x98f   : > { %5148 = vmatmul.mubr.msk.f32.vlgmr.msra.gmra.mrb[32].mxu0 %vm1368_vm4, %v6234_v51 }
 0x990   : > { %5150 = vmatprep.mubr.msk.f32.mxu0 %vm1368_vm4, %v6275_v53 }
 0x993   : > { %5151 = vmatmul.mubr.msk.f32.gmra.mrb[34].mxu0 %vm1368_vm4, %v6260_v52 }
 0x994   : > { %5153 = vmatprep.mubr.msk.f32.mxu0 %vm1368_vm4, %v7734_v42 }
 0x997   : > { %5154 = vmatmul.mubr.msk.f32.gmra.mrb[36].mxu0 %vm1368_vm4, %v7735_v17 }
 0x998   : > { %5156 = vmatprep.mubr.msk.f32.mxu0 %vm1368_vm4, %v7736_v8 }
 0x99b   : > { %5157 = vmatmul.mubr.msk.f32.gmra.mrb[38].mxu0 %vm1368_vm4, %v7737_v3 }
 0x99c   : > { %5175 = vmatprep.mubr.msk.f32.mxu0 %vm7692_vm1, %v7729_v62  ;;  %vm3771_vm1 = vcmask 1040384  }
 0xa5e   : > { %v3728_v11 = vpop.f32.mrb[30].mxu0 }
 0xa5f   : > { %v3729_v2 = vadd.f32 %v4725_v10, %v3728_v11  ;;  %v5142_v20 = vpop.f32.mrb[31].mxu0 }
 0xa61   : > { %v3732_v34 = vmul.f32 %v3729_v2, %v6025_v5 }
 0xa62   : > { %v5149_v43 = vpop.f32.mrb[32].mxu0 }
 0xa63   : > { %v4184_v57 = vmax.f32 %v5149_v43, 0.0  ;;  %v4144_v62 = vpop.f32.mrb[33].mxu0  ;;  %3733 = vst.msk [vmem:[%s7105_s23] sm:$0xff] %vm1156_vm3, %v3732_v34 }
 0xa64   : > { %v4183_v18 = vmax.f32 %v4144_v62, 0.0 }
 0xa65   : > { %v4199_v46 = vmul.f32 %v4735_v61, %v4184_v57 }
 0xa66   : > { %v4198_v41 = vmul.f32 %v4735_v61, %v4183_v18  ;;  %v5152_v40 = vpop.f32.mrb[34].mxu0 }
 0xa67   : > { %v4186_v29 = vmax.f32 %v5152_v40, 0.0  ;;  %v4154_v37 = vpop.f32.mrb[35].mxu0  ;;  %v4209_v6 = vsel %vm1368_vm4, %v4199_v46, 0.0  ;;  %v937_v46 = vmul.f32 %v6636_v36, %v6636_v36 }
 0xa68   : > { %v4185_v30 = vmax.f32 %v4154_v37, 0.0  ;;  %4210 = vadd.xlane.f32.xlu1 %v4209_v6  ;;  %v4206_v58 = vsel %vm1368_vm4, %v4198_v41, 0.0 }
 0xa69   : > { %v4201_v26 = vmul.f32 %v4735_v61, %v4186_v29  ;;  %4207 = vadd.xlane.f32.xlu0 %v4206_v58 }
 0xa6a   : > { %v5155_v24 = vpop.f32.mrb[36].mxu0  ;;  %v4200_v28 = vmul.f32 %v4735_v61, %v4185_v30 }
 0xa6b   : > { %v4164_v49 = vpop.f32.mrb[37].mxu0  ;;  %v4215_v25 = vsel %vm1368_vm4, %v4201_v26, 0.0  ;;  %v4188_v55 = vmax.f32 %v5155_v24, 0.0 }
 0xa6c   : > { %v4187_v59 = vmax.f32 %v4164_v49, 0.0  ;;  %v4212_v15 = vsel %vm1368_vm4, %v4200_v28, 0.0 }
 0xa6d   : > { %4216 = vadd.xlane.f32.xlu0 %v4215_v25  ;;  %v4203_v54 = vmul.f32 %v4735_v61, %v4188_v55 }
 0xa6e   : > { %v4202_v27 = vmul.f32 %v4735_v61, %v4187_v59  ;;  %v5158_v63 = vpop.f32.mrb[38].mxu0 }
 0xa6f   : > { %v4174_v1 = vpop.f32.mrb[39].mxu0  ;;  %v4190_v16 = vmax.f32 %v5158_v63, 0.0  ;;  %v4221_v44 = vsel %vm1368_vm4, %v4203_v54, 0.0 }
 0xa70   : > { %v4189_v31 = vmax.f32 %v4174_v1, 0.0  ;;  %v4218_v12 = vsel %vm1368_vm4, %v4202_v27, 0.0 }
 0xa71   : > { %4213 = vadd.xlane.f32.xlu0 %v4212_v15  ;;  %4219 = vadd.xlane.f32.xlu1 %v4218_v12  ;;  %v4205_v14 = vmul.f32 %v4735_v61, %v4190_v16 }
 0xa72   : > { %v4204_v33 = vmul.f32 %v4735_v61, %v4189_v31 }
 0xa73   : > { %v4227_v35 = vsel %vm1368_vm4, %v4205_v14, 0.0 }
 0xa74   : > { %v4224_v38 = vsel %vm1368_vm4, %v4204_v33, 0.0 }
 0xa75   : > { %4222 = vadd.xlane.f32.xlu0 %v4221_v44  ;;  %4225 = vadd.xlane.f32.xlu1 %v4224_v38 }
 0xa79   : > { %4228 = vadd.xlane.f32.xlu0 %v4227_v35 }
 0xaf5   : > { %v4211_v23 = vpop.xlane.xlu1 %4210 }
 0xaf6   : > { %v4231_v9 = vmul.f32 %v4211_v23, %v7121_v19  ;;  %v4208_v45 = vpop.xlane.xlu0 %4207 }
 0xaf7   : > { %v4230_v21 = vmul.f32 %v4208_v45, %v7121_v19 }
 0xaf9   : > { %v5536_v10 = vpack.i.bf16 %v4231_v9, %v4230_v21  ;;  %v3778_v21 = vsel %vm1368_vm4, %v6234_v51, 0.0 }
 0xafa   : > { %v4217_v11 = vpop.xlane.xlu0 %4216 }
 0xafb   : > { %5537 = vrot.lane.b32.xlu1 %v5536_v10, %s5701_s30  ;;  %v4233_v34 = vmul.f32 %v4217_v11, %v7121_v19  ;;  %v3780_v10 = vsel %vm1368_vm4, %v6275_v53, 0.0 }
 0xafe   : > { %v4214_v2 = vpop.xlane.xlu0 %4213  ;;  %v4220_v20 = vpop.xlane.xlu1 %4219 }
 0xaff   : > { %v4232_v43 = vmul.f32 %v4214_v2, %v7121_v19  ;;  %v4234_v62 = vmul.f32 %v4220_v20, %v7121_v19 }
 0xb01   : > { %v5541_v61 = vpack.i.bf16 %v4233_v34, %v4232_v43  ;;  %v3784_v34 = vsel %vm1368_vm4, %v7734_v42, 0.0 }
 0xb02   : > { %v4223_v57 = vpop.xlane.xlu0 %4222  ;;  %v4226_v41 = vpop.xlane.xlu1 %4225 }
 0xb03   : > { %v4235_v18 = vmul.f32 %v4223_v57, %v7121_v19  ;;  %5542 = vrot.lane.b32.xlu0 %v5541_v61, %s5701_s30  ;;  %v4236_v37 = vmul.f32 %v4226_v41, %v7121_v19  ;;  %v3911_v61 = vsel %vm1368_vm4, %v6083_v39, 0.0 }
 0xb05   : > { %v5546_v40 = vpack.i.bf16 %v4235_v18, %v4234_v62  ;;  %v3788_v18 = vsel %vm1368_vm4, %v7736_v8, 0.0 }
 0xb06   : > { %v4229_v29 = vpop.xlane.xlu0 %4228 }
 0xb07   : > { %v4237_v6 = vmul.f32 %v4229_v29, %v7121_v19  ;;  %3800 = vperm.xlu0 %5524, %v937_v46   ;;  %5547 = vrot.lane.b32.xlu1 %v5546_v40, %s5701_s30  ;;  %v3914_v46 = vsel %vm1368_vm4, %v6098_v50, 0.0 }
 0xb09   : > { %v5551_v30 = vpack.i.bf16 %v4237_v6, %v4236_v37  ;;  %v3790_v37 = vsel %vm1368_vm4, %v7737_v3, 0.0  ;;  %v3916_v6 = vsel %vm1368_vm4, %v6111_v56, 0.0 }
 0xb0b   : > { %5552 = vrot.lane.b32.xlu1 %v5551_v30, %s5701_s30  ;;  %s4372_s30 = scalar_lea.sflag [#allocation3], %s7095_s27 }
 0xb6d   : > { %v5538_v58 = vpop.permute.xlu1 %5537 }
 0xb6e   : > { %v5540_v26 = vunpack.i.h.bf16 %v5538_v58  ;;  %v5539_v24 = vunpack.i.l.bf16 %v5538_v58 }
 0xb70   : > { %v4271_v28 = vsel %vm928_vm8, %v4211_v23, %v5540_v26  ;;  %v4270_v49 = vsel %vm928_vm8, %v4208_v45, %v5539_v24  ;;  %v3777_v45 = vsel %vm1368_vm4, %v6248_v22, 0.0  ;;  %v3918_v26 = vsel %vm1368_vm4, %v6116_v60, 0.0 }
 0xb71   : > { %v5299_v25 = vpack.c.bf16 %v4271_v28, %v4270_v49  ;;  %v3920_v49 = vsel %vm1368_vm4, %v6127_v0, 0.0 }
 0xb73   : > { %5300 = vmatpush3.bf16.msra.mxu0 %v5299_v25 }
 0xb74   : > { %5301 = vmatprep.subr.bf16.mxu0 %v7724_v7 }
 0xb75   : > { %v5543_v36 = vpop.permute.xlu0 %5542 }
 0xb76   : > { %v5545_v55 = vunpack.i.h.bf16 %v5543_v36  ;;  %v5544_v59 = vunpack.i.l.bf16 %v5543_v36 }
 0xb78   : > { %v4273_v27 = vsel %vm928_vm8, %v4217_v11, %v5545_v55  ;;  %v4272_v63 = vsel %vm928_vm8, %v4214_v2, %v5544_v59  ;;  %v3779_v11 = vadd.f32 %v3778_v21, %v3777_v45  ;;  %v3922_v55 = vsel %vm1368_vm4, %v6132_v4, 0.0  ;;  %v7743_v45 = vld [vmem:[#allocation15_spill] sm:$0xff] }
 0xb79   : > { %v5302_v1 = vpack.c.bf16 %v4273_v27, %v4272_v63  ;;  %v5548_v15 = vpop.permute.xlu1 %5547  ;;  %v7740_v63 = vld [vmem:[#allocation24_spill] sm:$0xff]  ;;  %v911_v21 = vsub.f32 1.0, %v7743_v45 }
 0xb7a   : > { %v5550_v54 = vunpack.i.h.bf16 %v5548_v15  ;;  %v5549_v16 = vunpack.i.l.bf16 %v5548_v15  ;;  %v3781_v2 = vadd.f32 %v3780_v10, %v3779_v11  ;;  %v7744_v10 = vld [vmem:[#allocation16_spill] sm:$0xff] }
 0xb7b   : > { %5303 = vmatpush3.bf16.msra.mxu0 %v5302_v1  ;;  %v3924_v1 = vsel %vm1368_vm4, %v7740_v63, 0.0 }
 0xb7c   : > { %v4275_v31 = vsel %vm928_vm8, %v4223_v57, %v5550_v54  ;;  %v4274_v12 = vsel %vm928_vm8, %v4220_v20, %v5549_v16  ;;  %5304 = vmatprep.subr.bf16.mxu0 %v7724_v7  ;;  %v3782_v20 = vsel %vm1368_vm4, %v6260_v52, 0.0  ;;  %v3912_v57 = vsel %vm1368_vm4, %v6095_v47, 0.0 }
 0xb7d   : > { %v5305_v33 = vpack.c.bf16 %v4275_v31, %v4274_v12  ;;  %v5553_v14 = vpop.permute.xlu1 %5552 }
 0xb7e   : > { %v5555_v44 = vunpack.i.h.bf16 %v5553_v14  ;;  %v5554_v38 = vunpack.i.l.bf16 %v5553_v14 }
 0xb7f   : > { %5306 = vmatpush3.bf16.msra.mxu0 %v5305_v33 }
 0xb80   : > { %v4277_v35 = vsel %vm928_vm8, %v4229_v29, %v5555_v44  ;;  %v4276_v23 = vsel %vm928_vm8, %v4226_v41, %v5554_v38  ;;  %5307 = vmatprep.subr.bf16.mxu0 %v7724_v7  ;;  %v3783_v7 = vadd.f32 %v3782_v20, %v3781_v2  ;;  %v3913_v41 = vadd.f32 %v3912_v57, %v3911_v61 }
 0xb81   : > { %v5308_v9 = vpack.c.bf16 %v4277_v35, %v4276_v23  ;;  %v910_v20 = vsub.f32 1.0, %v7744_v10  ;;  %vm3773_vm8 = vcmask 1041408  }
 0xb82   : > { %v3785_v43 = vadd.f32 %v3784_v34, %v3783_v7  ;;  %v3915_v29 = vadd.f32 %v3914_v46, %v3913_v41  ;;  %v7747_v46 = vld [vmem:[#allocation19_spill] sm:$0xff] }
 0xb83   : > { %5309 = vmatpush3.bf16.msra.mxu0 %v5308_v9  ;;  %v7195_v57 = vmul.f32 100000.0, %v910_v20  ;;  %v913_v41 = vsub.f32 1.0, %v7747_v46 }
 0xb84   : > { %v3917_v58 = vadd.f32 %v3916_v6, %v3915_v29 }
 0xb85   : > { %7745 = vst [vmem:[#allocation26_spill] sm:$0xff] %v7195_v57 }
 0xb86   : > { %5176 = vmatmul.mubr.msk.f32.vlgmr.msra.gmra.mrb[40].mxu0 %vm2718_vm9, %v6751_v32  ;;  %v3786_v32 = vsel %vm1368_vm4, %v7735_v17, 0.0  ;;  %v3919_v28 = vadd.f32 %v3918_v26, %v3917_v58  ;;  %v7178_v12 = vpop.permute.xlu0 %3800  ;;  %vm3775_vm9 = vcmask 1042432  }
 0xb87   : > { %v3787_v62 = vadd.f32 %v3786_v32, %v3785_v43  ;;  %7741 = vst [vmem:[#allocation25_spill] sm:$0xff] %v7178_v12  ;;  %v7193_v43 = vmul.f32 100000.0, %v911_v21 }
 0xb88   : > { %v3921_v36 = vadd.f32 %v3920_v49, %v3919_v28  ;;  %v7751_v49 = vld [vmem:[#allocation22_spill] sm:$0xff] }
 0xb89   : > { %v3789_v40 = vadd.f32 %v3788_v18, %v3787_v62  ;;  %v7746_v62 = vld [vmem:[#allocation17_spill] sm:$0xff]  ;;  %v3805_v21 = vadd.f32 %v6234_v51, %v7193_v43 }
 0xb8a   : > { %v3923_v27 = vadd.f32 %v3922_v55, %v3921_v36  ;;  %v912_v18 = vsub.f32 1.0, %v7746_v62  ;;  %v3934_v36 = vadd.f32 %v6095_v47, %v7193_v43 }
 0xb8b   : > { %v3791_v30 = vadd.f32 %v3790_v37, %v3789_v40  ;;  %v7748_v40 = vld [vmem:[#allocation20_spill] sm:$0xff]  ;;  %v7749_v37 = vld [vmem:[#allocation21_spill] sm:$0xff] }
 0xb8c   : > { %v3925_v54 = vadd.f32 %v3924_v1, %v3923_v27  ;;  %v914_v29 = vsub.f32 1.0, %v7748_v40  ;;  %v915_v6 = vsub.f32 1.0, %v7749_v37  ;;  %v3933_v1 = vadd.f32 %v6083_v39, %v7195_v57 }
 0xb8d   : > { %v3792_v24 = vrot.slane %v3791_v30, 4 }
 0xb8e   : > { %v3926_v31 = vrot.slane %v3925_v54, 4 }
 0xb8f   : > { %v3793_v25 = vadd.f32 %v3792_v24, %v3791_v30  ;;  %v7750_v24 = vld [vmem:[#allocation23_spill] sm:$0xff] }
 0xb90   : > { %v3927_v14 = vadd.f32 %v3926_v31, %v3925_v54  ;;  %v917_v28 = vsub.f32 1.0, %v7750_v24  ;;  %v7217_v54 = vmul.f32 100000.0, %v913_v41  ;;  %v7221_v31 = vmul.f32 100000.0, %v915_v6 }
 0xb91   : > { %v3794_v59 = vrot.slane %v3793_v25, 2 }
 0xb92   : > { %v3928_v38 = vrot.slane %v3927_v14, 2  ;;  %v7258_v41 = vadd.f32 %v6127_v0, %v7221_v31  ;;  %v3807_v19 = vadd.f32 %v6260_v52, %v7217_v54 }
 0xb93   : > { %v3795_v15 = vadd.f32 %v3794_v59, %v3793_v25  ;;  %v916_v25 = vsub.f32 1.0, %v7751_v49 }
 0xb94   : > { %v3929_v9 = vadd.f32 %v3928_v38, %v3927_v14 }
 0xb95   : > { %v3796_v16 = vrot.slane %v3795_v15, 1 }
 0xb96   : > { %v3930_v7 = vrot.slane %v3929_v9, 1 }
 0xb97   : > { %v3797_v33 = vadd.f32 %v3796_v16, %v3795_v15  ;;  %v7215_v15 = vmul.f32 100000.0, %v912_v18  ;;  %v7219_v16 = vmul.f32 100000.0, %v914_v29 }
 0xb98   : > { %v3931_v30 = vadd.f32 %v3930_v7, %v3929_v9  ;;  %v7228_v9 = vmul.f32 100000.0, %v916_v25  ;;  %v3834_v7 = vsub.f32 %v6234_v51, %v7193_v43 }
 0xb99   : > { %v7181_v44 = vmul.f32 %v7178_v12, %v3797_v33  ;;  %v7254_v18 = vadd.f32 %v6116_v60, %v7219_v16 }
 0xb9a   : > { %v7211_v27 = vmul.f32 %v3931_v30, %v7178_v12  ;;  %v3810_v5 = vadd.f32 %v7736_v8, %v7228_v9 }
 0xb9b   : > { %7742 = vst [vmem:[#allocation28_spill] sm:$0xff] %v7181_v44  ;;  %v3862_v35 = vsub.f32 %v6248_v22, %v7181_v44  ;;  %v3863_v23 = vsub.f32 %v6234_v51, %v7181_v44  ;;  %v3864_v34 = vsub.f32 %v6275_v53, %v7181_v44  ;;  %v3865_v58 = vsub.f32 %v6260_v52, %v7181_v44 }
 0xb9c   : > { %v3866_v33 = vsub.f32 %v7734_v42, %v7181_v44  ;;  %v3992_v20 = vsub.f32 %v6095_v47, %v7211_v27  ;;  %v3867_v51 = vsub.f32 %v7735_v17, %v7181_v44 }
 0xb9d   : > { %v3870_v11 = vmul.f32 %v3862_v35, %v7744_v10  ;;  %v3871_v2 = vmul.f32 %v3863_v23, %v7743_v45  ;;  %v3872_v26 = vmul.f32 %v3864_v34, %v7746_v62  ;;  %v3873_v14 = vmul.f32 %v3865_v58, %v7747_v46 }
 0xb9e   : > { %v7226_v35 = vmul.f32 100000.0, %v917_v28  ;;  %v7242_v34 = vsel %vm1368_vm4, %v3933_v1, inf  ;;  %v3874_v29 = vmul.f32 %v3866_v33, %v7748_v40  ;;  %v7267_v28 = vsel %vm1368_vm4, %v3805_v21, inf }
 0xb9f   : > { %v3878_v32 = vmul.f32 %v3870_v11, %v3870_v11  ;;  %v3879_v61 = vmul.f32 %v3871_v2, %v3871_v2  ;;  %v3880_v38 = vmul.f32 %v3872_v26, %v3872_v26  ;;  %v7233_v11 = vsel %vm1368_vm4, %v3934_v36, inf }
 0xba0   : > { %v3991_v2 = vsub.f32 %v6083_v39, %v7211_v27  ;;  %v3881_v6 = vmul.f32 %v3873_v14, %v3873_v14  ;;  %v3804_v26 = vadd.f32 %v6248_v22, %v7195_v57  ;;  %v7271_v25 = vadd.f32 %v7740_v63, %v7226_v35 }
 0xba1   : > { %v3886_v55 = vsel %vm1368_vm4, %v3878_v32, 0.0  ;;  %v3887_v59 = vsel %vm1368_vm4, %v3879_v61, 0.0  ;;  %v7246_v32 = vadd.f32 %v6098_v50, %v7215_v15  ;;  %v7250_v61 = vadd.f32 %v6111_v56, %v7217_v54 }
 0xba2   : > { %v3888_v23 = vadd.f32 %v3887_v59, %v3886_v55  ;;  %v3889_v30 = vsel %vm1368_vm4, %v3880_v38, 0.0  ;;  %v3999_v36 = vmul.f32 %v3991_v2, %v7744_v10  ;;  %v4000_v55 = vmul.f32 %v3992_v20, %v7743_v45 }
 0xba3   : > { %v3808_v59 = vadd.f32 %v7734_v42, %v7219_v16  ;;  %v7278_v1 = vsel %vm1368_vm4, %v3834_v7, -inf  ;;  %v3868_v33 = vsub.f32 %v7736_v8, %v7181_v44  ;;  %v3806_v14 = vadd.f32 %v6275_v53, %v7215_v15 }
 0xba4   : > { %v3890_v58 = vadd.f32 %v3889_v30, %v3888_v23  ;;  %v3809_v38 = vadd.f32 %v7735_v17, %v7221_v31  ;;  %v3833_v23 = vsub.f32 %v6248_v22, %v7195_v57  ;;  %v3875_v21 = vmul.f32 %v3867_v51, %v7749_v37 }
 0xba5   : > { %v3882_v2 = vmul.f32 %v3874_v29, %v3874_v29  ;;  %v3891_v20 = vsel %vm1368_vm4, %v3881_v6, 0.0  ;;  %v3993_v7 = vsub.f32 %v6098_v50, %v7211_v27  ;;  %v7297_v13 = vsel %vm1368_vm4, %v3804_v26, inf }
 0xba6   : > { %v3892_v30 = vadd.f32 %v3891_v20, %v3890_v58  ;;  %v4007_v48 = vmul.f32 %v3999_v36, %v3999_v36  ;;  %v4008_v22 = vmul.f32 %v4000_v55, %v4000_v55  ;;  %v3811_v51 = vadd.f32 %v7737_v3, %v7226_v35 }
 0xba7   : > { %v3816_v29 = vsel %vm1368_vm4, %v3808_v59, inf  ;;  %v3869_v6 = vsub.f32 %v7737_v3, %v7181_v44  ;;  %v3876_v58 = vmul.f32 %v3868_v33, %v7751_v49  ;;  %v3814_v20 = vsel %vm1368_vm4, %v3806_v14, inf }
 0xba8   : > { %v3818_v45 = vsel %vm1368_vm4, %v3809_v38, inf  ;;  %v3883_v10 = vmul.f32 %v3875_v21, %v3875_v21  ;;  %v3893_v26 = vsel %vm1368_vm4, %v3882_v2, 0.0  ;;  %v3994_v36 = vsub.f32 %v6111_v56, %v7211_v27 }
 0xba9   : > { %v4001_v55 = vmul.f32 %v3993_v7, %v7746_v62  ;;  %v3894_v12 = vadd.f32 %v3893_v26, %v3892_v30  ;;  %v3815_v59 = vsel %vm1368_vm4, %v3807_v19, inf  ;;  %v3817_v39 = vmin.f32 %v7297_v13, %v3816_v29 }
 0xbaa   : > { %v3820_v44 = vsel %vm1368_vm4, %v3810_v5, inf  ;;  %v4015_v33 = vsel %vm1368_vm4, %v4007_v48, 0.0  ;;  %v4016_v14 = vsel %vm1368_vm4, %v4008_v22, 0.0  ;;  %v3819_v38 = vmin.f32 %v7267_v28, %v3818_v45 }
 0xbab   : > { %v3837_v21 = vsub.f32 %v7734_v42, %v7219_v16  ;;  %v3877_v2 = vmul.f32 %v3869_v6, %v7750_v24  ;;  %v3884_v57 = vmul.f32 %v3876_v58, %v3876_v58  ;;  %v3839_v7 = vsub.f32 %v7736_v8, %v7228_v9 }
 0xbac   : > { %v3840_v13 = vsub.f32 %v7737_v3, %v7226_v35  ;;  %v3895_v5 = vsel %vm1368_vm4, %v3883_v10, 0.0  ;;  %v3995_v48 = vsub.f32 %v6116_v60, %v7211_v27  ;;  %v4002_v19 = vmul.f32 %v3994_v36, %v7747_v46 }
 0xbad   : > { %v4009_v45 = vmul.f32 %v4001_v55, %v4001_v55  ;;  %v3896_v28 = vadd.f32 %v3895_v5, %v3894_v12  ;;  %v4017_v30 = vadd.f32 %v4016_v14, %v4015_v33  ;;  %v3821_v42 = vmin.f32 %v3814_v20, %v3820_v44 }
 0xbae   : > { %v3835_v22 = vsub.f32 %v6275_v53, %v7215_v15  ;;  %v3822_v29 = vsel %vm1368_vm4, %v3811_v51, inf  ;;  %v3836_v8 = vsub.f32 %v6260_v52, %v7217_v54  ;;  %v3838_v3 = vsub.f32 %v7735_v17, %v7221_v31 }
 0xbaf   : > { %v3845_v10 = vsel %vm1368_vm4, %v3837_v21, -inf  ;;  %v3885_v6 = vmul.f32 %v3877_v2, %v3877_v2  ;;  %v3897_v58 = vsel %vm1368_vm4, %v3884_v57, 0.0  ;;  %v3849_v12 = vsel %vm1368_vm4, %v3839_v7, -inf }
 0xbb0   : > { %v3851_v44 = vsel %vm1368_vm4, %v3840_v13, -inf  ;;  %v3996_v53 = vsub.f32 %v6127_v0, %v7211_v27  ;;  %v4003_v51 = vmul.f32 %v3995_v48, %v7748_v40  ;;  %v4010_v20 = vmul.f32 %v4002_v19, %v4002_v19 }
 0xbb1   : > { %v4018_v52 = vsel %vm1368_vm4, %v4009_v45, 0.0  ;;  %v3898_v26 = vadd.f32 %v3897_v58, %v3896_v28  ;;  %v3823_v17 = vmin.f32 %v3815_v59, %v3822_v29  ;;  %v3843_v55 = vsel %vm1368_vm4, %v3835_v22, -inf }
 0xbb2   : > { %v4019_v36 = vadd.f32 %v4018_v52, %v4017_v30  ;;  %v3841_v33 = vsel %vm1368_vm4, %v3833_v23, -inf  ;;  %v3844_v57 = vsel %vm1368_vm4, %v3836_v8, -inf  ;;  %v3847_v14 = vsel %vm1368_vm4, %v3838_v3, -inf }
 0xbb3   : > { %v3850_v21 = vmax.f32 %v3843_v55, %v3849_v12  ;;  %v3899_v2 = vsel %vm1368_vm4, %v3885_v6, 0.0  ;;  %v3825_v7 = vmin.f32 %v3821_v42, %v3823_v17  ;;  %v3846_v13 = vmax.f32 %v3841_v33, %v3845_v10 }
 0xbb4   : > { %v3852_v5 = vmax.f32 %v3844_v57, %v3851_v44  ;;  %v3997_v48 = vsub.f32 %v6132_v4, %v7211_v27  ;;  %v4004_v19 = vmul.f32 %v3996_v53, %v7749_v37  ;;  %v4011_v59 = vmul.f32 %v4003_v51, %v4003_v51 }
 0xbb5   : > { %v4020_v45 = vsel %vm1368_vm4, %v4010_v20, 0.0  ;;  %v3900_v28 = vadd.f32 %v3899_v2, %v3898_v26  ;;  %v3824_v30 = vmin.f32 %v3817_v39, %v3819_v38  ;;  %v3848_v22 = vmax.f32 %v7278_v1, %v3847_v14 }
 0xbb6   : > { %v4021_v23 = vadd.f32 %v4020_v45, %v4019_v36  ;;  %v3854_v29 = vmax.f32 %v3850_v21, %v3852_v5  ;;  %v3939_v8 = vadd.f32 %v6132_v4, %v7228_v9  ;;  %v3944_v42 = vsel %vm1368_vm4, %v7250_v61, inf }
 0xbb7   : > { %v3945_v3 = vsel %vm1368_vm4, %v7254_v18, inf  ;;  %v3826_v10 = vmin.f32 %v3824_v30, %v3825_v7  ;;  %v3853_v6 = vmax.f32 %v3846_v13, %v3848_v22  ;;  %v3943_v58 = vsel %vm1368_vm4, %v7246_v32, inf }
 0xbb8   : > { %v3947_v39 = vsel %vm1368_vm4, %v7258_v41, inf  ;;  %v3998_v1 = vsub.f32 %v7740_v63, %v7211_v27  ;;  %v4005_v38 = vmul.f32 %v3997_v48, %v7751_v49  ;;  %v4012_v12 = vmul.f32 %v4004_v19, %v4004_v19 }
 0xbb9   : > { %v4022_v44 = vsel %vm1368_vm4, %v4011_v59, 0.0  ;;  %v3901_v61 = vrot.slane %v3900_v28, 4  ;;  %v3946_v18 = vmin.f32 %v7242_v34, %v3945_v3  ;;  %v3951_v51 = vsel %vm1368_vm4, %v7271_v25, inf }
 0xbba   : > { %v4023_v53 = vadd.f32 %v4022_v44, %v4021_v23  ;;  %v3855_v20 = vmax.f32 %v3853_v6, %v3854_v29  ;;  %v3948_v32 = vmin.f32 %v7233_v11, %v3947_v39  ;;  %v3949_v41 = vsel %vm1368_vm4, %v3939_v8, inf }
 0xbbb   : > { %v3963_v52 = vsub.f32 %v6095_v47, %v7193_v43  ;;  %v3827_v26 = vrot.slane %v3826_v10, 4  ;;  %v3964_v36 = vsub.f32 %v6098_v50, %v7215_v15  ;;  %v3968_v17 = vsub.f32 %v6132_v4, %v7228_v9 }
 0xbbc   : > { %v3969_v34 = vsub.f32 %v7740_v63, %v7226_v35  ;;  %v4006_v25 = vmul.f32 %v3998_v1, %v7750_v24  ;;  %v4013_v55 = vmul.f32 %v4005_v38, %v4005_v38  ;;  %v4024_v11 = vsel %vm1368_vm4, %v4012_v12, 0.0  ;;  %v7752_v63 = vld [vmem:[#allocation26_spill] sm:$0xff] }
 0xbbd   : > { %v3965_v33 = vsub.f32 %v6111_v56, %v7217_v54  ;;  %v3902_v57 = vadd.f32 %v3901_v61, %v3900_v28  ;;  %v4025_v47 = vadd.f32 %v4024_v11, %v4023_v53  ;;  %v3966_v43 = vsub.f32 %v6116_v60, %v7219_v16  ;;  %v7753_v35 = vld [vmem:[#allocation18_spill] sm:$0xff]  ;;  %v7755_v11 = vld [vmem:[#allocation28_spill] sm:$0xff] }
 0xbbe   : > { %v3967_v50 = vsub.f32 %v6127_v0, %v7221_v31  ;;  %v3856_v4 = vrot.slane %v3855_v20, 4  ;;  %v3950_v15 = vmin.f32 %v3943_v58, %v3949_v41  ;;  %v3952_v9 = vmin.f32 %v3944_v42, %v3951_v51 }
 0xbbf   : > { %v3962_v14 = vsub.f32 %v7753_v35, %v7752_v63  ;;  %v3828_v21 = vmin.f32 %v3826_v10, %v3827_v26  ;;  %v3972_v2 = vsel %vm1368_vm4, %v3964_v36, -inf  ;;  %v3978_v7 = vsel %vm1368_vm4, %v3968_v17, -inf }
 0xbc0   : > { %v3980_v56 = vsel %vm1368_vm4, %v3969_v34, -inf  ;;  %v4014_v54 = vmul.f32 %v4006_v25, %v4006_v25  ;;  %v4026_v13 = vsel %vm1368_vm4, %v4013_v55, 0.0  ;;  %v3971_v60 = vsel %vm1368_vm4, %v3963_v52, -inf  ;;  %v7754_v25 = vld [vmem:[#allocation25_spill] sm:$0xff] }
 0xbc1   : > { %v3973_v0 = vsel %vm1368_vm4, %v3965_v33, -inf  ;;  %v3903_v16 = vrot.slane %v3902_v57, 2  ;;  %v4027_v31 = vadd.f32 %v4026_v13, %v4025_v47  ;;  %v3974_v5 = vsel %vm1368_vm4, %v3966_v43, -inf  ;;  %v7760_v13 = vld [vmem:[#allocation32_spill] sm:$0xff] }
 0xbc2   : > { %v3976_v48 = vsel %vm1368_vm4, %v3967_v50, -inf  ;;  %v3857_v19 = vmax.f32 %v3855_v20, %v3856_v4  ;;  %v3979_v59 = vmax.f32 %v3972_v2, %v3978_v7  ;;  %v3981_v45 = vmax.f32 %v3973_v0, %v3980_v56  ;;  %v7756_v4 = vld [vmem:[#allocation16_spill] sm:$0xff]  ;;  %v7758_v7 = vld [vmem:[#allocation15_spill] sm:$0xff]  ;;  %v7759_v56 = vld [vmem:[#allocation29_spill] sm:$0xff] }
 0xbc3   : > { %v3829_v28 = vrot.slane %v3828_v21, 2  ;;  %v3954_v23 = vmin.f32 %v3950_v15, %v3952_v9  ;;  %v3970_v30 = vsel %vm1368_vm4, %v3962_v14, -inf  ;;  %v4028_v22 = vsel %vm1368_vm4, %v4014_v54, 0.0  ;;  %v7757_v15 = vld [vmem:[#allocation30_spill] sm:$0xff] }
 0xbc4   : > { %v3975_v29 = vmax.f32 %v3970_v30, %v3974_v5  ;;  %v3977_v8 = vmax.f32 %v3971_v60, %v3976_v48  ;;  %v3904_v42 = vadd.f32 %v3903_v16, %v3902_v57  ;;  %v4029_v3 = vadd.f32 %v4028_v22, %v4027_v31  ;;  %v7761_v5 = vld [vmem:[#allocation31_spill] sm:$0xff]  ;;  %v7764_v22 = vld [vmem:[#allocation36_spill] sm:$0xff] }
 0xbc5   : > { %v3953_v10 = vmin.f32 %v3946_v18, %v3948_v32  ;;  %v3858_v6 = vrot.slane %v3857_v19, 2  ;;  %v3983_v58 = vmax.f32 %v3979_v59, %v3981_v45  ;;  %v3830_v39 = vmin.f32 %v3828_v21, %v3829_v28 }
 0xbc6   : > { %v3982_v38 = vmax.f32 %v3975_v29, %v3977_v8  ;;  %v3905_v12 = vrot.slane %v3904_v42, 1  ;;  %v4030_v44 = vrot.slane %v4029_v3, 4  ;;  %v1936_v9 = vmul.f32 %v7757_v15, %v7756_v4 }
 0xbc7   : > { %v3955_v1 = vmin.f32 %v3953_v10, %v3954_v23  ;;  %v3859_v61 = vmax.f32 %v3857_v19, %v3858_v6  ;;  %v3831_v51 = vrot.slane %v3830_v39, 1  ;;  %v1937_v54 = vmul.f32 %v7759_v56, %v7758_v7  ;;  %v7762_v19 = vld [vmem:[#allocation34_spill] sm:$0xff] }
 0xbc8   : > { %v3984_v53 = vmax.f32 %v3982_v38, %v3983_v58  ;;  %v3906_v41 = vadd.f32 %v3905_v12, %v3904_v42  ;;  %v4031_v52 = vadd.f32 %v4030_v44, %v4029_v3  ;;  %v1938_v60 = vmul.f32 %v7760_v13, %v7746_v62  ;;  %v7763_v62 = vld [vmem:[#allocation33_spill] sm:$0xff]  ;;  %v7765_v42 = vld [vmem:[#allocation35_spill] sm:$0xff] }
 0xbc9   : > { %v3956_v20 = vrot.slane %v3955_v1, 4  ;;  %v3860_v26 = vrot.slane %v3859_v61, 1  ;;  %v3832_v17 = vmin.f32 %v3830_v39, %v3831_v51  ;;  %v1939_v48 = vmul.f32 %v7761_v5, %v7747_v46 }
 0xbca   : > { %v3985_v36 = vrot.slane %v3984_v53, 4  ;;  %v3907_v18 = vmul.f32 %v3906_v41, %v7754_v25  ;;  %v4032_v32 = vrot.slane %v4031_v52, 2  ;;  %v1940_v59 = vmul.f32 %v7762_v19, %v7748_v40 }
 0xbcb   : > { %v3957_v34 = vmin.f32 %v3955_v1, %v3956_v20  ;;  %v3908_v33 = vsel %vm3771_vm1, %v7755_v11, %v3832_v17  ;;  %v3861_v47 = vmax.f32 %v3859_v61, %v3860_v26  ;;  %v1941_v30 = vmul.f32 %v7763_v62, %v7749_v37 }
 0xbcc   : > { %v3986_v43 = vmax.f32 %v3984_v53, %v3985_v36  ;;  %v4033_v35 = vadd.f32 %v4032_v32, %v4031_v52  ;;  %v1942_v29 = vmul.f32 %v7764_v22, %v7751_v49  ;;  %v1943_v3 = vmul.f32 %v7765_v42, %v7750_v24 }
 0xbcd   : > { %v3958_v50 = vrot.slane %v3957_v34, 2  ;;  %v3909_v63 = vsel %vm3773_vm8, %v3908_v33, %v3861_v47 }
 0xbce   : > { %v3910_v14 = vsel %vm3775_vm9, %v3909_v63, %v3907_v18  ;;  %v3987_v21 = vrot.slane %v3986_v43, 2  ;;  %v4034_v0 = vrot.slane %v4033_v35, 1 }
 0xbcf   : > { %v3959_v2 = vmin.f32 %v3957_v34, %v3958_v50 }
 0xbd0   : > { %v3988_v16 = vmax.f32 %v3986_v43, %v3987_v21  ;;  %v4035_v45 = vadd.f32 %v4034_v0, %v4033_v35 }
 0xbd1   : > { %v3960_v31 = vrot.slane %v3959_v2, 1 }
 0xbd2   : > { %v3989_v28 = vrot.slane %v3988_v16, 1  ;;  %v4036_v8 = vmul.f32 %v4035_v45, %v7754_v25 }
 0xbd3   : > { %v3961_v23 = vmin.f32 %v3959_v2, %v3960_v31 }
 0xbd4   : > { %v3990_v40 = vmax.f32 %v3988_v16, %v3989_v28 }
 0xbd5   : > { %v4037_v46 = vsel %vm3771_vm1, %v7211_v27, %v3961_v23 }
 0xbd6   : > { %v4038_v10 = vsel %vm3773_vm8, %v4037_v46, %v3990_v40 }
 0xbd7   : > { %v4039_v37 = vsel %vm3775_vm9, %v4038_v10, %v4036_v8 }
 0xc59   : > { %v4344_v55 = vpop.f32.mrb[40].mxu0 }
 0xc5a   : > { %4354 = vrot.lane.b32.xlu0 %v4344_v55, %s5702_s21  ;;  %4350 = vperm.xlu1 %5525, %v4344_v55   ;;  %v5177_v57 = vpop.f32.mrb[41].mxu0  ;;  %s5591_s21 = scalar_lea.vmem %s4399_s29, 128 }
 0xc5b   : > { %p5592_p11 = scmp.ne.s32.totalorder %s4399_s29, %s5591_s21 }
 0xc5d   : > { %p5593_p12 = pnand %p5592_p11, %p5861_p5 }
 0xc5e   : > { %4041 = vrot.lane.b32.xlu1 %v3910_v14, %s5695_s25  ;;  %1952 = vrot.lane.b32.xlu0 %v1936_v9, %s5703_s2  ;;  %s7766_s25 = smov 48  }
 0xc5f   : > { %p5594_p13 = pneg %p5593_p12 }
 0xc62   : > { %1954 = vrot.lane.b32.xlu1 %v1937_v54, %s5703_s2  ;;  %1956 = vrot.lane.b32.xlu0 %v1938_v60, %s5703_s2 }
 0xc66   : > { %1958 = vrot.lane.b32.xlu1 %v1939_v48, %s5703_s2  ;;  %1960 = vrot.lane.b32.xlu0 %v1940_v59, %s5703_s2 }
 0xc6a   : > { %1962 = vrot.lane.b32.xlu1 %v1941_v30, %s5703_s2  ;;  %1964 = vrot.lane.b32.xlu0 %v1942_v29, %s5703_s2 }
 0xc6e   : > { %1966 = vrot.lane.b32.xlu1 %v1943_v3, %s5703_s2  ;;  %4045 = vrot.lane.b32.xlu0 %v4039_v37, %s7766_s25  ;;  %s5597_s2 = scalar_lea.vmem %s5596_s8, 256 }
 0xc6f   : > { %p5599_p1 = scmp.lt.s32.totalorder %s5597_s2, %s5591_s21 }
 0xc71   : > { %p5600_p2 = por %p5599_p1, %p5598_p0 }
 0xc73   : > { %p5601_p3 = pnand %p5600_p2, %p5594_p13 }
 0xc75   : > { %5604 = shalt.err (!%p5601_p3)
}
 0xc76   : > { %s5605_s23 = scalar_lea.hbm %s7432_s5, 128  ;;  %s5609_s7 = scalar_lea.hbm %s7572_s19, 256 }
 0xc77   : > { %p5606_p4 = scmp.ne.s32.totalorder %s7432_s5, %s5605_s23  ;;  %p5610_p9 = scmp.lt.u32.totalorder %s7432_s5, %s7572_s19 }
 0xc78   : > { %p5611_p10 = scmp.lt.u32.totalorder %s5609_s7, %s5605_s23  ;;  %p5613_p12 = scmp.lt.u32.totalorder %s5605_s23, %s7432_s5 }
 0xc79   : > { %p5607_p7 = pnand %p5606_p4, %p5861_p5 }
 0xc7a   : > { %p5612_p11 = por %p5611_p10, %p5610_p9 }
 0xc7b   : > { %p5608_p8 = pneg %p5607_p7 }
 0xc7c   : > { %p5614_p13 = por %p5613_p12, %p5612_p11 }
 0xc7e   : > { %p5615_p0 = pnand %p5614_p13, %p5608_p8 }
 0xc80   : > { %5618 = shalt.err (!%p5615_p0)
}
 0xc81   : > { %5310 = dma.vmem_to_hbm [thread:$0]  (%p5861_p5), %s4399_s29, 128, %s7432_s5, %s4372_s30   ;;  %v7767_v24 = vld [vmem:[#allocation38_spill] sm:$0xff]  ;;  %v7768_v12 = vld [vmem:[#allocation37_spill] sm:$0xff]  ;;  %v7770_v0 = vld [vmem:[#allocation27_spill] sm:$0xff]  ;;  %vm4359_vm13 = vcmask 23552   ;;  %vm4050_vm15 = vcmask 519168  }
 0xc82   : > { %v3736_v49 = vsel %vm1156_vm3, %v7767_v24, 0.0  ;;  %v7769_v53 = vld [vmem:[#allocation14_spill] sm:$0xff]  ;;  %s4648_s1 = sshll.u32 %s7095_s27, 6  ;;  %s4661_s29 = sshll.u32 %s5897_s24, 2 }
 0xc83   : > { %v3737_v27 = vrot.slane %v3736_v49, 4  ;;  %v3734_v51 = vsub.f32 1.0, %v7769_v53  ;;  %s7465_s5 = scalar_lea.vmem [#allocation4], %s4648_s1  ;;  %s837_s2 = scalar_lea.vmem %s7575_s22, %s4661_s29 }
 0xc84   : > { %s4747_s24 = sshll.u32 %s5844_s4, 10  ;;  %s4411_s23 = sshll.u32 %s7465_s5, 4  ;;  %s7501_s23 = int_to_ptr.vmem [resolvable:$true] %s4411_s23 }
 0xc85   : > { %v3738_v6 = vadd.f32 %v3737_v27, %v3736_v49  ;;  %v3735_v41 = vmul.f32 100000.0, %v3734_v51  ;;  %s7499_s7 = scalar_lea.hbm %s7573_s20, %s4747_s24  ;;  %s4377_s4 = scalar_lea.sflag [#allocation5], %s7095_s27 }
 0xc86   : > { %s5619_s3 = scalar_lea.vmem %s7501_s23, 1024  ;;  %s5705_s8 = smov [#allocation4]  }
 0xc87   : > { %v3739_v58 = vrot.slane %v3738_v6, 2  ;;  %v3744_v52 = vadd.f32 %v3735_v41, %v7767_v24  ;;  %v3752_v36 = vsub.f32 %v7767_v24, %v3735_v41  ;;  %p5620_p1 = scmp.ne.s32.totalorder %s7501_s23, %s5619_s3  ;;  %s5623_s1 = sshll.u32 %s5705_s8, 4  ;;  %s5624_s1 = int_to_ptr.vmem [resolvable:$false] %s5623_s1 }
 0xc88   : > { %s5625_s29 = scalar_lea.vmem %s5624_s1, 2048  ;;  %p5626_p4 = scmp.lt.s32.totalorder %s7501_s23, %s5624_s1 }
 0xc89   : > { %v3740_v39 = vadd.f32 %v3739_v58, %v3738_v6  ;;  %v3745_v17 = vsel %vm1156_vm3, %v3744_v52, inf  ;;  %v3753_v18 = vsel %vm1156_vm3, %v3752_v36, -inf  ;;  %p5621_p2 = pnand %p5620_p1, %p5861_p5  ;;  %p5627_p7 = scmp.lt.s32.totalorder %s5625_s29, %s5619_s3 }
 0xc8a   : > { %v3746_v25 = vrot.slane %v3745_v17, 4  ;;  %v3754_v55 = vrot.slane %v3753_v18, 4 }
 0xc8b   : > { %v3741_v1 = vrot.slane %v3740_v39, 1  ;;  %p5622_p3 = pneg %p5621_p2  ;;  %p5628_p8 = por %p5627_p7, %p5626_p4 }
 0xc8c   : > { %v3747_v11 = vmin.f32 %v3745_v17, %v3746_v25  ;;  %v3755_v57 = vmax.f32 %v3753_v18, %v3754_v55 }
 0xc8d   : > { %v3742_v38 = vadd.f32 %v3741_v1, %v3740_v39  ;;  %p5629_p9 = pnand %p5628_p8, %p5622_p3 }
 0xc8e   : > { %v3748_v47 = vrot.slane %v3747_v11, 2  ;;  %v3756_v4 = vrot.slane %v3755_v57, 2 }
 0xc8f   : > { %v3743_v44 = vmul.f32 %v3742_v38, %v7768_v12 }
 0xc90   : > { %v3749_v15 = vmin.f32 %v3747_v11, %v3748_v47  ;;  %v3757_v35 = vmax.f32 %v3755_v57, %v3756_v4 }
 0xc91   : > { %v3760_v61 = vsub.f32 %v7767_v24, %v3743_v44 }
 0xc92   : > { %v3750_v14 = vrot.slane %v3749_v15, 1  ;;  %v3758_v7 = vrot.slane %v3757_v35, 1 }
 0xc93   : > { %v3761_v20 = vmul.f32 %v3760_v61, %v7769_v53 }
 0xc94   : > { %v3751_v56 = vmin.f32 %v3749_v15, %v3750_v14  ;;  %v3759_v31 = vmax.f32 %v3757_v35, %v3758_v7 }
 0xc95   : > { %v3762_v26 = vmul.f32 %v3761_v20, %v3761_v20 }
 0xc96   : > { %v3772_v48 = vsel %vm3771_vm1, %v3743_v44, %v3751_v56 }
 0xc97   : > { %v3763_v34 = vsel %vm1156_vm3, %v3762_v26, 0.0  ;;  %v3774_v23 = vsel %vm3773_vm8, %v3772_v48, %v3759_v31 }
 0xc98   : > { %v3764_v32 = vrot.slane %v3763_v34, 4 }
 0xc9a   : > { %v3765_v33 = vadd.f32 %v3764_v32, %v3763_v34 }
 0xc9c   : > { %v3766_v43 = vrot.slane %v3765_v33, 2 }
 0xc9e   : > { %v3767_v9 = vadd.f32 %v3766_v43, %v3765_v33 }
 0xca0   : > { %v3768_v21 = vrot.slane %v3767_v9, 1 }
 0xca2   : > { %v3769_v54 = vadd.f32 %v3768_v21, %v3767_v9 }
 0xca4   : > { %v3770_v5 = vmul.f32 %v3769_v54, %v7768_v12 }
 0xca6   : > { %v3776_v62 = vsel %vm3775_vm9, %v3774_v23, %v3770_v5 }
 0xccc   : > { %v4355_v50 = vpop.permute.xlu0 %4354 }
 0xcd0   : > { %v1953_v63 = vpop.permute.xlu0 %1952 }
 0xcd1   : > { %1976 = vst.msk [vmem:[%s7465_s5] sm:$0xff] %vm1368_vm4, %v1953_v63 }
 0xcd4   : > { %v1957_v2 = vpop.permute.xlu0 %1956 }
 0xcd5   : > { %1978 = vst.msk [vmem:[%s7465_s5 + $0x10] sm:$0xff] %vm1368_vm4, %v1957_v2 }
 0xcd8   : > { %v1961_v13 = vpop.permute.xlu0 %1960 }
 0xcd9   : > { %1980 = vst.msk [vmem:[%s7465_s5 + $0x20] sm:$0xff] %vm1368_vm4, %v1961_v13  ;;  %v4351_v60 = vpop.permute.xlu1 %4350 }
 0xcda   : > { %v4353_v16 = vmul.f32 %v4351_v60, %v7770_v0 }
 0xcdc   : > { %v4357_v19 = vsub.f32 %v4353_v16, %v4355_v50  ;;  %v1965_v59 = vpop.permute.xlu0 %1964 }
 0xcdd   : > { %1982 = vst.msk [vmem:[%s7465_s5 + $0x30] sm:$0xff] %vm1368_vm4, %v1965_v59  ;;  %v4042_v45 = vpop.permute.xlu1 %4041 }
 0xcde   : > { %v4358_v28 = vmul.f32 %v4357_v19, %v7769_v53  ;;  %v4048_v22 = vsel %vm1156_vm3, %v3776_v62, %v4042_v45 }
 0xce0   : > { %v4360_v30 = vsel %vm4359_vm13, %v4358_v28, 0.0  ;;  %v4046_v29 = vpop.permute.xlu0 %4045 }
 0xce1   : > { %v4361_v8 = vrot.slane %v4360_v30, 4  ;;  %v4049_v46 = vsel %vm3227_vm12, %v4048_v22, %v4046_v29  ;;  %v1955_v40 = vpop.permute.xlu1 %1954 }
 0xce2   : > { %4051 = vst.msk [vmem:[%s837_s2] sm:$0xf] %vm4050_vm15, %v4049_v46 }
 0xce3   : > { %1977 = vst.msk [vmem:[%s7465_s5 + $0x8] sm:$0xff] %vm1368_vm4, %v1955_v40  ;;  %v4362_v42 = vadd.f32 %v4361_v8, %v4360_v30 }
 0xce5   : > { %v4363_v3 = vrot.slane %v4362_v42, 2  ;;  %v1959_v10 = vpop.permute.xlu1 %1958 }
 0xce6   : > { %1979 = vst.msk [vmem:[%s7465_s5 + $0x18] sm:$0xff] %vm1368_vm4, %v1959_v10 }
 0xce7   : > { %v4364_v37 = vadd.f32 %v4363_v3, %v4362_v42 }
 0xce9   : > { %v4365_v24 = vrot.slane %v4364_v37, 1  ;;  %v1963_v49 = vpop.permute.xlu1 %1962 }
 0xcea   : > { %1981 = vst.msk [vmem:[%s7465_s5 + $0x28] sm:$0xff] %vm1368_vm4, %v1963_v49 }
 0xceb   : > { %v4366_v27 = vadd.f32 %v4365_v24, %v4364_v37 }
 0xced   : > { %v4367_v6 = vmul.f32 %v4366_v27, %v7768_v12  ;;  %v1967_v58 = vpop.permute.xlu1 %1966 }
 0xcee   : > { %1983 = vst.msk [vmem:[%s7465_s5 + $0x38] sm:$0xff] %vm1368_vm4, %v1967_v58 }
 0xcef   : > { %v4368_v39 = vmul.f32 %v4367_v6, %v7769_v53 }
 0xcf0   : > { %5632 = shalt.err (!%p5629_p9)
}
 0xcf1   : > { %s5633_s5 = scalar_lea.hbm %s7499_s7, 1024  ;;  %s5637_s2 = scalar_lea.hbm %s7573_s20, 2048 }
 0xcf2   : > { %p5634_p10 = scmp.ne.s32.totalorder %s7499_s7, %s5633_s5  ;;  %p5638_p13 = scmp.lt.u32.totalorder %s7499_s7, %s7573_s20 }
 0xcf3   : > { %p5639_p0 = scmp.lt.u32.totalorder %s5637_s2, %s5633_s5  ;;  %p5641_p2 = scmp.lt.u32.totalorder %s5633_s5, %s7499_s7 }
 0xcf4   : > { %p5635_p11 = pnand %p5634_p10, %p5861_p5 }
 0xcf5   : > { %p5640_p1 = por %p5639_p0, %p5638_p13 }
 0xcf6   : > { %p5636_p12 = pneg %p5635_p11 }
 0xcf7   : > { %p5642_p3 = por %p5641_p2, %p5640_p1 }
 0xcf9   : > { %p5643_p4 = pnand %p5642_p3, %p5636_p12 }
 0xcfb   : > { %5646 = shalt.err (!%p5643_p4)
}
 0xcfc   : > { %s5706_s0 = smov 128   ;;  %s5707_s3 = smov 8   ;;  %v4369_v1 = vsub.f32 %v4358_v28, %v4368_v39 }
 0xcfd   : > { %5311 = dma.vmem_to_hbm [thread:$0]  (%p5861_p5), %s7501_s23, 1024, %s7499_s7, %s4377_s4, %s5706_s0, %s5706_s0, %s5707_s3  }
 0xcfe   : > { %s7771_s29 = sld [smem:[#allocation48_spill]] }
 0xd04   : > { %s833_s30 = scalar_lea.vmem %s7771_s29, %s5906_s26 }
 0xd05   : > { %4370 = vst.msk [vmem:[%s833_s30] sm:$0xff] %vm4359_vm13, %v4369_v1 }
 0xd06 PF: > { %s7772_s5 = sld [smem:[#allocation10_spill]]  ;;  %s7773_s21 = sld [smem:[#allocation8_spill]] }
 0xd0c   : > { %p5321_p7 = scmp.ge.s32.totalorder %s7772_s5, 2  ;;  %s4432_s24 = sand.u32 1, %s7773_s21  }
 0xd0d   : > { %s4433_s25 = scalar_lea.sflag [#allocation3], %s4432_s24 }
 0xd0e   : > { %p5315_p8 = pnand %p5321_p7, %p5865_p6 }
 0xd10   : > { %5664 = dma.done.wait (!%p5315_p8), %s4433_s25, 128  }
 0xd11   : > { %5666 = vsyncadd (!%p5315_p8), %s4433_s25, 4294967168  ;;  %s4442_s6 = scalar_lea.sflag [#allocation5], %s4432_s24 }
 0xd12   : > { %5668 = dma.done.wait (!%p5315_p8), %s4442_s6, 1024  }
 0xd13   : > { %5670 = vsyncadd (!%p5315_p8), %s4442_s6, 4294966272  ;;  %s7775_s30 = sld [smem:[#allocation11_spill]]  ;;  %s7776_s26 = sld [smem:[#allocation9_spill]] }
 0xd14   : > { %s7777_s29 = sld [smem:[#allocation12_spill]]  ;;  %s7778_s3 = smov %s5677_s28 }
 0xd19   : > { %p36_p5 = scmp.ge.s32.totalorder %s7775_s30, 4   ;;  %s7779_s28 = smov %s7776_s26 }
 0xd1b   :  { %38 = sbr.rel (!%p36_p5) target bundleno = 16 (0x10), region = 193 }
 0xd22   :  { %4461 = vsyncpa [#allocation3], 1 }
 0xd23   :  { %4463 = vsyncpa [#allocation3 + $0x1], 1 }
 0xd24   :  { %4464 = vsyncpa [#allocation5], 1 }
 0xd25   :  { %4466 = vsyncpa [#allocation5 + $0x1], 1 }

</bundles_post_ra>
